<compile_context>
chip_gen: v7x
topology: tpu7x:2x2x1
jax: 0.10.0
libtpu: 0.0.40
codegen_flags: <defaults>
</compile_context>

<pallas_src>
import functools
import math

import jax
import jax.numpy as jnp
from jax.experimental import pallas as pl
from jax.experimental.pallas import tpu as pltpu

EPS = 1e-5  # PyTorch BatchNorm2d default eps


def _round_up(x, m):
    return (x + m - 1) // m * m


# --------------------------------------------------------------------------- #
# Kernel 1: fused [prev-layer BN affine + ReLU] -> im2col -> 3x3 conv (single
#           MXU matmul, K = 9*Cin) -> fused BN batch statistics.
# --------------------------------------------------------------------------- #
def _conv3x3_im2col_kernel(x_ref, scale_ref, shift_ref, w_ref, y_ref, stats_ref,
                           col_ref, *, apply_act):
    # x_ref    : (1, H, W, Cin)   f32 (layer 1) or bf16 (raw conv out of prev layer)
    # scale_ref: (1, Cin) f32     previous layer BN scale  (unused if not apply_act)
    # shift_ref: (1, Cin) f32     previous layer BN shift  (unused if not apply_act)
    # w_ref    : (9*Cin, Cout)    bf16 flattened conv weights (tap-major)
    # y_ref    : (1, H, W, Cout)  bf16 raw (pre-BN) conv output
    # stats_ref: (1, 2, Cout)     f32  [sum(y), sum(y*y)] partial sums for this image
    # col_ref  : (H, Wp, 9*Cin)   bf16 VMEM im2col scratch
    H, W, Cin = x_ref.shape[1], x_ref.shape[2], x_ref.shape[3]
    Cout = y_ref.shape[3]
    Wp, K9 = col_ref.shape[1], col_ref.shape[2]

    # Previous layer's BatchNorm affine + ReLU, fused into the slab build (f32 math).
    x = x_ref[0].astype(jnp.float32)                       # (H, W, Cin)
    if apply_act:
        x = jnp.maximum(x * scale_ref[...] + shift_ref[...], 0.0)

    # Three column-shifted variants (ox = -1, 0, +1): pltpu.roll on the f32 value
    # (XLU, no packed-sublane store tricks) + zero the wrapped halo column, then
    # cast to bf16 for the MXU.
    xi = jax.lax.broadcasted_iota(jnp.int32, (H, W, Cin), 1)
    src = []
    for ox in (-1, 0, 1):
        if ox == 0:
            s = x
        else:
            s = pltpu.roll(x, shift=(-ox) % W, axis=1)     # s[:, xcol] = x[:, xcol+ox]
            bad = 0 if ox == -1 else W - 1
            s = jnp.where(xi == bad, 0.0, s)
        src.append(s.astype(jnp.bfloat16))                 # src[dx], ox = dx - 1

    # im2col: write the activated image at the 9 tap offsets into the scratch.
    # All stores start at column 0 / full W width and at lane offset t*Cin (word
    # granular); row offsets live on the outer (untiled) dim.  Only the 1-row conv
    # halo strips need zeroing; columns [W, Wp) stay garbage and are masked later.
    zrow = jnp.zeros((1, W, Cin), jnp.bfloat16)
    for dy in range(3):
        oy = dy - 1
        y0, y1 = max(0, -oy), min(H, H - oy)               # valid destination rows
        for dx in range(3):
            t = dy * 3 + dx
            tsl = slice(t * Cin, (t + 1) * Cin)
            col_ref[y0:y1, 0:W, tsl] = src[dx][y0 + oy:y1 + oy, :, :]
            if oy == -1:                                   # top conv-halo row
                col_ref[0:1, 0:W, tsl] = zrow
            elif oy == 1:                                  # bottom conv-halo row
                col_ref[H - 1:H, 0:W, tsl] = zrow

    # One MXU matmul, K = 9*Cin, f32 accumulation.  Wp % 16 == 0 keeps the (H, Wp)
    # merge a free, layout-preserving reshape for the bf16 slab.
    acc = jnp.dot(col_ref[...].reshape(H * Wp, K9), w_ref[...],
                  preferred_element_type=jnp.float32)      # (H*Wp, Cout)

    # Fused BatchNorm batch statistics (padded columns excluded with a select).
    if Wp == W:
        valid = acc
    else:
        ridx = jax.lax.broadcasted_iota(jnp.int32, (H * Wp, 1), 0)
        valid = jnp.where((ridx % Wp) < W, acc, 0.0)
    s1 = jnp.sum(valid, axis=0, keepdims=True)             # (1, Cout)
    s2 = jnp.sum(valid * valid, axis=0, keepdims=True)
    stats_ref[0] = jnp.concatenate([s1, s2], axis=0)       # (2, Cout)

    # Raw (pre-BN) conv output, stored bf16.
    yb = acc.astype(jnp.bfloat16)
    if Wp == W:
        y_ref[0] = yb.reshape(H, W, Cout)
    else:
        y_ref[0] = yb.reshape(H, Wp, Cout)[:, :W, :]


def conv3x3_bn_stats(x, scale, shift, w_flat, *, apply_act):
    """[optional BN affine + ReLU] -> 3x3 conv (pad 1, bias=False) -> BN partial stats.

    x: (N, H, W, Cin) f32/bf16, scale/shift: (1, Cin) f32, w_flat: (9*Cin, Cout) bf16
    returns: raw conv output (N, H, W, Cout) bf16, stats (N, 2, Cout) f32
    """
    N, H, W, Cin = x.shape
    K9, Cout = w_flat.shape
    assert K9 == 9 * Cin
    Wp = _round_up(W, 16)  # bf16 sublane packing: keep the (H, Wp) merge layout-free
    kernel = functools.partial(_conv3x3_im2col_kernel, apply_act=apply_act)
    return pl.pallas_call(
        kernel,
        out_shape=(
            jax.ShapeDtypeStruct((N, H, W, Cout), jnp.bfloat16),
            jax.ShapeDtypeStruct((N, 2, Cout), jnp.float32),
        ),
        grid=(N,),
        in_specs=[
            pl.BlockSpec((1, H, W, Cin), lambda n: (n, 0, 0, 0)),
            pl.BlockSpec((1, Cin), lambda n: (0, 0)),
            pl.BlockSpec((1, Cin), lambda n: (0, 0)),
            pl.BlockSpec((K9, Cout), lambda n: (0, 0)),
        ],
        out_specs=(
            pl.BlockSpec((1, H, W, Cout), lambda n: (n, 0, 0, 0)),
            pl.BlockSpec((1, 2, Cout), lambda n: (n, 0, 0)),
        ),
        scratch_shapes=[pltpu.VMEM((H, Wp, K9), jnp.bfloat16)],
        compiler_params=pltpu.CompilerParams(
            dimension_semantics=("parallel",),   # batch axis -> both TCs on v7x
        ),
    )(x, scale, shift, w_flat)


# --------------------------------------------------------------------------- #
# Kernel 2: final BatchNorm scale/shift + ReLU, lane-dense elementwise.
# --------------------------------------------------------------------------- #
def _bn_relu_kernel(y_ref, scale_ref, shift_ref, o_ref):
    y = y_ref[...].astype(jnp.float32)
    o_ref[...] = jnp.maximum(y * scale_ref[...] + shift_ref[...], 0.0)


def bn_relu_dense(y2, scale_t, shift_t):
    """y2: (rows, W*C) bf16, scale_t/shift_t: (1, W*C) f32 -> (rows, W*C) f32."""
    rows, wc = y2.shape
    tr = min(rows, max(8, ((1 << 20) // (wc * 4)) // 8 * 8))   # ~1 MiB f32 per tile
    return pl.pallas_call(
        _bn_relu_kernel,
        out_shape=jax.ShapeDtypeStruct((rows, wc), jnp.float32),
        grid=(pl.cdiv(rows, tr),),
        in_specs=[
            pl.BlockSpec((tr, wc), lambda i: (i, 0)),
            pl.BlockSpec((1, wc), lambda i: (0, 0)),
            pl.BlockSpec((1, wc), lambda i: (0, 0)),
        ],
        out_specs=pl.BlockSpec((tr, wc), lambda i: (i, 0)),
        compiler_params=pltpu.CompilerParams(dimension_semantics=("parallel",)),
    )(y2, scale_t, shift_t)


# --------------------------------------------------------------------------- #
# Host-side glue: BN scale/shift from fused stats, DoubleConv forward.
# --------------------------------------------------------------------------- #
def _bn_scale_shift(stats, gamma, beta, count):
    tot = jnp.sum(stats, axis=0)                           # (2, C), tiny
    mean = tot[0] / count
    var = jnp.maximum(tot[1] / count - mean * mean, 0.0)   # biased var (train mode)
    scale = gamma * jax.lax.rsqrt(var + EPS)
    shift = beta - mean * scale
    return scale, shift


def double_conv_forward(params, x_nchw):
    x = jnp.transpose(x_nchw, (0, 2, 3, 1)).astype(jnp.float32)   # NCHW -> NHWC
    N, H, W, _ = x.shape
    count = float(N * H * W)

    a, scale, shift, apply_act = x, None, None, False
    for name in ("conv1", "conv2", "conv3"):
        p = params[name]
        cin = a.shape[-1]
        if apply_act:
            s_in, sh_in = scale.reshape(1, cin), shift.reshape(1, cin)
        else:   # layer 1: no preceding BN/ReLU
            s_in = jnp.ones((1, cin), jnp.float32)
            sh_in = jnp.zeros((1, cin), jnp.float32)
        a, stats = conv3x3_bn_stats(a, s_in, sh_in, p["w"], apply_act=apply_act)
        scale, shift = _bn_scale_shift(stats, p["gamma"], p["beta"], count)
        apply_act = True

    # Final BatchNorm + ReLU over the last raw conv output (lane-dense view is a
    # free host-side reshape: HBM bytes of (N,H,W,C) and (N*H, W*C) are identical).
    cout = a.shape[-1]
    out = bn_relu_dense(
        a.reshape(N * H, W * cout),
        jnp.tile(scale, W)[None, :],
        jnp.tile(shift, W)[None, :],
    )
    return jnp.transpose(out.reshape(N, H, W, cout), (0, 3, 1, 2))  # NHWC -> NCHW


# --------------------------------------------------------------------------- #
# Parameter construction (PyTorch defaults; conv bias=False).
# --------------------------------------------------------------------------- #
def init_params(key, in_channels, out_channels):
    defs = (("conv1", in_channels, out_channels),
            ("conv2", out_channels, out_channels),
            ("conv3", out_channels, out_channels))
    keys = jax.random.split(key, len(defs))
    params = {}
    for k, (name, cin, cout) in zip(keys, defs):
        bound = 1.0 / math.sqrt(9.0 * cin)   # PyTorch Conv2d default init bound
        w = jax.random.uniform(k, (3, 3, cin, cout), jnp.float32, -bound, bound)
        params[name] = dict(
            # flatten taps into the contraction dim once, cast once to bf16 (MXU path)
            w=w.reshape(9 * cin, cout).astype(jnp.bfloat16),
            gamma=jnp.ones((cout,), jnp.float32),   # BatchNorm2d affine defaults
            beta=jnp.zeros((cout,), jnp.float32),
        )
    return params


# ---------------------------------- main ----------------------------------- #
if __name__ == "__main__":
    key = jax.random.PRNGKey(0)
    pkey, xkey = jax.random.split(key)

    in_channels, out_channels = 4, 32
    params = init_params(pkey, in_channels, out_channels)
    x = jax.random.normal(xkey, (2, in_channels, 16, 16), jnp.float32)   # NCHW

    fwd = jax.jit(functools.partial(double_conv_forward, params))
    out = fwd(x)
    jax.block_until_ready(out)

    assert out.shape == (2, out_channels, 16, 16), out.shape
    assert out.dtype == jnp.float32
    print("KERNEL_OK")
</pallas_src>

<mosaic_0001>
module attributes {stable_mosaic.version = 11 : i64} {
  func.func @_conv3x3_im2col_kernel(%arg0: i32, %arg1: memref<1x16x16x4xf32, #tpu.memory_space<vmem>>, %arg2: memref<1x4xf32, #tpu.memory_space<vmem>>, %arg3: memref<1x4xf32, #tpu.memory_space<vmem>>, %arg4: memref<36x32xbf16, #tpu.memory_space<vmem>>, %arg5: memref<1x16x16x32xbf16, #tpu.memory_space<vmem>>, %arg6: memref<1x2x32xf32, #tpu.memory_space<vmem>>, %arg7: memref<16x16x36xbf16, #tpu.memory_space<vmem>>) attributes {dimension_semantics = [#tpu.dimension_semantics<parallel>], iteration_bounds = array<i64: 2>, scalar_prefetch = 0 : i64, scratch_operands = 1 : i64, tpu.core_type = #tpu.core_type<tc>, window_params = [{transform_indices = @transform_0, window_bounds = array<i64: 1, 16, 16, 4>}, {pipeline_mode = #tpu.pipeline_mode<synchronous>, transform_indices = @transform_1, window_bounds = array<i64: 1, 4>}, {pipeline_mode = #tpu.pipeline_mode<synchronous>, transform_indices = @transform_2, window_bounds = array<i64: 1, 4>}, {pipeline_mode = #tpu.pipeline_mode<synchronous>, transform_indices = @transform_3, window_bounds = array<i64: 36, 32>}, {transform_indices = @transform_4, window_bounds = array<i64: 1, 16, 16, 32>}, {transform_indices = @transform_5, window_bounds = array<i64: 1, 2, 32>}]} {
    %c0 = arith.constant 0 : index
    %c0_0 = arith.constant 0 : index
    %c0_1 = arith.constant 0 : index
    %c0_2 = arith.constant 0 : index
    %0 = vector.load %arg1[%c0, %c0_0, %c0_1, %c0_2] : memref<1x16x16x4xf32, #tpu.memory_space<vmem>>, vector<1x16x16x4xf32>
    %1 = vector.shape_cast %0 : vector<1x16x16x4xf32> to vector<16x16x4xf32>
    %2 = tpu.iota {dimensions = array<i32: 1>} : vector<16x16x4xi32>
    %c1_i32 = arith.constant 1 : i32
    %3 = tpu.dynamic_rotate %1 by %c1_i32 dim 1 : vector<16x16x4xf32>, i32 -> vector<16x16x4xf32>
    %c0_i32 = arith.constant 0 : i32
    %4 = vector.broadcast %c0_i32 : i32 to vector<16x16x4xi32>
    %5 = arith.cmpi eq, %2, %4 : vector<16x16x4xi32>
    %cst = arith.constant 0.000000e+00 : f32
    %6 = vector.broadcast %cst : f32 to vector<16x16x4xf32>
    %7 = arith.select %5, %6, %3 : vector<16x16x4xi1>, vector<16x16x4xf32>
    %8 = arith.truncf %7 : vector<16x16x4xf32> to vector<16x16x4xbf16>
    %9 = arith.truncf %1 : vector<16x16x4xf32> to vector<16x16x4xbf16>
    %c15_i32 = arith.constant 15 : i32
    %10 = tpu.dynamic_rotate %1 by %c15_i32 dim 1 : vector<16x16x4xf32>, i32 -> vector<16x16x4xf32>
    %c15_i32_3 = arith.constant 15 : i32
    %11 = vector.broadcast %c15_i32_3 : i32 to vector<16x16x4xi32>
    %12 = arith.cmpi eq, %2, %11 : vector<16x16x4xi32>
    %cst_4 = arith.constant 0.000000e+00 : f32
    %13 = vector.broadcast %cst_4 : f32 to vector<16x16x4xf32>
    %14 = arith.select %12, %13, %10 : vector<16x16x4xi1>, vector<16x16x4xf32>
    %15 = arith.truncf %14 : vector<16x16x4xf32> to vector<16x16x4xbf16>
    %cst_5 = arith.constant 0.000000e+00 : bf16
    %16 = vector.broadcast %cst_5 : bf16 to vector<1x16x4xbf16>
    %17 = vector.extract_strided_slice %8 {offsets = [0, 0, 0], sizes = [15, 16, 4], strides = [1, 1, 1]} : vector<16x16x4xbf16> to vector<15x16x4xbf16>
    %c1 = arith.constant 1 : index
    %c0_6 = arith.constant 0 : index
    %c0_7 = arith.constant 0 : index
    %18 = vector.load %arg7[%c1, %c0_6, %c0_7] : memref<16x16x36xbf16, #tpu.memory_space<vmem>>, vector<15x16x4xbf16>
    tpu.vector_store %arg7[%c1, %c0_6, %c0_7], %17 {strides = array<i32>} : memref<16x16x36xbf16, #tpu.memory_space<vmem>>, vector<15x16x4xbf16>,
    %c0_8 = arith.constant 0 : index
    %c0_9 = arith.constant 0 : index
    %c0_10 = arith.constant 0 : index
    %19 = vector.load %arg7[%c0_8, %c0_9, %c0_10] : memref<16x16x36xbf16, #tpu.memory_space<vmem>>, vector<1x16x4xbf16>
    tpu.vector_store %arg7[%c0_8, %c0_9, %c0_10], %16 {strides = array<i32>} : memref<16x16x36xbf16, #tpu.memory_space<vmem>>, vector<1x16x4xbf16>,
    %20 = vector.extract_strided_slice %9 {offsets = [0, 0, 0], sizes = [15, 16, 4], strides = [1, 1, 1]} : vector<16x16x4xbf16> to vector<15x16x4xbf16>
    %c1_11 = arith.constant 1 : index
    %c0_12 = arith.constant 0 : index
    %c4 = arith.constant 4 : index
    %21 = vector.load %arg7[%c1_11, %c0_12, %c4] : memref<16x16x36xbf16, #tpu.memory_space<vmem>>, vector<15x16x4xbf16>
    tpu.vector_store %arg7[%c1_11, %c0_12, %c4], %20 {strides = array<i32>} : memref<16x16x36xbf16, #tpu.memory_space<vmem>>, vector<15x16x4xbf16>,
    %c0_13 = arith.constant 0 : index
    %c0_14 = arith.constant 0 : index
    %c4_15 = arith.constant 4 : index
    %22 = vector.load %arg7[%c0_13, %c0_14, %c4_15] : memref<16x16x36xbf16, #tpu.memory_space<vmem>>, vector<1x16x4xbf16>
    tpu.vector_store %arg7[%c0_13, %c0_14, %c4_15], %16 {strides = array<i32>} : memref<16x16x36xbf16, #tpu.memory_space<vmem>>, vector<1x16x4xbf16>,
    %23 = vector.extract_strided_slice %15 {offsets = [0, 0, 0], sizes = [15, 16, 4], strides = [1, 1, 1]} : vector<16x16x4xbf16> to vector<15x16x4xbf16>
    %c1_16 = arith.constant 1 : index
    %c0_17 = arith.constant 0 : index
    %c8 = arith.constant 8 : index
    %24 = vector.load %arg7[%c1_16, %c0_17, %c8] : memref<16x16x36xbf16, #tpu.memory_space<vmem>>, vector<15x16x4xbf16>
    tpu.vector_store %arg7[%c1_16, %c0_17, %c8], %23 {strides = array<i32>} : memref<16x16x36xbf16, #tpu.memory_space<vmem>>, vector<15x16x4xbf16>,
    %c0_18 = arith.constant 0 : index
    %c0_19 = arith.constant 0 : index
    %c8_20 = arith.constant 8 : index
    %25 = vector.load %arg7[%c0_18, %c0_19, %c8_20] : memref<16x16x36xbf16, #tpu.memory_space<vmem>>, vector<1x16x4xbf16>
    tpu.vector_store %arg7[%c0_18, %c0_19, %c8_20], %16 {strides = array<i32>} : memref<16x16x36xbf16, #tpu.memory_space<vmem>>, vector<1x16x4xbf16>,
    %c0_21 = arith.constant 0 : index
    %c0_22 = arith.constant 0 : index
    %c12 = arith.constant 12 : index
    %26 = vector.load %arg7[%c0_21, %c0_22, %c12] : memref<16x16x36xbf16, #tpu.memory_space<vmem>>, vector<16x16x4xbf16>
    tpu.vector_store %arg7[%c0_21, %c0_22, %c12], %8 {strides = array<i32>} : memref<16x16x36xbf16, #tpu.memory_space<vmem>>, vector<16x16x4xbf16>,
    %c0_23 = arith.constant 0 : index
    %c0_24 = arith.constant 0 : index
    %c16 = arith.constant 16 : index
    %27 = vector.load %arg7[%c0_23, %c0_24, %c16] : memref<16x16x36xbf16, #tpu.memory_space<vmem>>, vector<16x16x4xbf16>
    tpu.vector_store %arg7[%c0_23, %c0_24, %c16], %9 {strides = array<i32>} : memref<16x16x36xbf16, #tpu.memory_space<vmem>>, vector<16x16x4xbf16>,
    %c0_25 = arith.constant 0 : index
    %c0_26 = arith.constant 0 : index
    %c20 = arith.constant 20 : index
    %28 = vector.load %arg7[%c0_25, %c0_26, %c20] : memref<16x16x36xbf16, #tpu.memory_space<vmem>>, vector<16x16x4xbf16>
    tpu.vector_store %arg7[%c0_25, %c0_26, %c20], %15 {strides = array<i32>} : memref<16x16x36xbf16, #tpu.memory_space<vmem>>, vector<16x16x4xbf16>,
    %29 = vector.extract_strided_slice %8 {offsets = [1, 0, 0], sizes = [15, 16, 4], strides = [1, 1, 1]} : vector<16x16x4xbf16> to vector<15x16x4xbf16>
    %c0_27 = arith.constant 0 : index
    %c0_28 = arith.constant 0 : index
    %c24 = arith.constant 24 : index
    %30 = vector.load %arg7[%c0_27, %c0_28, %c24] : memref<16x16x36xbf16, #tpu.memory_space<vmem>>, vector<15x16x4xbf16>
    tpu.vector_store %arg7[%c0_27, %c0_28, %c24], %29 {strides = array<i32>} : memref<16x16x36xbf16, #tpu.memory_space<vmem>>, vector<15x16x4xbf16>,
    %c15 = arith.constant 15 : index
    %c0_29 = arith.constant 0 : index
    %c24_30 = arith.constant 24 : index
    %31 = vector.load %arg7[%c15, %c0_29, %c24_30] : memref<16x16x36xbf16, #tpu.memory_space<vmem>>, vector<1x16x4xbf16>
    tpu.vector_store %arg7[%c15, %c0_29, %c24_30], %16 {strides = array<i32>} : memref<16x16x36xbf16, #tpu.memory_space<vmem>>, vector<1x16x4xbf16>,
    %32 = vector.extract_strided_slice %9 {offsets = [1, 0, 0], sizes = [15, 16, 4], strides = [1, 1, 1]} : vector<16x16x4xbf16> to vector<15x16x4xbf16>
    %c0_31 = arith.constant 0 : index
    %c0_32 = arith.constant 0 : index
    %c28 = arith.constant 28 : index
    %33 = vector.load %arg7[%c0_31, %c0_32, %c28] : memref<16x16x36xbf16, #tpu.memory_space<vmem>>, vector<15x16x4xbf16>
    tpu.vector_store %arg7[%c0_31, %c0_32, %c28], %32 {strides = array<i32>} : memref<16x16x36xbf16, #tpu.memory_space<vmem>>, vector<15x16x4xbf16>,
    %c15_33 = arith.constant 15 : index
    %c0_34 = arith.constant 0 : index
    %c28_35 = arith.constant 28 : index
    %34 = vector.load %arg7[%c15_33, %c0_34, %c28_35] : memref<16x16x36xbf16, #tpu.memory_space<vmem>>, vector<1x16x4xbf16>
    tpu.vector_store %arg7[%c15_33, %c0_34, %c28_35], %16 {strides = array<i32>} : memref<16x16x36xbf16, #tpu.memory_space<vmem>>, vector<1x16x4xbf16>,
    %35 = vector.extract_strided_slice %15 {offsets = [1, 0, 0], sizes = [15, 16, 4], strides = [1, 1, 1]} : vector<16x16x4xbf16> to vector<15x16x4xbf16>
    %c0_36 = arith.constant 0 : index
    %c0_37 = arith.constant 0 : index
    %c32 = arith.constant 32 : index
    %36 = vector.load %arg7[%c0_36, %c0_37, %c32] : memref<16x16x36xbf16, #tpu.memory_space<vmem>>, vector<15x16x4xbf16>
    tpu.vector_store %arg7[%c0_36, %c0_37, %c32], %35 {strides = array<i32>} : memref<16x16x36xbf16, #tpu.memory_space<vmem>>, vector<15x16x4xbf16>,
    %c15_38 = arith.constant 15 : index
    %c0_39 = arith.constant 0 : index
    %c32_40 = arith.constant 32 : index
    %37 = vector.load %arg7[%c15_38, %c0_39, %c32_40] : memref<16x16x36xbf16, #tpu.memory_space<vmem>>, vector<1x16x4xbf16>
    tpu.vector_store %arg7[%c15_38, %c0_39, %c32_40], %16 {strides = array<i32>} : memref<16x16x36xbf16, #tpu.memory_space<vmem>>, vector<1x16x4xbf16>,
    %c0_41 = arith.constant 0 : index
    %c0_42 = arith.constant 0 : index
    %c0_43 = arith.constant 0 : index
    %38 = vector.load %arg7[%c0_41, %c0_42, %c0_43] : memref<16x16x36xbf16, #tpu.memory_space<vmem>>, vector<16x16x36xbf16>
    %39 = vector.shape_cast %38 : vector<16x16x36xbf16> to vector<256x36xbf16>
    %c0_44 = arith.constant 0 : index
    %c0_45 = arith.constant 0 : index
    %40 = vector.load %arg4[%c0_44, %c0_45] : memref<36x32xbf16, #tpu.memory_space<vmem>>, vector<36x32xbf16>
    %cst_46 = arith.constant dense<0.000000e+00> : vector<256x32xf32>
    %41 = tpu.matmul %39, %40, %cst_46 {dimension_numbers = #tpu.dot_dimension_numbers<[1], [0], [0], [1], [0, 0, 1, 1], [], []>} : vector<256x36xbf16>, vector<36x32xbf16>, vector<256x32xf32> -> vector<256x32xf32>
    %cst_47 = arith.constant dense<0.000000e+00> : vector<32xf32>
    %42 = vector.multi_reduction <add>, %41, %cst_47 [0] : vector<256x32xf32> to vector<32xf32>
    %43 = vector.shape_cast %42 : vector<32xf32> to vector<1x32xf32>
    %44 = arith.mulf %41, %41 : vector<256x32xf32>
    %cst_48 = arith.constant dense<0.000000e+00> : vector<32xf32>
    %45 = vector.multi_reduction <add>, %44, %cst_48 [0] : vector<256x32xf32> to vector<32xf32>
    %46 = vector.shape_cast %45 : vector<32xf32> to vector<1x32xf32>
    %47 = tpu.concatenate %43, %46 in 0 : vector<1x32xf32>, vector<1x32xf32> -> vector<2x32xf32>
    %c0_49 = arith.constant 0 : index
    %c0_50 = arith.constant 0 : index
    %c0_51 = arith.constant 0 : index
    %48 = vector.load %arg6[%c0_49, %c0_50, %c0_51] : memref<1x2x32xf32, #tpu.memory_space<vmem>>, vector<1x2x32xf32>
    %49 = vector.shape_cast %48 : vector<1x2x32xf32> to vector<2x32xf32>
    %50 = vector.shape_cast %47 : vector<2x32xf32> to vector<1x2x32xf32>
    tpu.vector_store %arg6[%c0_49, %c0_50, %c0_51], %50 {strides = array<i32>} : memref<1x2x32xf32, #tpu.memory_space<vmem>>, vector<1x2x32xf32>,
    %51 = arith.truncf %41 : vector<256x32xf32> to vector<256x32xbf16>
    %52 = vector.shape_cast %51 : vector<256x32xbf16> to vector<16x16x32xbf16>
    %c0_52 = arith.constant 0 : index
    %c0_53 = arith.constant 0 : index
    %c0_54 = arith.constant 0 : index
    %c0_55 = arith.constant 0 : index
    %53 = vector.load %arg5[%c0_52, %c0_53, %c0_54, %c0_55] : memref<1x16x16x32xbf16, #tpu.memory_space<vmem>>, vector<1x16x16x32xbf16>
    %54 = vector.shape_cast %53 : vector<1x16x16x32xbf16> to vector<16x16x32xbf16>
    %55 = vector.shape_cast %52 : vector<16x16x32xbf16> to vector<1x16x16x32xbf16>
    tpu.vector_store %arg5[%c0_52, %c0_53, %c0_54, %c0_55], %55 {strides = array<i32>} : memref<1x16x16x32xbf16, #tpu.memory_space<vmem>>, vector<1x16x16x32xbf16>,
    return
  }
  func.func @transform_0(%arg0: i32) -> (i32, i32, i32, i32) {
    %c0_i32 = arith.constant 0 : i32
    %c0_i32_0 = arith.constant 0 : i32
    %c0_i32_1 = arith.constant 0 : i32
    %c0_i32_2 = arith.constant 0 : i32
    return %arg0, %c0_i32, %c0_i32_0, %c0_i32_1 : i32, i32, i32, i32
  }
  func.func @transform_1(%arg0: i32) -> (i32, i32) {
    %c0_i32 = arith.constant 0 : i32
    %c0_i32_0 = arith.constant 0 : i32
    %c0_i32_1 = arith.constant 0 : i32
    return %c0_i32, %c0_i32_0 : i32, i32
  }
  func.func @transform_2(%arg0: i32) -> (i32, i32) {
    %c0_i32 = arith.constant 0 : i32
    %c0_i32_0 = arith.constant 0 : i32
    %c0_i32_1 = arith.constant 0 : i32
    return %c0_i32, %c0_i32_0 : i32, i32
  }
  func.func @transform_3(%arg0: i32) -> (i32, i32) {
    %c0_i32 = arith.constant 0 : i32
    %c0_i32_0 = arith.constant 0 : i32
    %c0_i32_1 = arith.constant 0 : i32
    return %c0_i32, %c0_i32_0 : i32, i32
  }
  func.func @transform_4(%arg0: i32) -> (i32, i32, i32, i32) {
    %c0_i32 = arith.constant 0 : i32
    %c0_i32_0 = arith.constant 0 : i32
    %c0_i32_1 = arith.constant 0 : i32
    %c0_i32_2 = arith.constant 0 : i32
    return %arg0, %c0_i32, %c0_i32_0, %c0_i32_1 : i32, i32, i32, i32
  }
  func.func @transform_5(%arg0: i32) -> (i32, i32, i32) {
    %c0_i32 = arith.constant 0 : i32
    %c0_i32_0 = arith.constant 0 : i32
    %c0_i32_1 = arith.constant 0 : i32
    return %arg0, %c0_i32, %c0_i32_0 : i32, i32, i32
  }
}

module attributes {stable_mosaic.version = 11 : i64} {
  func.func @_conv3x3_im2col_kernel(%arg0: i32, %arg1: memref<1x16x16x32xbf16, #tpu.memory_space<vmem>>, %arg2: memref<1x32xf32, #tpu.memory_space<vmem>>, %arg3: memref<1x32xf32, #tpu.memory_space<vmem>>, %arg4: memref<288x32xbf16, #tpu.memory_space<vmem>>, %arg5: memref<1x16x16x32xbf16, #tpu.memory_space<vmem>>, %arg6: memref<1x2x32xf32, #tpu.memory_space<vmem>>, %arg7: memref<16x16x288xbf16, #tpu.memory_space<vmem>>) attributes {dimension_semantics = [#tpu.dimension_semantics<parallel>], iteration_bounds = array<i64: 2>, scalar_prefetch = 0 : i64, scratch_operands = 1 : i64, tpu.core_type = #tpu.core_type<tc>, window_params = [{transform_indices = @transform_0, window_bounds = array<i64: 1, 16, 16, 32>}, {pipeline_mode = #tpu.pipeline_mode<synchronous>, transform_indices = @transform_1, window_bounds = array<i64: 1, 32>}, {pipeline_mode = #tpu.pipeline_mode<synchronous>, transform_indices = @transform_2, window_bounds = array<i64: 1, 32>}, {pipeline_mode = #tpu.pipeline_mode<synchronous>, transform_indices = @transform_3, window_bounds = array<i64: 288, 32>}, {transform_indices = @transform_4, window_bounds = array<i64: 1, 16, 16, 32>}, {transform_indices = @transform_5, window_bounds = array<i64: 1, 2, 32>}]} {
    %c0 = arith.constant 0 : index
    %c0_0 = arith.constant 0 : index
    %c0_1 = arith.constant 0 : index
    %c0_2 = arith.constant 0 : index
    %0 = vector.load %arg1[%c0, %c0_0, %c0_1, %c0_2] : memref<1x16x16x32xbf16, #tpu.memory_space<vmem>>, vector<1x16x16x32xbf16>
    %1 = vector.shape_cast %0 : vector<1x16x16x32xbf16> to vector<16x16x32xbf16>
    %2 = arith.extf %1 : vector<16x16x32xbf16> to vector<16x16x32xf32>
    %c0_3 = arith.constant 0 : index
    %c0_4 = arith.constant 0 : index
    %3 = vector.load %arg2[%c0_3, %c0_4] : memref<1x32xf32, #tpu.memory_space<vmem>>, vector<1x32xf32>
    %4 = vector.shape_cast %3 : vector<1x32xf32> to vector<1x1x32xf32>
    %5 = vector.broadcast %4 : vector<1x1x32xf32> to vector<16x16x32xf32>
    %6 = arith.mulf %2, %5 : vector<16x16x32xf32>
    %c0_5 = arith.constant 0 : index
    %c0_6 = arith.constant 0 : index
    %7 = vector.load %arg3[%c0_5, %c0_6] : memref<1x32xf32, #tpu.memory_space<vmem>>, vector<1x32xf32>
    %8 = vector.shape_cast %7 : vector<1x32xf32> to vector<1x1x32xf32>
    %9 = vector.broadcast %8 : vector<1x1x32xf32> to vector<16x16x32xf32>
    %10 = arith.addf %6, %9 : vector<16x16x32xf32>
    %cst = arith.constant 0.000000e+00 : f32
    %11 = vector.broadcast %cst : f32 to vector<16x16x32xf32>
    %12 = arith.maximumf %10, %11 : vector<16x16x32xf32>
    %13 = tpu.iota {dimensions = array<i32: 1>} : vector<16x16x32xi32>
    %c1_i32 = arith.constant 1 : i32
    %14 = tpu.dynamic_rotate %12 by %c1_i32 dim 1 : vector<16x16x32xf32>, i32 -> vector<16x16x32xf32>
    %c0_i32 = arith.constant 0 : i32
    %15 = vector.broadcast %c0_i32 : i32 to vector<16x16x32xi32>
    %16 = arith.cmpi eq, %13, %15 : vector<16x16x32xi32>
    %cst_7 = arith.constant 0.000000e+00 : f32
    %17 = vector.broadcast %cst_7 : f32 to vector<16x16x32xf32>
    %18 = arith.select %16, %17, %14 : vector<16x16x32xi1>, vector<16x16x32xf32>
    %19 = arith.truncf %18 : vector<16x16x32xf32> to vector<16x16x32xbf16>
    %20 = arith.truncf %12 : vector<16x16x32xf32> to vector<16x16x32xbf16>
    %c15_i32 = arith.constant 15 : i32
    %21 = tpu.dynamic_rotate %12 by %c15_i32 dim 1 : vector<16x16x32xf32>, i32 -> vector<16x16x32xf32>
    %c15_i32_8 = arith.constant 15 : i32
    %22 = vector.broadcast %c15_i32_8 : i32 to vector<16x16x32xi32>
    %23 = arith.cmpi eq, %13, %22 : vector<16x16x32xi32>
    %cst_9 = arith.constant 0.000000e+00 : f32
    %24 = vector.broadcast %cst_9 : f32 to vector<16x16x32xf32>
    %25 = arith.select %23, %24, %21 : vector<16x16x32xi1>, vector<16x16x32xf32>
    %26 = arith.truncf %25 : vector<16x16x32xf32> to vector<16x16x32xbf16>
    %cst_10 = arith.constant 0.000000e+00 : bf16
    %27 = vector.broadcast %cst_10 : bf16 to vector<1x16x32xbf16>
    %28 = vector.extract_strided_slice %19 {offsets = [0, 0, 0], sizes = [15, 16, 32], strides = [1, 1, 1]} : vector<16x16x32xbf16> to vector<15x16x32xbf16>
    %c1 = arith.constant 1 : index
    %c0_11 = arith.constant 0 : index
    %c0_12 = arith.constant 0 : index
    %29 = vector.load %arg7[%c1, %c0_11, %c0_12] : memref<16x16x288xbf16, #tpu.memory_space<vmem>>, vector<15x16x32xbf16>
    tpu.vector_store %arg7[%c1, %c0_11, %c0_12], %28 {strides = array<i32>} : memref<16x16x288xbf16, #tpu.memory_space<vmem>>, vector<15x16x32xbf16>,
    %c0_13 = arith.constant 0 : index
    %c0_14 = arith.constant 0 : index
    %c0_15 = arith.constant 0 : index
    %30 = vector.load %arg7[%c0_13, %c0_14, %c0_15] : memref<16x16x288xbf16, #tpu.memory_space<vmem>>, vector<1x16x32xbf16>
    tpu.vector_store %arg7[%c0_13, %c0_14, %c0_15], %27 {strides = array<i32>} : memref<16x16x288xbf16, #tpu.memory_space<vmem>>, vector<1x16x32xbf16>,
    %31 = vector.extract_strided_slice %20 {offsets = [0, 0, 0], sizes = [15, 16, 32], strides = [1, 1, 1]} : vector<16x16x32xbf16> to vector<15x16x32xbf16>
    %c1_16 = arith.constant 1 : index
    %c0_17 = arith.constant 0 : index
    %c32 = arith.constant 32 : index
    %32 = vector.load %arg7[%c1_16, %c0_17, %c32] : memref<16x16x288xbf16, #tpu.memory_space<vmem>>, vector<15x16x32xbf16>
    tpu.vector_store %arg7[%c1_16, %c0_17, %c32], %31 {strides = array<i32>} : memref<16x16x288xbf16, #tpu.memory_space<vmem>>, vector<15x16x32xbf16>,
    %c0_18 = arith.constant 0 : index
    %c0_19 = arith.constant 0 : index
    %c32_20 = arith.constant 32 : index
    %33 = vector.load %arg7[%c0_18, %c0_19, %c32_20] : memref<16x16x288xbf16, #tpu.memory_space<vmem>>, vector<1x16x32xbf16>
    tpu.vector_store %arg7[%c0_18, %c0_19, %c32_20], %27 {strides = array<i32>} : memref<16x16x288xbf16, #tpu.memory_space<vmem>>, vector<1x16x32xbf16>,
    %34 = vector.extract_strided_slice %26 {offsets = [0, 0, 0], sizes = [15, 16, 32], strides = [1, 1, 1]} : vector<16x16x32xbf16> to vector<15x16x32xbf16>
    %c1_21 = arith.constant 1 : index
    %c0_22 = arith.constant 0 : index
    %c64 = arith.constant 64 : index
    %35 = vector.load %arg7[%c1_21, %c0_22, %c64] : memref<16x16x288xbf16, #tpu.memory_space<vmem>>, vector<15x16x32xbf16>
    tpu.vector_store %arg7[%c1_21, %c0_22, %c64], %34 {strides = array<i32>} : memref<16x16x288xbf16, #tpu.memory_space<vmem>>, vector<15x16x32xbf16>,
    %c0_23 = arith.constant 0 : index
    %c0_24 = arith.constant 0 : index
    %c64_25 = arith.constant 64 : index
    %36 = vector.load %arg7[%c0_23, %c0_24, %c64_25] : memref<16x16x288xbf16, #tpu.memory_space<vmem>>, vector<1x16x32xbf16>
    tpu.vector_store %arg7[%c0_23, %c0_24, %c64_25], %27 {strides = array<i32>} : memref<16x16x288xbf16, #tpu.memory_space<vmem>>, vector<1x16x32xbf16>,
    %c0_26 = arith.constant 0 : index
    %c0_27 = arith.constant 0 : index
    %c96 = arith.constant 96 : index
    %37 = vector.load %arg7[%c0_26, %c0_27, %c96] : memref<16x16x288xbf16, #tpu.memory_space<vmem>>, vector<16x16x32xbf16>
    tpu.vector_store %arg7[%c0_26, %c0_27, %c96], %19 {strides = array<i32>} : memref<16x16x288xbf16, #tpu.memory_space<vmem>>, vector<16x16x32xbf16>,
    %c0_28 = arith.constant 0 : index
    %c0_29 = arith.constant 0 : index
    %c128 = arith.constant 128 : index
    %38 = vector.load %arg7[%c0_28, %c0_29, %c128] : memref<16x16x288xbf16, #tpu.memory_space<vmem>>, vector<16x16x32xbf16>
    tpu.vector_store %arg7[%c0_28, %c0_29, %c128], %20 {strides = array<i32>} : memref<16x16x288xbf16, #tpu.memory_space<vmem>>, vector<16x16x32xbf16>,
    %c0_30 = arith.constant 0 : index
    %c0_31 = arith.constant 0 : index
    %c160 = arith.constant 160 : index
    %39 = vector.load %arg7[%c0_30, %c0_31, %c160] : memref<16x16x288xbf16, #tpu.memory_space<vmem>>, vector<16x16x32xbf16>
    tpu.vector_store %arg7[%c0_30, %c0_31, %c160], %26 {strides = array<i32>} : memref<16x16x288xbf16, #tpu.memory_space<vmem>>, vector<16x16x32xbf16>,
    %40 = vector.extract_strided_slice %19 {offsets = [1, 0, 0], sizes = [15, 16, 32], strides = [1, 1, 1]} : vector<16x16x32xbf16> to vector<15x16x32xbf16>
    %c0_32 = arith.constant 0 : index
    %c0_33 = arith.constant 0 : index
    %c192 = arith.constant 192 : index
    %41 = vector.load %arg7[%c0_32, %c0_33, %c192] : memref<16x16x288xbf16, #tpu.memory_space<vmem>>, vector<15x16x32xbf16>
    tpu.vector_store %arg7[%c0_32, %c0_33, %c192], %40 {strides = array<i32>} : memref<16x16x288xbf16, #tpu.memory_space<vmem>>, vector<15x16x32xbf16>,
    %c15 = arith.constant 15 : index
    %c0_34 = arith.constant 0 : index
    %c192_35 = arith.constant 192 : index
    %42 = vector.load %arg7[%c15, %c0_34, %c192_35] : memref<16x16x288xbf16, #tpu.memory_space<vmem>>, vector<1x16x32xbf16>
    tpu.vector_store %arg7[%c15, %c0_34, %c192_35], %27 {strides = array<i32>} : memref<16x16x288xbf16, #tpu.memory_space<vmem>>, vector<1x16x32xbf16>,
    %43 = vector.extract_strided_slice %20 {offsets = [1, 0, 0], sizes = [15, 16, 32], strides = [1, 1, 1]} : vector<16x16x32xbf16> to vector<15x16x32xbf16>
    %c0_36 = arith.constant 0 : index
    %c0_37 = arith.constant 0 : index
    %c224 = arith.constant 224 : index
    %44 = vector.load %arg7[%c0_36, %c0_37, %c224] : memref<16x16x288xbf16, #tpu.memory_space<vmem>>, vector<15x16x32xbf16>
    tpu.vector_store %arg7[%c0_36, %c0_37, %c224], %43 {strides = array<i32>} : memref<16x16x288xbf16, #tpu.memory_space<vmem>>, vector<15x16x32xbf16>,
    %c15_38 = arith.constant 15 : index
    %c0_39 = arith.constant 0 : index
    %c224_40 = arith.constant 224 : index
    %45 = vector.load %arg7[%c15_38, %c0_39, %c224_40] : memref<16x16x288xbf16, #tpu.memory_space<vmem>>, vector<1x16x32xbf16>
    tpu.vector_store %arg7[%c15_38, %c0_39, %c224_40], %27 {strides = array<i32>} : memref<16x16x288xbf16, #tpu.memory_space<vmem>>, vector<1x16x32xbf16>,
    %46 = vector.extract_strided_slice %26 {offsets = [1, 0, 0], sizes = [15, 16, 32], strides = [1, 1, 1]} : vector<16x16x32xbf16> to vector<15x16x32xbf16>
    %c0_41 = arith.constant 0 : index
    %c0_42 = arith.constant 0 : index
    %c256 = arith.constant 256 : index
    %47 = vector.load %arg7[%c0_41, %c0_42, %c256] : memref<16x16x288xbf16, #tpu.memory_space<vmem>>, vector<15x16x32xbf16>
    tpu.vector_store %arg7[%c0_41, %c0_42, %c256], %46 {strides = array<i32>} : memref<16x16x288xbf16, #tpu.memory_space<vmem>>, vector<15x16x32xbf16>,
    %c15_43 = arith.constant 15 : index
    %c0_44 = arith.constant 0 : index
    %c256_45 = arith.constant 256 : index
    %48 = vector.load %arg7[%c15_43, %c0_44, %c256_45] : memref<16x16x288xbf16, #tpu.memory_space<vmem>>, vector<1x16x32xbf16>
    tpu.vector_store %arg7[%c15_43, %c0_44, %c256_45], %27 {strides = array<i32>} : memref<16x16x288xbf16, #tpu.memory_space<vmem>>, vector<1x16x32xbf16>,
    %c0_46 = arith.constant 0 : index
    %c0_47 = arith.constant 0 : index
    %c0_48 = arith.constant 0 : index
    %49 = vector.load %arg7[%c0_46, %c0_47, %c0_48] : memref<16x16x288xbf16, #tpu.memory_space<vmem>>, vector<16x16x288xbf16>
    %50 = vector.shape_cast %49 : vector<16x16x288xbf16> to vector<256x288xbf16>
    %c0_49 = arith.constant 0 : index
    %c0_50 = arith.constant 0 : index
    %51 = vector.load %arg4[%c0_49, %c0_50] : memref<288x32xbf16, #tpu.memory_space<vmem>>, vector<288x32xbf16>
    %cst_51 = arith.constant dense<0.000000e+00> : vector<256x32xf32>
    %52 = tpu.matmul %50, %51, %cst_51 {dimension_numbers = #tpu.dot_dimension_numbers<[1], [0], [0], [1], [0, 0, 1, 1], [], []>} : vector<256x288xbf16>, vector<288x32xbf16>, vector<256x32xf32> -> vector<256x32xf32>
    %cst_52 = arith.constant dense<0.000000e+00> : vector<32xf32>
    %53 = vector.multi_reduction <add>, %52, %cst_52 [0] : vector<256x32xf32> to vector<32xf32>
    %54 = vector.shape_cast %53 : vector<32xf32> to vector<1x32xf32>
    %55 = arith.mulf %52, %52 : vector<256x32xf32>
    %cst_53 = arith.constant dense<0.000000e+00> : vector<32xf32>
    %56 = vector.multi_reduction <add>, %55, %cst_53 [0] : vector<256x32xf32> to vector<32xf32>
    %57 = vector.shape_cast %56 : vector<32xf32> to vector<1x32xf32>
    %58 = tpu.concatenate %54, %57 in 0 : vector<1x32xf32>, vector<1x32xf32> -> vector<2x32xf32>
    %c0_54 = arith.constant 0 : index
    %c0_55 = arith.constant 0 : index
    %c0_56 = arith.constant 0 : index
    %59 = vector.load %arg6[%c0_54, %c0_55, %c0_56] : memref<1x2x32xf32, #tpu.memory_space<vmem>>, vector<1x2x32xf32>
    %60 = vector.shape_cast %59 : vector<1x2x32xf32> to vector<2x32xf32>
    %61 = vector.shape_cast %58 : vector<2x32xf32> to vector<1x2x32xf32>
    tpu.vector_store %arg6[%c0_54, %c0_55, %c0_56], %61 {strides = array<i32>} : memref<1x2x32xf32, #tpu.memory_space<vmem>>, vector<1x2x32xf32>,
    %62 = arith.truncf %52 : vector<256x32xf32> to vector<256x32xbf16>
    %63 = vector.shape_cast %62 : vector<256x32xbf16> to vector<16x16x32xbf16>
    %c0_57 = arith.constant 0 : index
    %c0_58 = arith.constant 0 : index
    %c0_59 = arith.constant 0 : index
    %c0_60 = arith.constant 0 : index
    %64 = vector.load %arg5[%c0_57, %c0_58, %c0_59, %c0_60] : memref<1x16x16x32xbf16, #tpu.memory_space<vmem>>, vector<1x16x16x32xbf16>
    %65 = vector.shape_cast %64 : vector<1x16x16x32xbf16> to vector<16x16x32xbf16>
    %66 = vector.shape_cast %63 : vector<16x16x32xbf16> to vector<1x16x16x32xbf16>
    tpu.vector_store %arg5[%c0_57, %c0_58, %c0_59, %c0_60], %66 {strides = array<i32>} : memref<1x16x16x32xbf16, #tpu.memory_space<vmem>>, vector<1x16x16x32xbf16>,
    return
  }
  func.func @transform_0(%arg0: i32) -> (i32, i32, i32, i32) {
    %c0_i32 = arith.constant 0 : i32
    %c0_i32_0 = arith.constant 0 : i32
    %c0_i32_1 = arith.constant 0 : i32
    %c0_i32_2 = arith.constant 0 : i32
    return %arg0, %c0_i32, %c0_i32_0, %c0_i32_1 : i32, i32, i32, i32
  }
  func.func @transform_1(%arg0: i32) -> (i32, i32) {
    %c0_i32 = arith.constant 0 : i32
    %c0_i32_0 = arith.constant 0 : i32
    %c0_i32_1 = arith.constant 0 : i32
    return %c0_i32, %c0_i32_0 : i32, i32
  }
  func.func @transform_2(%arg0: i32) -> (i32, i32) {
    %c0_i32 = arith.constant 0 : i32
    %c0_i32_0 = arith.constant 0 : i32
    %c0_i32_1 = arith.constant 0 : i32
    return %c0_i32, %c0_i32_0 : i32, i32
  }
  func.func @transform_3(%arg0: i32) -> (i32, i32) {
    %c0_i32 = arith.constant 0 : i32
    %c0_i32_0 = arith.constant 0 : i32
    %c0_i32_1 = arith.constant 0 : i32
    return %c0_i32, %c0_i32_0 : i32, i32
  }
  func.func @transform_4(%arg0: i32) -> (i32, i32, i32, i32) {
    %c0_i32 = arith.constant 0 : i32
    %c0_i32_0 = arith.constant 0 : i32
    %c0_i32_1 = arith.constant 0 : i32
    %c0_i32_2 = arith.constant 0 : i32
    return %arg0, %c0_i32, %c0_i32_0, %c0_i32_1 : i32, i32, i32, i32
  }
  func.func @transform_5(%arg0: i32) -> (i32, i32, i32) {
    %c0_i32 = arith.constant 0 : i32
    %c0_i32_0 = arith.constant 0 : i32
    %c0_i32_1 = arith.constant 0 : i32
    return %arg0, %c0_i32, %c0_i32_0 : i32, i32, i32
  }
}

module attributes {stable_mosaic.version = 11 : i64} {
  func.func @_bn_relu_kernel(%arg0: i32, %arg1: memref<32x512xbf16, #tpu.memory_space<vmem>>, %arg2: memref<1x512xf32, #tpu.memory_space<vmem>>, %arg3: memref<1x512xf32, #tpu.memory_space<vmem>>, %arg4: memref<32x512xf32, #tpu.memory_space<vmem>>) attributes {dimension_semantics = [#tpu.dimension_semantics<parallel>], iteration_bounds = array<i64: 1>, scalar_prefetch = 0 : i64, scratch_operands = 0 : i64, tpu.core_type = #tpu.core_type<tc>, window_params = [{transform_indices = @transform_0, window_bounds = array<i64: 32, 512>}, {pipeline_mode = #tpu.pipeline_mode<synchronous>, transform_indices = @transform_1, window_bounds = array<i64: 1, 512>}, {pipeline_mode = #tpu.pipeline_mode<synchronous>, transform_indices = @transform_2, window_bounds = array<i64: 1, 512>}, {transform_indices = @transform_3, window_bounds = array<i64: 32, 512>}]} {
    %c0 = arith.constant 0 : index
    %c0_0 = arith.constant 0 : index
    %0 = vector.load %arg1[%c0, %c0_0] : memref<32x512xbf16, #tpu.memory_space<vmem>>, vector<32x512xbf16>
    %1 = arith.extf %0 : vector<32x512xbf16> to vector<32x512xf32>
    %c0_1 = arith.constant 0 : index
    %c0_2 = arith.constant 0 : index
    %2 = vector.load %arg2[%c0_1, %c0_2] : memref<1x512xf32, #tpu.memory_space<vmem>>, vector<1x512xf32>
    %3 = vector.broadcast %2 : vector<1x512xf32> to vector<32x512xf32>
    %4 = arith.mulf %1, %3 : vector<32x512xf32>
    %c0_3 = arith.constant 0 : index
    %c0_4 = arith.constant 0 : index
    %5 = vector.load %arg3[%c0_3, %c0_4] : memref<1x512xf32, #tpu.memory_space<vmem>>, vector<1x512xf32>
    %6 = vector.broadcast %5 : vector<1x512xf32> to vector<32x512xf32>
    %7 = arith.addf %4, %6 : vector<32x512xf32>
    %cst = arith.constant 0.000000e+00 : f32
    %8 = vector.broadcast %cst : f32 to vector<32x512xf32>
    %9 = arith.maximumf %7, %8 : vector<32x512xf32>
    %c0_5 = arith.constant 0 : index
    %c0_6 = arith.constant 0 : index
    %10 = vector.load %arg4[%c0_5, %c0_6] : memref<32x512xf32, #tpu.memory_space<vmem>>, vector<32x512xf32>
    tpu.vector_store %arg4[%c0_5, %c0_6], %9 {strides = array<i32>} : memref<32x512xf32, #tpu.memory_space<vmem>>, vector<32x512xf32>,
    return
  }
  func.func @transform_0(%arg0: i32) -> (i32, i32) {
    %c0_i32 = arith.constant 0 : i32
    %c0_i32_0 = arith.constant 0 : i32
    return %arg0, %c0_i32 : i32, i32
  }
  func.func @transform_1(%arg0: i32) -> (i32, i32) {
    %c0_i32 = arith.constant 0 : i32
    %c0_i32_0 = arith.constant 0 : i32
    %c0_i32_1 = arith.constant 0 : i32
    return %c0_i32, %c0_i32_0 : i32, i32
  }
  func.func @transform_2(%arg0: i32) -> (i32, i32) {
    %c0_i32 = arith.constant 0 : i32
    %c0_i32_0 = arith.constant 0 : i32
    %c0_i32_1 = arith.constant 0 : i32
    return %c0_i32, %c0_i32_0 : i32, i32
  }
  func.func @transform_3(%arg0: i32) -> (i32, i32) {
    %c0_i32 = arith.constant 0 : i32
    %c0_i32_0 = arith.constant 0 : i32
    return %arg0, %c0_i32 : i32, i32
  }
}

</mosaic_0001>

<bundles_post_ra>
// kernel: tile.13
= control target key start
LH: loop header
LB: loop body
LE: loop exit
PB: predicated region body
PF: predicated region fallthrough
CT: control target
= control target key end

     0   :  { %s28_s0 = inlined_call_operand.vmem [shape: f32[32], index: 0, kind: input, shape index: {}]   ;;  %s29_s1 = inlined_call_operand.vmem [shape: f32[16,32], index: 1, kind: output, shape index: {}]  }
   0x1   :  { %v4_v0 = vld [vmem:[%s28_s0] ss:$0 sm:$0xff] }
   0x2   :  { %5 = vst [vmem:[%s29_s1] sm:$0xff] %v4_v0  ;;  %8 = vst [vmem:[%s29_s1 + $0x8] sm:$0xff] %v4_v0 }

// kernel: tile.14
= control target key start
LH: loop header
LB: loop body
LE: loop exit
PB: predicated region body
PF: predicated region fallthrough
CT: control target
= control target key end

     0   :  { %s57_s8 = smov 96   ;;  %vm3_vm0 = vcmask 261120   ;;  %s59_s15 = smov 64   ;;  %vm9_vm1 = vcmask 1048320   ;;  %vm15_vm2 = vcmask 785920   ;;  %vm21_vm3 = vcmask 523520   ;;  %s94_s0 = inlined_call_operand.vmem [shape: f32[16,32], index: 0, kind: input, shape index: {}]   ;;  %s95_s1 = inlined_call_operand.vmem [shape: f32[1,512], index: 1, kind: output, shape index: {}]  }
   0x1   :  { %v48_v0 = vld [vmem:[%s94_s0 + $0x3] ss:$4 sm:$0xf]   ;;  %v49_v1 = vld [vmem:[%s94_s0 + $0x2] ss:$4 sm:$0xf]  }
   0x2   :  { %7 = vrot.lane.b32.xlu0 %v48_v0, %s57_s8  ;;  %v50_v2 = vld [vmem:[%s94_s0 + $0x1] ss:$4 sm:$0xf]   ;;  %v2_v3 = vld [vmem:[%s94_s0] ss:$4 sm:$0xf]  }
   0x3   :  { %s58_s0 = smov 32   ;;  %4 = vst.msk [vmem:[#allocation0] ss:$8 sm:$0xf] %vm3_vm0, %v2_v3  }
   0x4   :  { %19 = vrot.lane.b32.xlu1 %v50_v2, %s58_s0 }
   0x6   :  { %13 = vrot.lane.b32.xlu0 %v49_v1, %s59_s15 }
  0x74   :  { %v8_v4 = vpop.permute.xlu0 %7  }
  0x75   :  { %10 = vst.msk [vmem:[#allocation0] ss:$8 sm:$0xf] %vm9_vm1, %v8_v4  }
  0x76   :  { %v20_v5 = vpop.permute.xlu1 %19  }
  0x78   :  { %v14_v6 = vpop.permute.xlu0 %13  }
  0x79   :  { %16 = vst.msk [vmem:[#allocation0] ss:$8 sm:$0xf] %vm15_vm2, %v14_v6  }
  0x7a   :  { %22 = vst.msk [vmem:[#allocation0] ss:$8 sm:$0xf] %vm21_vm3, %v20_v5  }
  0x81   :  { %v26_v7 = vld [vmem:[#allocation0] sm:$0x1]  ;;  %v30_v8 = vld [vmem:[#allocation0 + $0x8] sm:$0x1]  ;;  %v35_v9 = vld [vmem:[#allocation0 + $0x10] sm:$0x1] }
  0x82   :  { %28 = vst [vmem:[%s95_s1] sm:$0x1] %v26_v7  ;;  %51 = vst [vmem:[%s95_s1 + $0x1] sm:$0x1] %v30_v8  ;;  %v41_v10 = vld [vmem:[#allocation0 + $0x18] sm:$0x1] }
  0x83   :  { %52 = vst [vmem:[%s95_s1 + $0x2] sm:$0x1] %v35_v9  ;;  %53 = vst [vmem:[%s95_s1 + $0x3] sm:$0x1] %v41_v10 }

// kernel: double_conv_forward.7
= control target key start
LH: loop header
LB: loop body
LE: loop exit
PB: predicated region body
PF: predicated region fallthrough
CT: control target
= control target key end

     0   :  { %v40_v0 = vlaneseq  ;;  %s254_s0 = inlined_call_operand.vmem [shape: bf16[32,512], index: 0, kind: input, shape index: {}]   ;;  %s255_s1 = inlined_call_operand.vmem [shape: f32[1,512], index: 1, kind: input, shape index: {}]   ;;  %s256_s2 = inlined_call_operand.vmem [shape: f32[1,512], index: 2, kind: input, shape index: {}]   ;;  %s257_s3 = inlined_call_operand.vmem [shape: f32[32,512], index: 3, kind: output, shape index: {}]  }
   0x1   :  { %v14_v1 = vld [vmem:[%s254_s0] sm:$0xff]  ;;  %v15_v5 = vld [vmem:[%s254_s0 + $0x8] sm:$0xff]  ;;  %v16_v6 = vld [vmem:[%s254_s0 + $0x10] sm:$0xff] }
   0x2   :  { %v22_v2 = vunpack.c.l.bf16 %v14_v1  ;;  %v41_v3 = vshrl.u32 %v40_v0, 7  ;;  %v23_v4 = vunpack.c.h.bf16 %v14_v1  ;;  %v17_v7 = vld [vmem:[%s254_s0 + $0x18] sm:$0xff]  ;;  %v38_v8 = vld [vmem:[%s255_s1] sm:$0xf]  ;;  %v24_v10 = vunpack.c.l.bf16 %v15_v5  ;;  %v19_v47 = vld [vmem:[%s254_s0 + $0x28] sm:$0xff] }
   0x3   :  { %v76_v9 = vld [vmem:[%s256_s2] sm:$0xf]  ;;  %v25_v11 = vunpack.c.h.bf16 %v15_v5  ;;  %v26_v12 = vunpack.c.l.bf16 %v16_v6  ;;  %v27_v13 = vunpack.c.h.bf16 %v16_v6  ;;  %v28_v19 = vunpack.c.l.bf16 %v17_v7  ;;  %v20_v52 = vld [vmem:[%s254_s0 + $0x30] sm:$0xff]  ;;  %v21_v53 = vld [vmem:[%s254_s0 + $0x38] sm:$0xff] }
   0x4   :  { %v18_v14 = vld [vmem:[%s254_s0 + $0x20] sm:$0xff]  ;;  %v42_v15 = vsub.s32 0, %v41_v3  ;;  %v46_v16 = vsub.s32 1, %v41_v3  ;;  %v50_v17 = vsub.s32 2, %v41_v3  ;;  %v54_v18 = vsub.s32 3, %v41_v3 }
   0x5   :  { %v29_v20 = vunpack.c.h.bf16 %v17_v7  ;;  %v30_v21 = vunpack.c.l.bf16 %v18_v14  ;;  %v31_v22 = vunpack.c.h.bf16 %v18_v14  ;;  %v32_v60 = vunpack.c.l.bf16 %v19_v47 }
   0x6   :  { %v43_v23 = vrot.slane %v38_v8, %v42_v15  ;;  %v191_v24 = vrot.slane %v76_v9, %v42_v15  ;;  %v47_v25 = vrot.slane %v38_v8, %v46_v16  ;;  %v85_v26 = vrot.slane %v76_v9, %v46_v16 }
   0x7   :  { %v51_v27 = vrot.slane %v38_v8, %v50_v17  ;;  %v89_v28 = vrot.slane %v76_v9, %v50_v17  ;;  %v55_v29 = vrot.slane %v38_v8, %v54_v18  ;;  %v93_v30 = vrot.slane %v76_v9, %v54_v18 }
   0x8   :  { %v60_v31 = vmul.f32 %v43_v23, %v22_v2  ;;  %v61_v32 = vmul.f32 %v47_v25, %v23_v4  ;;  %v64_v33 = vmul.f32 %v43_v23, %v26_v12  ;;  %v65_v34 = vmul.f32 %v47_v25, %v27_v13 }
   0x9   :  { %v62_v35 = vmul.f32 %v51_v27, %v24_v10  ;;  %v63_v36 = vmul.f32 %v55_v29, %v25_v11  ;;  %v66_v37 = vmul.f32 %v51_v27, %v28_v19  ;;  %v67_v38 = vmul.f32 %v55_v29, %v29_v20 }
   0xa   :  { %v98_v39 = vadd.f32 %v191_v24, %v60_v31  ;;  %v99_v40 = vadd.f32 %v85_v26, %v61_v32  ;;  %v102_v41 = vadd.f32 %v191_v24, %v64_v33  ;;  %v103_v42 = vadd.f32 %v85_v26, %v65_v34 }
   0xb   :  { %v100_v43 = vadd.f32 %v89_v28, %v62_v35  ;;  %v101_v44 = vadd.f32 %v93_v30, %v63_v36  ;;  %v104_v45 = vadd.f32 %v89_v28, %v66_v37  ;;  %v105_v46 = vadd.f32 %v93_v30, %v67_v38 }
   0xc   :  { %v114_v48 = vmax.f32 %v98_v39, 0.0  ;;  %v115_v49 = vmax.f32 %v99_v40, 0.0  ;;  %v118_v50 = vmax.f32 %v102_v41, 0.0  ;;  %v119_v51 = vmax.f32 %v103_v42, 0.0 }
   0xd   :  { %v116_v54 = vmax.f32 %v100_v43, 0.0  ;;  %v117_v55 = vmax.f32 %v101_v44, 0.0  ;;  %v120_v56 = vmax.f32 %v104_v45, 0.0  ;;  %v121_v57 = vmax.f32 %v105_v46, 0.0 }
   0xe   :  { %130 = vst [vmem:[%s257_s3] sm:$0xff] %v114_v48  ;;  %131 = vst [vmem:[%s257_s3 + $0x8] sm:$0xff] %v115_v49  ;;  %v68_v58 = vmul.f32 %v43_v23, %v30_v21  ;;  %v69_v59 = vmul.f32 %v47_v25, %v31_v22  ;;  %v33_v61 = vunpack.c.h.bf16 %v19_v47  ;;  %v34_v62 = vunpack.c.l.bf16 %v20_v52 }
   0xf   :  { %134 = vst [vmem:[%s257_s3 + $0x20] sm:$0xff] %v118_v50  ;;  %135 = vst [vmem:[%s257_s3 + $0x28] sm:$0xff] %v119_v51  ;;  %v35_v63 = vunpack.c.h.bf16 %v20_v52  ;;  %v36_v0 = vunpack.c.l.bf16 %v21_v53  ;;  %v37_v1 = vunpack.c.h.bf16 %v21_v53  ;;  %v70_v4 = vmul.f32 %v51_v27, %v32_v60 }
  0x10   :  { %132 = vst [vmem:[%s257_s3 + $0x10] sm:$0xff] %v116_v54  ;;  %133 = vst [vmem:[%s257_s3 + $0x18] sm:$0xff] %v117_v55  ;;  %v106_v2 = vadd.f32 %v191_v24, %v68_v58  ;;  %v107_v3 = vadd.f32 %v85_v26, %v69_v59  ;;  %v71_v5 = vmul.f32 %v55_v29, %v33_v61 }
  0x11   :  { %136 = vst [vmem:[%s257_s3 + $0x30] sm:$0xff] %v120_v56  ;;  %137 = vst [vmem:[%s257_s3 + $0x38] sm:$0xff] %v121_v57  ;;  %v72_v6 = vmul.f32 %v43_v23, %v34_v62  ;;  %v73_v7 = vmul.f32 %v47_v25, %v35_v63  ;;  %v74_v8 = vmul.f32 %v51_v27, %v36_v0 }
  0x12   :  { %v75_v9 = vmul.f32 %v55_v29, %v37_v1  ;;  %v122_v10 = vmax.f32 %v106_v2, 0.0  ;;  %v123_v11 = vmax.f32 %v107_v3, 0.0  ;;  %v108_v12 = vadd.f32 %v89_v28, %v70_v4 }
  0x13   :  { %v109_v13 = vadd.f32 %v93_v30, %v71_v5  ;;  %v110_v14 = vadd.f32 %v191_v24, %v72_v6  ;;  %v111_v15 = vadd.f32 %v85_v26, %v73_v7  ;;  %v112_v16 = vadd.f32 %v89_v28, %v74_v8 }
  0x14   :  { %v113_v17 = vadd.f32 %v93_v30, %v75_v9  ;;  %138 = vst [vmem:[%s257_s3 + $0x40] sm:$0xff] %v122_v10  ;;  %139 = vst [vmem:[%s257_s3 + $0x48] sm:$0xff] %v123_v11  ;;  %v124_v18 = vmax.f32 %v108_v12, 0.0 }
  0x15   :  { %v125_v19 = vmax.f32 %v109_v13, 0.0  ;;  %v126_v20 = vmax.f32 %v110_v14, 0.0  ;;  %v127_v21 = vmax.f32 %v111_v15, 0.0  ;;  %v128_v22 = vmax.f32 %v112_v16, 0.0 }
  0x16   :  { %v129_v23 = vmax.f32 %v113_v17, 0.0  ;;  %140 = vst [vmem:[%s257_s3 + $0x50] sm:$0xff] %v124_v18 }
  0x17   :  { %141 = vst [vmem:[%s257_s3 + $0x58] sm:$0xff] %v125_v19  ;;  %142 = vst [vmem:[%s257_s3 + $0x60] sm:$0xff] %v126_v20 }
  0x18   :  { %143 = vst [vmem:[%s257_s3 + $0x68] sm:$0xff] %v127_v21  ;;  %144 = vst [vmem:[%s257_s3 + $0x70] sm:$0xff] %v128_v22 }
  0x19   :  { %145 = vst [vmem:[%s257_s3 + $0x78] sm:$0xff] %v129_v23 }

// kernel: double_conv_forward.4
= control target key start
LH: loop header
LB: loop body
LE: loop exit
PB: predicated region body
PF: predicated region fallthrough
CT: control target
= control target key end

     0   :  { %s1991_s18 = smov 0   ;;  %s2894_s0 = inlined_call_operand.vmem [shape: f32[2,16,16,4], index: 0, kind: input, shape index: {}]   ;;  %s2895_s1 = inlined_call_operand.vmem [shape: f32[1,4], index: 1, kind: input, shape index: {}]   ;;  %s2896_s2 = inlined_call_operand.vmem [shape: f32[1,4], index: 2, kind: input, shape index: {}]   ;;  %s2897_s3 = inlined_call_operand.vmem [shape: bf16[36,32], index: 3, kind: input, shape index: {}]   ;;  %s2898_s4 = inlined_call_operand.vmem [shape: bf16[2,16,16,32], index: 4, kind: output, shape index: {0}]   ;;  %s2899_s5 = inlined_call_operand.vmem [shape: f32[2,2,32], index: 5, kind: output, shape index: {1}]  }
   0x1 LB: > { %s1762_s1 = sadd.s32 4294967295, %s1950_s18   ;;  %p1766_p0 = scmp.ge.s32.totalorder %s1950_s18, 1  ;;  %s1950_s18 = sphi %s1991_s18, %s16_s18  }
   0x2   : > { %p190_p1 = scmp.lt.s32.totalorder %s1950_s18, 3 }
   0x4   : > { %p191_p2 = pnand %p1766_p0, %p190_p1 }
   0x5   : > { %p222_p3 = scmp.lt.s32.totalorder (!%p191_p2), %s1762_s1, 1  ;;  %v269_v0 = vlaneseq (!%p191_p2)  ;;  %vm519_vm0 = vcmask (!%p191_p2), 31744   ;;  %vm596_vm1 = vcmask (!%p191_p2), 64544   ;;  %v1952_v1 = vmov (!%p191_p2), 0   ;;  %s1953_s22 = smov (!%p191_p2), 16   ;;  %v1941_v59 = vld [vmem:[%s2897_s3] sm:$0xff] (!%p191_p2)  }
   0x6   : > { %194 = sbr.rel (%p191_p2) target bundleno = 626 (0x272), region = 36  ;;  %535 = vst.msk [vmem:[#allocation2] sm:$0xff] (!%p191_p2), %vm519_vm0, %v1952_v1  ;;  %vm673_vm2 = vcmask (!%p191_p2), 97344   ;;  %s1954_s23 = smov (!%p191_p2), 4   ;;  %1878 = vmatprep.subr.bf16.mxu0 (!%p191_p2), %v1941_v59  ;;  %1916 = vmatprep.subr.bf16.mxu1 (!%p191_p2), %v1941_v59  ;;  %vm1175_vm7 = vcmask (!%p191_p2), 1041408   ;;  %vm754_vm8 = vcmask (!%p191_p2), 130144  }
   0x7   : > { %v2003_v2 = vshrl.u32 (!%p191_p2), %v269_v0, 7  ;;  %612 = vst.msk [vmem:[#allocation2] sm:$0xff] (!%p191_p2), %vm596_vm1, %v1952_v1  ;;  %s1955_s24 = smov (!%p191_p2), 12   ;;  %s1956_s25 = smov (!%p191_p2), 8   ;;  %1879 = vmatpush3.bf16.msra.mxu0 (!%p191_p2), %v1941_v59  ;;  %1919 = vmatpush3.bf16.msra.mxu1 (!%p191_p2), %v1941_v59  ;;  %vm820_vm9 = vcmask (!%p191_p2), 162944   ;;  %vm886_vm10 = vcmask (!%p191_p2), 195744  }
   0x8   : > { %689 = vst.msk [vmem:[#allocation2] sm:$0xff] (!%p191_p2), %vm673_vm2, %v1952_v1  ;;  %s1957_s28 = smov (!%p191_p2), 20   ;;  %s1958_s6 = smov (!%p191_p2), 24   ;;  %vm948_vm11 = vcmask (!%p191_p2), 228544   ;;  %vm1011_vm12 = vcmask (!%p191_p2), 261344   ;;  %vm1073_vm13 = vcmask (!%p191_p2), 294144  }
   0x9   : > { %v2011_v3 = vadd.s32 (!%p191_p2), 8, %v2003_v2  ;;  %vm304_vm3 = vcmp.lt.s32.totalorder (!%p191_p2), %v2003_v2, 1  ;;  %vm337_vm4 = vcmp.eq.s32.totalorder (!%p191_p2), %v2003_v2, 0  ;;  %vm435_vm5 = vcmp.lt.s32.totalorder (!%p191_p2), %v2003_v2, 7  ;;  %s1959_s7 = smov (!%p191_p2), 28   ;;  %s1960_s8 = smov (!%p191_p2), 32  }
   0xa   : > { %vm1126_vm14 = vcmask (!%p191_p2), 293888   ;;  %vm1643_vm15 = vcmask (!%p191_p2), 257024  }
   0xb   : > { %vm469_vm6 = vcmp.eq.s32.totalorder (!%p191_p2), %v2011_v3, 15 }
   0xd   : > { %s2901_s1 = smov (!%p222_p3, %s1762_s1), 1 }
   0xe   : > { %s1825_s2 = sshll.u32 %s2901_s1, 8  ;;  %s1826_s11 = sshll.u32 %s2901_s1, 7 }
   0xf   : > { %s2016_s21 = scalar_lea.vmem %s2894_s0, %s1825_s2  ;;  %s2755_s14 = scalar_lea.vmem %s2898_s4, %s1826_s11 }
  0x10   : > { %v239_v4 = vld [vmem:[%s2016_s21 + $0x10] sm:$0xff]  ;;  %v240_v5 = vld [vmem:[%s2016_s21 + $0x18] sm:$0xff]  ;;  %v237_v6 = vld [vmem:[%s2016_s21] sm:$0xff]  ;;  %s1771_s15 = sshll.u32 %s2901_s1, 1 }
  0x11   : > { %v289_v7 = vrot.slane %v240_v5, 7  ;;  %v2023_v8 = vpack.c.bf16 %v240_v5, %v239_v4  ;;  %v238_v9 = vld [vmem:[%s2016_s21 + $0x8] sm:$0xff]  ;;  %v2029_v10 = vld [vmem:[%s2016_s21 + $0x20] sm:$0xff]  ;;  %v273_v11 = vrot.slane %v239_v4, 7  ;;  %v403_v14 = vrot.slane %v237_v6, 1  ;;  %v2051_v27 = vld [vmem:[%s2016_s21 + $0x30] sm:$0xff]  ;;  %s235_s2 = scalar_lea.vmem %s2899_s5, %s1771_s15 }
  0x12   : > { %v288_v12 = vrot.slane %v238_v9, 7  ;;  %v387_v13 = vpack.c.bf16 %v238_v9, %v237_v6  ;;  %v404_v15 = vrot.slane %v239_v4, 1  ;;  %v420_v16 = vrot.slane %v240_v5, 1  ;;  %v2039_v21 = vld [vmem:[%s2016_s21 + $0x28] sm:$0xff]  ;;  %v2060_v31 = vld [vmem:[%s2016_s21 + $0x38] sm:$0xff]  ;;  %v2074_v41 = vld [vmem:[%s2016_s21 + $0x40] sm:$0xff] }
  0x13   : > { %774 = vrot.lane.b32.xlu1 %v2023_v8, %s1953_s22  ;;  %v419_v17 = vrot.slane %v238_v9, 1  ;;  %v272_v18 = vrot.slane %v237_v6, 7  ;;  %v306_v19 = vsel %vm304_vm3, %v273_v11, %v289_v7  ;;  %v322_v20 = vsel %vm304_vm3, %v289_v7, %v273_v11  ;;  %v2085_v45 = vld [vmem:[%s2016_s21 + $0x48] sm:$0xff]  ;;  %v2094_v49 = vld [vmem:[%s2016_s21 + $0x50] sm:$0xff]  ;;  %v2103_v54 = vld [vmem:[%s2016_s21 + $0x58] sm:$0xff] }
  0x14   : > { %551 = vrot.lane.b32.xlu0 %v387_v13, %s1954_s23  ;;  %v274_v22 = vrot.slane %v2029_v10, 7  ;;  %v341_v30 = vsel %vm337_vm4, 0.0, %v322_v20  ;;  %v453_v34 = vsel %vm435_vm5, %v420_v16, %v404_v15  ;;  %v290_v35 = vrot.slane %v2039_v21, 7  ;;  %v249_v4 = vld [vmem:[%s2016_s21 + $0x60] sm:$0xff]  ;;  %v250_v5 = vld [vmem:[%s2016_s21 + $0x68] sm:$0xff] }
  0x15   : > { %v305_v23 = vsel %vm304_vm3, %v272_v18, %v288_v12  ;;  %v321_v24 = vsel %vm304_vm3, %v288_v12, %v272_v18  ;;  %v436_v25 = vsel %vm435_vm5, %v403_v14, %v419_v17  ;;  %v452_v26 = vsel %vm435_vm5, %v419_v17, %v403_v14  ;;  %v251_v12 = vld [vmem:[%s2016_s21 + $0x70] sm:$0xff] }
  0x16   : > { %v339_v28 = vsel %vm337_vm4, 0.0, %v321_v24  ;;  %v471_v29 = vsel %vm469_vm6, 0.0, %v452_v26  ;;  %v372_v33 = vpack.c.bf16 %v306_v19, %v341_v30  ;;  %v275_v37 = vrot.slane %v2051_v27, 7 }
  0x17   : > { %v371_v32 = vpack.c.bf16 %v305_v23, %v339_v28  ;;  %v502_v36 = vpack.c.bf16 %v471_v29, %v436_v25  ;;  %v307_v38 = vsel %vm304_vm3, %v274_v22, %v290_v35  ;;  %v323_v39 = vsel %vm304_vm3, %v290_v35, %v274_v22  ;;  %v252_v23 = vld [vmem:[%s2016_s21 + $0x78] sm:$0xff] }
  0x18   : > { %772 = vrot.lane.b32.xlu0 %v387_v13, %s1953_s22  ;;  %v291_v40 = vrot.slane %v2060_v31, 7  ;;  %521 = vst.msk [vmem:[#allocation2 + $0x10] sm:$0xff] %vm519_vm0, %v372_v33  ;;  %v437_v42 = vsel %vm435_vm5, %v404_v15, %v420_v16  ;;  %v473_v43 = vsel %vm469_vm6, 0.0, %v453_v34  ;;  %v343_v44 = vsel %vm337_vm4, 0.0, %v323_v39  ;;  %v1942_v13 = vld [vmem:[%s2897_s3 + $0x8] sm:$0xff]  }
  0x19   : > { %706 = vrot.lane.b32.xlu1 %v371_v32, %s1955_s24  ;;  %520 = vst.msk [vmem:[#allocation2 + $0x8] sm:$0xff] %vm519_vm0, %v371_v32  ;;  %v2087_v46 = vpack.c.bf16 %v307_v38, %v343_v44  ;;  %v405_v50 = vrot.slane %v2029_v10, 1  ;;  %v421_v51 = vrot.slane %v2039_v21, 1  ;;  %v276_v53 = vrot.slane %v2074_v41, 7  ;;  %1880 = vmatprep.subr.bf16.mxu0 %v1942_v13  ;;  %v254_v32 = vld [vmem:[%s2016_s21 + $0x88] sm:$0xff] }
  0x1a   : > { %v308_v47 = vsel %vm304_vm3, %v275_v37, %v291_v40  ;;  %v324_v48 = vsel %vm304_vm3, %v291_v40, %v275_v37  ;;  %v2106_v55 = vpack.c.bf16 %v473_v43, %v437_v42  ;;  %v292_v57 = vrot.slane %v2085_v45, 7  ;;  %1881 = vmatpush3.bf16.msra.mxu0 %v1942_v13  ;;  %1917 = vmatprep.subr.bf16.mxu1 %v1942_v13 }
  0x1b   : > { %v345_v52 = vsel %vm337_vm4, 0.0, %v324_v48  ;;  %522 = vst.msk [vmem:[#allocation2 + $0x18] sm:$0xff] %vm519_vm0, %v2087_v46  ;;  %v277_v58 = vrot.slane %v2094_v49, 7  ;;  %v293_v62 = vrot.slane %v2103_v54, 7  ;;  %v454_v63 = vsel %vm435_vm5, %v421_v51, %v405_v50  ;;  %1920 = vmatpush3.bf16.msra.mxu1 %v1942_v13 }
  0x1c   : > { %628 = vrot.lane.b32.xlu0 %v502_v36, %s1956_s25  ;;  %v2108_v56 = vpack.c.bf16 %v308_v47, %v345_v52  ;;  %v309_v60 = vsel %vm304_vm3, %v276_v53, %v292_v57  ;;  %v325_v61 = vsel %vm304_vm3, %v292_v57, %v276_v53  ;;  %v438_v14 = vsel %vm435_vm5, %v405_v50, %v421_v51  ;;  %v255_v53 = vld [vmem:[%s2016_s21 + $0x90] sm:$0xff] }
  0x1d   : > { %708 = vrot.lane.b32.xlu1 %v372_v33, %s1955_s24  ;;  %v347_v0 = vsel %vm337_vm4, 0.0, %v325_v61  ;;  %v310_v7 = vsel %vm304_vm3, %v277_v58, %v293_v62  ;;  %v326_v9 = vsel %vm304_vm3, %v293_v62, %v277_v58  ;;  %v278_v16 = vrot.slane %v249_v4, 7  ;;  %v256_v61 = vld [vmem:[%s2016_s21 + $0x98] sm:$0xff] }
  0x1e   : > { %523 = vst.msk [vmem:[#allocation2 + $0x20] sm:$0xff] %vm519_vm0, %v2108_v56  ;;  %v2133_v6 = vpack.c.bf16 %v309_v60, %v347_v0  ;;  %v349_v11 = vsel %vm337_vm4, 0.0, %v326_v9  ;;  %v294_v17 = vrot.slane %v250_v5, 7  ;;  %v475_v18 = vsel %vm469_vm6, 0.0, %v454_v63 }
  0x1f   : > { %v2147_v15 = vpack.c.bf16 %v310_v7, %v349_v11  ;;  %v2154_v19 = vpack.c.bf16 %v250_v5, %v249_v4  ;;  %v409_v20 = vrot.slane %v249_v4, 1  ;;  %v425_v22 = vrot.slane %v250_v5, 1  ;;  %v1943_v9 = vld [vmem:[%s2897_s3 + $0x10] ss:$0 sps:$4 sm:$0x33]  }
  0x20   : > { %838 = vrot.lane.b32.xlu0 %v502_v36, %s1957_s28  ;;  %524 = vst.msk [vmem:[#allocation2 + $0x28] sm:$0xff] %vm519_vm0, %v2133_v6  ;;  %v2161_v24 = vpack.c.bf16 %v2039_v21, %v2029_v10  ;;  %v311_v25 = vsel %vm304_vm3, %v278_v16, %v294_v17  ;;  %v327_v26 = vsel %vm304_vm3, %v294_v17, %v278_v16  ;;  %v279_v28 = vrot.slane %v251_v12, 7  ;;  %v253_v21 = vld [vmem:[%s2016_s21 + $0x80] sm:$0xff] }
  0x21   : > { %840 = vrot.lane.b32.xlu1 %v2106_v55, %s1957_s28  ;;  %525 = vst.msk [vmem:[#allocation2 + $0x30] sm:$0xff] %vm519_vm0, %v2147_v15  ;;  %v351_v29 = vsel %vm337_vm4, 0.0, %v327_v26  ;;  %v442_v30 = vsel %vm435_vm5, %v409_v20, %v425_v22  ;;  %v458_v10 = vsel %vm435_vm5, %v425_v22, %v409_v20  ;;  %v295_v36 = vrot.slane %v252_v23, 7  ;;  %v258_v22 = vld [vmem:[%s2016_s21 + $0xa8] sm:$0xff]  ;;  %1922 = vmatprep.subr.msk.bf16.mxu0 %vm1175_vm7, %v1943_v9 }
  0x22   : > { %v2179_v34 = vpack.c.bf16 %v311_v25, %v351_v29  ;;  %v483_v35 = vsel %vm469_vm6, 0.0, %v458_v10  ;;  %v2187_v38 = vpack.c.bf16 %v252_v23, %v251_v12  ;;  %v410_v39 = vrot.slane %v251_v12, 1  ;;  %1923 = vmatprep.subr.msk.bf16.mxu1 %vm1175_vm7, %v1943_v9 }
  0x23   : > { %v2185_v37 = vpack.c.bf16 %v483_v35, %v442_v30  ;;  %v426_v40 = vrot.slane %v252_v23, 1  ;;  %v312_v42 = vsel %vm304_vm3, %v279_v28, %v295_v36  ;;  %v328_v43 = vsel %vm304_vm3, %v295_v36, %v279_v28 }
  0x24   : > { %903 = vrot.lane.b32.xlu0 %v372_v33, %s1958_s6  ;;  %v2177_v33 = vpack.c.bf16 %v475_v18, %v438_v14  ;;  %526 = vst.msk [vmem:[#allocation2 + $0x38] sm:$0xff] %vm519_vm0, %v2179_v34  ;;  %v280_v44 = vrot.slane %v253_v21, 7  ;;  %v296_v47 = vrot.slane %v254_v32, 7  ;;  %v353_v48 = vsel %vm337_vm4, 0.0, %v328_v43 }
  0x25   : > { %905 = vrot.lane.b32.xlu1 %v2087_v46, %s1958_s6  ;;  %v443_v50 = vsel %vm435_vm5, %v410_v39, %v426_v40  ;;  %v459_v51 = vsel %vm435_vm5, %v426_v40, %v410_v39  ;;  %v2203_v52 = vpack.c.bf16 %v254_v32, %v253_v21  ;;  %v2206_v57 = vpack.c.bf16 %v312_v42, %v353_v48 }
  0x26   : > { %v485_v58 = vsel %vm469_vm6, 0.0, %v459_v51  ;;  %v313_v59 = vsel %vm304_vm3, %v280_v44, %v296_v47  ;;  %v329_v60 = vsel %vm304_vm3, %v296_v47, %v280_v44  ;;  %v411_v0 = vrot.slane %v253_v21, 1  ;;  %v259_v51 = vld [vmem:[%s2016_s21 + $0xb0] sm:$0xff] }
  0x27   : > { %v2217_v62 = vpack.c.bf16 %v485_v58, %v443_v50  ;;  %v355_v63 = vsel %vm337_vm4, 0.0, %v329_v60  ;;  %v427_v4 = vrot.slane %v254_v32, 1  ;;  %527 = vst.msk [vmem:[#allocation2 + $0x40] sm:$0xff] %vm519_vm0, %v2206_v57  ;;  %v281_v7 = vrot.slane %v255_v53, 7 }
  0x28   : > { %966 = vrot.lane.b32.xlu0 %v2023_v8, %s1959_s7  ;;  %v2225_v5 = vpack.c.bf16 %v313_v59, %v355_v63  ;;  %v406_v11 = vrot.slane %v2051_v27, 1  ;;  %v297_v14 = vrot.slane %v256_v61, 7  ;;  %v2240_v17 = vpack.c.bf16 %v256_v61, %v255_v53 }
  0x29   : > { %968 = vrot.lane.b32.xlu1 %v2161_v24, %s1959_s7  ;;  %v444_v12 = vsel %vm435_vm5, %v411_v0, %v427_v4  ;;  %v460_v13 = vsel %vm435_vm5, %v427_v4, %v411_v0  ;;  %v412_v18 = vrot.slane %v255_v53, 1  ;;  %v428_v20 = vrot.slane %v256_v61, 1  ;;  %v260_v53 = vld [vmem:[%s2016_s21 + $0xb8] sm:$0xff] }
  0x2a   : > { %528 = vst.msk [vmem:[#allocation2 + $0x48] sm:$0xff] %vm519_vm0, %v2225_v5  ;;  %v487_v16 = vsel %vm469_vm6, 0.0, %v460_v13  ;;  %v314_v25 = vsel %vm304_vm3, %v281_v7, %v297_v14  ;;  %v330_v26 = vsel %vm304_vm3, %v297_v14, %v281_v7  ;;  %v422_v21 = vrot.slane %v2060_v31, 1 }
  0x2b   : > { %v2245_v23 = vpack.c.bf16 %v487_v16, %v444_v12  ;;  %v357_v28 = vsel %vm337_vm4, 0.0, %v330_v26  ;;  %v445_v29 = vsel %vm435_vm5, %v412_v18, %v428_v20  ;;  %v461_v30 = vsel %vm435_vm5, %v428_v20, %v412_v18  ;;  %v262_v26 = vld [vmem:[%s2016_s21 + $0xc8] sm:$0xff] }
  0x2c   : > { %1028 = vrot.lane.b32.xlu0 %v2106_v55, %s1960_s8  ;;  %v2260_v32 = vpack.c.bf16 %v314_v25, %v357_v28  ;;  %v489_v35 = vsel %vm469_vm6, 0.0, %v461_v30  ;;  %v298_v36 = vrot.slane %v258_v22, 7  ;;  %v1177_v40 = vsel %vm1175_vm7, %v1943_v9, 0  ;;  %v261_v25 = vld [vmem:[%s2016_s21 + $0xc0] sm:$0xff] }
  0x2d   : > { %553 = vrot.lane.b32.xlu1 %v2023_v8, %s1954_s23  ;;  %v257_v8 = vld [vmem:[%s2016_s21 + $0xa0] sm:$0xff]  ;;  %v2264_v39 = vpack.c.bf16 %v489_v35, %v445_v29  ;;  %1883 = vmatpush3.bf16.msra.mxu0 %v1177_v40  ;;  %v429_v48 = vrot.slane %v258_v22, 1  ;;  %v283_v60 = vrot.slane %v259_v51, 7  ;;  %v455_v61 = vsel %vm435_vm5, %v422_v21, %v406_v11 }
  0x2e   : > { %v282_v10 = vrot.slane %v257_v8, 7  ;;  %v2266_v42 = vpack.c.bf16 %v258_v22, %v257_v8  ;;  %v413_v43 = vrot.slane %v257_v8, 1  ;;  %529 = vst.msk [vmem:[#allocation2 + $0x50] sm:$0xff] %vm519_vm0, %v2260_v32  ;;  %1921 = vmatpush3.bf16.msra.mxu1 %v1177_v40  ;;  %v299_v0 = vrot.slane %v260_v53, 7 }
  0x2f   : > { %v390_v7 = vpack.c.bf16 %v2060_v31, %v2051_v27  ;;  %v477_v13 = vsel %vm469_vm6, 0.0, %v455_v61  ;;  %v2319_v31 = vpack.c.bf16 %v260_v53, %v259_v51  ;;  %v430_v16 = vrot.slane %v260_v53, 1  ;;  %v263_v61 = vld [vmem:[%s2016_s21 + $0xd0] sm:$0xff] }
  0x30   : > { %1030 = vrot.lane.b32.xlu0 %v2177_v33, %s1960_s8  ;;  %v315_v44 = vsel %vm304_vm3, %v282_v10, %v298_v36  ;;  %v331_v47 = vsel %vm304_vm3, %v298_v36, %v282_v10  ;;  %v446_v58 = vsel %vm435_vm5, %v413_v43, %v429_v48  ;;  %v462_v59 = vsel %vm435_vm5, %v429_v48, %v413_v43 }
  0x31   : > { %555 = vrot.lane.b32.xlu1 %v2161_v24, %s1954_s23  ;;  %v359_v50 = vsel %vm337_vm4, 0.0, %v331_v47  ;;  %v491_v63 = vsel %vm469_vm6, 0.0, %v462_v59  ;;  %v316_v9 = vsel %vm304_vm3, %v283_v60, %v299_v0  ;;  %v332_v12 = vsel %vm304_vm3, %v299_v0, %v283_v60 }
  0x32   : > { %v2296_v4 = vpack.c.bf16 %v491_v63, %v446_v58  ;;  %v361_v14 = vsel %vm337_vm4, 0.0, %v332_v12  ;;  %v423_v28 = vrot.slane %v2085_v45, 1  ;;  %v300_v30 = vrot.slane %v262_v26, 7  ;;  %v264_v63 = vld [vmem:[%s2016_s21 + $0xd8] sm:$0xff] }
  0x33   : > { %v2312_v8 = vpack.c.bf16 %v316_v9, %v361_v14  ;;  %v431_v47 = vrot.slane %v262_v26, 1  ;;  %v408_v59 = vrot.slane %v2094_v49, 1  ;;  %v424_v60 = vrot.slane %v2103_v54, 1 }
  0x34   : > { %630 = vrot.lane.b32.xlu0 %v2106_v55, %s1956_s25  ;;  %v2282_v55 = vpack.c.bf16 %v315_v44, %v359_v50  ;;  %v415_v44 = vrot.slane %v261_v25, 1  ;;  %v285_v0 = vrot.slane %v263_v61, 7 }
  0x35   : > { %632 = vrot.lane.b32.xlu1 %v2177_v33, %s1956_s25  ;;  %531 = vst.msk [vmem:[#allocation2 + $0x60] sm:$0xff] %vm519_vm0, %v2312_v8  ;;  %v457_v9 = vsel %vm435_vm5, %v424_v60, %v408_v59 }
  0x36   : > { %530 = vst.msk [vmem:[#allocation2 + $0x58] sm:$0xff] %vm519_vm0, %v2282_v55  ;;  %v464_v50 = vsel %vm435_vm5, %v431_v47, %v415_v44 }
  0x37   : > { %v495_v53 = vsel %vm469_vm6, 0.0, %v464_v50 }
  0x38   : > { %710 = vrot.lane.b32.xlu0 %v2087_v46, %s1955_s24  ;;  %v439_v46 = vsel %vm435_vm5, %v406_v11, %v422_v21  ;;  %v414_v11 = vrot.slane %v259_v51, 1  ;;  %v391_v21 = vpack.c.bf16 %v2085_v45, %v2074_v41  ;;  %v448_v51 = vsel %vm435_vm5, %v415_v44, %v431_v47 }
  0x39   : > { %712 = vrot.lane.b32.xlu1 %v2108_v56, %s1955_s24  ;;  %v505_v27 = vpack.c.bf16 %v477_v13, %v439_v46  ;;  %v2370_v58 = vpack.c.bf16 %v495_v53, %v448_v51  ;;  %v392_v46 = vpack.c.bf16 %v2103_v54, %v2094_v49  ;;  %v2404_v54 = vpack.c.bf16 %v264_v63, %v263_v61 }
  0x3a   : > { %v463_v18 = vsel %vm435_vm5, %v430_v16, %v414_v11  ;;  %v447_v20 = vsel %vm435_vm5, %v414_v11, %v430_v16  ;;  %v416_v16 = vrot.slane %v263_v61, 1 }
  0x3b   : > { %v493_v22 = vsel %vm469_vm6, 0.0, %v463_v18  ;;  %v432_v18 = vrot.slane %v264_v63, 1 }
  0x3c   : > { %776 = vrot.lane.b32.xlu0 %v2161_v24, %s1953_s22  ;;  %v407_v24 = vrot.slane %v2074_v41, 1  ;;  %v2334_v29 = vpack.c.bf16 %v493_v22, %v447_v20 }
  0x3d   : > { %778 = vrot.lane.b32.xlu1 %v390_v7, %s1953_s22  ;;  %v449_v20 = vsel %vm435_vm5, %v416_v16, %v432_v18 }
  0x3e   : > { %v456_v40 = vsel %vm435_vm5, %v423_v28, %v407_v24  ;;  %v440_v41 = vsel %vm435_vm5, %v407_v24, %v423_v28  ;;  %v465_v24 = vsel %vm435_vm5, %v432_v18, %v416_v16 }
  0x3f   : > { %v479_v45 = vsel %vm469_vm6, 0.0, %v456_v40  ;;  %v497_v22 = vsel %vm469_vm6, 0.0, %v465_v24 }
  0x40   : > { %842 = vrot.lane.b32.xlu0 %v2177_v33, %s1957_s28  ;;  %v284_v33 = vrot.slane %v261_v25, 7  ;;  %v506_v48 = vpack.c.bf16 %v479_v45, %v440_v41  ;;  %v2416_v28 = vpack.c.bf16 %v497_v22, %v449_v20 }
  0x41   : > { %844 = vrot.lane.b32.xlu1 %v505_v27, %s1957_s28 }
  0x42   : > { %v333_v10 = vsel %vm304_vm3, %v300_v30, %v284_v33  ;;  %v317_v35 = vsel %vm304_vm3, %v284_v33, %v300_v30 }
  0x43   : > { %v363_v36 = vsel %vm337_vm4, 0.0, %v333_v10 }
  0x44   : > { %907 = vrot.lane.b32.xlu0 %v2108_v56, %s1958_s6  ;;  %v2350_v43 = vpack.c.bf16 %v317_v35, %v363_v36  ;;  %v2360_v56 = vpack.c.bf16 %v262_v26, %v261_v25  ;;  %v265_v25 = vld [vmem:[%s2016_s21 + $0xe0] sm:$0xff]  ;;  %v266_v26 = vld [vmem:[%s2016_s21 + $0xe8] sm:$0xff] }
  0x45   : > { %909 = vrot.lane.b32.xlu1 %v2133_v6, %s1958_s6  ;;  %v286_v33 = vrot.slane %v265_v25, 7  ;;  %v302_v30 = vrot.slane %v266_v26, 7  ;;  %v417_v40 = vrot.slane %v265_v25, 1  ;;  %v433_v41 = vrot.slane %v266_v26, 1 }
  0x46   : > { %532 = vst.msk [vmem:[#allocation2 + $0x68] sm:$0xff] %vm519_vm0, %v2350_v43 }
  0x47   : > { %v335_v10 = vsel %vm304_vm3, %v302_v30, %v286_v33  ;;  %v466_v45 = vsel %vm435_vm5, %v433_v41, %v417_v40  ;;  %v450_v44 = vsel %vm435_vm5, %v417_v40, %v433_v41 }
  0x48   : > { %970 = vrot.lane.b32.xlu0 %v390_v7, %s1959_s7  ;;  %v367_v35 = vsel %vm337_vm4, 0.0, %v335_v10  ;;  %v499_v47 = vsel %vm469_vm6, 0.0, %v466_v45 }
  0x49   : > { %972 = vrot.lane.b32.xlu1 %v391_v21, %s1959_s7 }
  0x4c   : > { %1032 = vrot.lane.b32.xlu0 %v505_v27, %s1960_s8 }
  0x4d   : > { %557 = vrot.lane.b32.xlu1 %v390_v7, %s1954_s23  ;;  %v301_v7 = vrot.slane %v264_v63, 7 }
  0x4f   : > { %v334_v12 = vsel %vm304_vm3, %v301_v7, %v285_v0  ;;  %v318_v13 = vsel %vm304_vm3, %v285_v0, %v301_v7 }
  0x50   : > { %1034 = vrot.lane.b32.xlu0 %v506_v48, %s1960_s8  ;;  %v365_v14 = vsel %vm337_vm4, 0.0, %v334_v12 }
  0x51   : > { %559 = vrot.lane.b32.xlu1 %v391_v21, %s1954_s23  ;;  %v2398_v11 = vpack.c.bf16 %v318_v13, %v365_v14 }
  0x53   : > { %533 = vst.msk [vmem:[#allocation2 + $0x70] sm:$0xff] %vm519_vm0, %v2398_v11 }
  0x54   : > { %634 = vrot.lane.b32.xlu0 %v505_v27, %s1956_s25  ;;  %v441_v27 = vsel %vm435_vm5, %v408_v59, %v424_v60 }
  0x55   : > { %636 = vrot.lane.b32.xlu1 %v506_v48, %s1956_s25 }
  0x58   : > { %714 = vrot.lane.b32.xlu0 %v2133_v6, %s1955_s24  ;;  %v481_v6 = vsel %vm469_vm6, 0.0, %v457_v9 }
  0x59   : > { %716 = vrot.lane.b32.xlu1 %v2147_v15, %s1955_s24  ;;  %v507_v49 = vpack.c.bf16 %v481_v6, %v441_v27 }
  0x5c   : > { %780 = vrot.lane.b32.xlu0 %v391_v21, %s1953_s22  ;;  %v319_v21 = vsel %vm304_vm3, %v286_v33, %v302_v30 }
  0x5d   : > { %782 = vrot.lane.b32.xlu1 %v392_v46, %s1953_s22  ;;  %v2428_v36 = vpack.c.bf16 %v319_v21, %v367_v35 }
  0x5f   : > { %534 = vst.msk [vmem:[#allocation2 + $0x78] sm:$0xff] %vm519_vm0, %v2428_v36  ;;  %vm1340_vm0 = vcmask 261120  }
  0x60   : > { %846 = vrot.lane.b32.xlu0 %v506_v48, %s1957_s28  ;;  %v2445_v48 = vpack.c.bf16 %v499_v47, %v450_v44 }
  0x61   : > { %848 = vrot.lane.b32.xlu1 %v507_v49, %s1957_s28 }
  0x64   : > { %911 = vrot.lane.b32.xlu0 %v2147_v15, %s1958_s6  ;;  %v2435_v15 = vpack.c.bf16 %v266_v26, %v265_v25 }
  0x65   : > { %913 = vrot.lane.b32.xlu1 %v2179_v34, %s1958_s6 }
  0x68   : > { %974 = vrot.lane.b32.xlu0 %v392_v46, %s1959_s7 }
  0x69   : > { %976 = vrot.lane.b32.xlu1 %v2154_v19, %s1959_s7 }
  0x6c   : > { %1036 = vrot.lane.b32.xlu0 %v507_v49, %s1960_s8 }
  0x6d   : > { %561 = vrot.lane.b32.xlu1 %v392_v46, %s1954_s23 }
  0x70   : > { %1038 = vrot.lane.b32.xlu0 %v2185_v37, %s1960_s8 }
  0x71   : > { %563 = vrot.lane.b32.xlu1 %v2154_v19, %s1954_s23 }
  0x74   : > { %638 = vrot.lane.b32.xlu0 %v507_v49, %s1956_s25 }
  0x75   : > { %640 = vrot.lane.b32.xlu1 %v2185_v37, %s1956_s25 }
  0x78   : > { %718 = vrot.lane.b32.xlu0 %v2179_v34, %s1955_s24 }
  0x79   : > { %720 = vrot.lane.b32.xlu1 %v2206_v57, %s1955_s24 }
  0x7c   : > { %784 = vrot.lane.b32.xlu0 %v2154_v19, %s1953_s22 }
  0x7d   : > { %786 = vrot.lane.b32.xlu1 %v2187_v38, %s1953_s22 }
  0x80   : > { %850 = vrot.lane.b32.xlu0 %v2185_v37, %s1957_s28 }
  0x81   : > { %852 = vrot.lane.b32.xlu1 %v2217_v62, %s1957_s28 }
  0x84   : > { %915 = vrot.lane.b32.xlu0 %v2206_v57, %s1958_s6 }
  0x85   : > { %v775_v50 = vpop.permute.xlu1 %774  ;;  %917 = vrot.lane.b32.xlu1 %v2225_v5, %s1958_s6 }
  0x86   : > { %v552_v34 = vpop.permute.xlu0 %551 }
  0x87   : > { %597 = vst.msk [vmem:[#allocation2 + $0x8] sm:$0xff] %vm596_vm1, %v552_v34  ;;  %v268_v34 = vld [vmem:[%s2016_s21 + $0xf8] sm:$0xff] }
  0x88   : > { %978 = vrot.lane.b32.xlu0 %v2187_v38, %s1959_s7 }
  0x89   : > { %980 = vrot.lane.b32.xlu1 %v2203_v52, %s1959_s7 }
  0x8a   : > { %v773_v19 = vpop.permute.xlu0 %772 }
  0x8b   : > { %v707_v37 = vpop.permute.xlu1 %706 }
  0x8c   : > { %755 = vst.msk [vmem:[#allocation2] sm:$0xff] %vm754_vm8, %v707_v37  ;;  %1040 = vrot.lane.b32.xlu0 %v2217_v62, %s1960_s8 }
  0x8d   : > { %565 = vrot.lane.b32.xlu1 %v2187_v38, %s1954_s23  ;;  %821 = vst.msk [vmem:[#allocation2] sm:$0xff] %vm820_vm9, %v773_v19 }
  0x8e   : > { %v629_v57 = vpop.permute.xlu0 %628 }
  0x8f   : > { %674 = vst.msk [vmem:[#allocation2 + $0x8] sm:$0xff] %vm673_vm2, %v629_v57  ;;  %v709_v51 = vpop.permute.xlu1 %708 }
  0x90   : > { %756 = vst.msk [vmem:[#allocation2 + $0x8] sm:$0xff] %vm754_vm8, %v709_v51  ;;  %1042 = vrot.lane.b32.xlu0 %v2245_v23, %s1960_s8  ;;  %v303_v51 = vrot.slane %v268_v34, 7 }
  0x91   : > { %822 = vst.msk [vmem:[#allocation2 + $0x8] sm:$0xff] %vm820_vm9, %v775_v50  ;;  %567 = vrot.lane.b32.xlu1 %v2203_v52, %s1954_s23  ;;  %v267_v50 = vld [vmem:[%s2016_s21 + $0xf0] sm:$0xff] }
  0x92   : > { %v839_v53 = vpop.permute.xlu0 %838  ;;  %v287_v57 = vrot.slane %v267_v50, 7 }
  0x93   : > { %887 = vst.msk [vmem:[#allocation2] sm:$0xff] %vm886_vm10, %v839_v53  ;;  %v841_v38 = vpop.permute.xlu1 %840 }
  0x94   : > { %642 = vrot.lane.b32.xlu0 %v2217_v62, %s1956_s25  ;;  %888 = vst.msk [vmem:[#allocation2 + $0x8] sm:$0xff] %vm886_vm10, %v841_v38 }
  0x95   : > { %644 = vrot.lane.b32.xlu1 %v2245_v23, %s1956_s25 }
  0x96   : > { %v904_v59 = vpop.permute.xlu0 %903 }
  0x97   : > { %949 = vst.msk [vmem:[#allocation2] sm:$0xff] %vm948_vm11, %v904_v59  ;;  %v906_v60 = vpop.permute.xlu1 %905  ;;  %v336_v59 = vsel %vm304_vm3, %v303_v51, %v287_v57 }
  0x98   : > { %722 = vrot.lane.b32.xlu0 %v2225_v5, %s1955_s24  ;;  %950 = vst.msk [vmem:[#allocation2 + $0x8] sm:$0xff] %vm948_vm11, %v906_v60 }
  0x99   : > { %724 = vrot.lane.b32.xlu1 %v2260_v32, %s1955_s24 }
  0x9a   : > { %v967_v62 = vpop.permute.xlu0 %966 }
  0x9b   : > { %1012 = vst.msk [vmem:[#allocation2] sm:$0xff] %vm1011_vm12, %v967_v62  ;;  %v969_v61 = vpop.permute.xlu1 %968  ;;  %v320_v62 = vsel %vm304_vm3, %v287_v57, %v303_v51 }
  0x9c   : > { %788 = vrot.lane.b32.xlu0 %v2203_v52, %s1953_s22  ;;  %1013 = vst.msk [vmem:[#allocation2 + $0x8] sm:$0xff] %vm1011_vm12, %v969_v61 }
  0x9d   : > { %790 = vrot.lane.b32.xlu1 %v2240_v17, %s1953_s22 }
  0x9e   : > { %v1029_v5 = vpop.permute.xlu0 %1028 }
  0x9f   : > { %1074 = vst.msk [vmem:[#allocation2] sm:$0xff] %vm1073_vm13, %v1029_v5  ;;  %v554_v63 = vpop.permute.xlu1 %553  ;;  %v418_v5 = vrot.slane %v267_v50, 1 }
  0xa0   : > { %854 = vrot.lane.b32.xlu0 %v2245_v23, %s1957_s28  ;;  %598 = vst.msk [vmem:[#allocation2 + $0x10] sm:$0xff] %vm596_vm1, %v554_v63  ;;  %v434_v63 = vrot.slane %v268_v34, 1 }
  0xa1   : > { %856 = vrot.lane.b32.xlu1 %v2264_v39, %s1957_s28 }
  0xa2   : > { %v1031_v0 = vpop.permute.xlu0 %1030 }
  0xa3   : > { %1075 = vst.msk [vmem:[#allocation2 + $0x8] sm:$0xff] %vm1073_vm13, %v1031_v0  ;;  %v556_v52 = vpop.permute.xlu1 %555 }
  0xa4   : > { %919 = vrot.lane.b32.xlu0 %v2260_v32, %s1958_s6  ;;  %599 = vst.msk [vmem:[#allocation2 + $0x18] sm:$0xff] %vm596_vm1, %v556_v52 }
  0xa5   : > { %921 = vrot.lane.b32.xlu1 %v2282_v55, %s1958_s6 }
  0xa6   : > { %v631_v7 = vpop.permute.xlu0 %630  ;;  %v1090_v23 = vld [vmem:[#allocation2] sm:$0xff] }
  0xa7   : > { %675 = vst.msk [vmem:[#allocation2 + $0x10] sm:$0xff] %vm673_vm2, %v631_v7  ;;  %1884 = vmatprep.mubr.msk.bf16.mxu0 %vm1126_vm14, %v1090_v23  ;;  %v633_v9 = vpop.permute.xlu1 %632  ;;  %v467_v23 = vsel %vm435_vm5, %v434_v63, %v418_v5 }
  0xa8   : > { %982 = vrot.lane.b32.xlu0 %v2240_v17, %s1959_s7  ;;  %676 = vst.msk [vmem:[#allocation2 + $0x18] sm:$0xff] %vm673_vm2, %v633_v9 }
  0xa9   : > { %984 = vrot.lane.b32.xlu1 %v2266_v42, %s1959_s7 }
  0xaa   : > { %v711_v32 = vpop.permute.xlu0 %710  ;;  %v1091_v12 = vld [vmem:[#allocation2 + $0x8] sm:$0xff] }
  0xab   : > { %757 = vst.msk [vmem:[#allocation2 + $0x10] sm:$0xff] %vm754_vm8, %v711_v32  ;;  %1885 = vmatmul.mubr.msk.bf16.vlgmr.msra.gmra.mrb[0].mxu0 %vm1126_vm14, %v1091_v12  ;;  %v713_v46 = vpop.permute.xlu1 %712  ;;  %v451_v32 = vsel %vm435_vm5, %v418_v5, %v434_v63  ;;  %v501_v12 = vsel %vm469_vm6, 0.0, %v467_v23 }
  0xac   : > { %1044 = vrot.lane.b32.xlu0 %v2264_v39, %s1960_s8  ;;  %758 = vst.msk [vmem:[#allocation2 + $0x18] sm:$0xff] %vm754_vm8, %v713_v46 }
  0xad   : > { %569 = vrot.lane.b32.xlu1 %v2240_v17, %s1954_s23 }
  0xae   : > { %v777_v13 = vpop.permute.xlu0 %776 }
  0xaf   : > { %823 = vst.msk [vmem:[#allocation2 + $0x10] sm:$0xff] %vm820_vm9, %v777_v13  ;;  %v779_v14 = vpop.permute.xlu1 %778 }
  0xb0   : > { %1046 = vrot.lane.b32.xlu0 %v2296_v4, %s1960_s8  ;;  %824 = vst.msk [vmem:[#allocation2 + $0x18] sm:$0xff] %vm820_vm9, %v779_v14 }
  0xb1   : > { %571 = vrot.lane.b32.xlu1 %v2266_v42, %s1954_s23 }
  0xb2   : > { %v843_v27 = vpop.permute.xlu0 %842 }
  0xb3   : > { %889 = vst.msk [vmem:[#allocation2 + $0x10] sm:$0xff] %vm886_vm10, %v843_v27  ;;  %v845_v6 = vpop.permute.xlu1 %844 }
  0xb4   : > { %646 = vrot.lane.b32.xlu0 %v2264_v39, %s1956_s25  ;;  %890 = vst.msk [vmem:[#allocation2 + $0x18] sm:$0xff] %vm886_vm10, %v845_v6 }
  0xb5   : > { %648 = vrot.lane.b32.xlu1 %v2296_v4, %s1956_s25 }
  0xb6   : > { %v908_v17 = vpop.permute.xlu0 %907 }
  0xb7   : > { %951 = vst.msk [vmem:[#allocation2 + $0x10] sm:$0xff] %vm948_vm11, %v908_v17  ;;  %v910_v49 = vpop.permute.xlu1 %909 }
  0xb8   : > { %726 = vrot.lane.b32.xlu0 %v2282_v55, %s1955_s24  ;;  %952 = vst.msk [vmem:[#allocation2 + $0x18] sm:$0xff] %vm948_vm11, %v910_v49 }
  0xb9   : > { %728 = vrot.lane.b32.xlu1 %v2312_v8, %s1955_s24 }
  0xba   : > { %v971_v16 = vpop.permute.xlu0 %970 }
  0xbb   : > { %1014 = vst.msk [vmem:[#allocation2 + $0x10] sm:$0xff] %vm1011_vm12, %v971_v16  ;;  %v973_v39 = vpop.permute.xlu1 %972 }
  0xbc   : > { %792 = vrot.lane.b32.xlu0 %v2266_v42, %s1953_s22  ;;  %1015 = vst.msk [vmem:[#allocation2 + $0x18] sm:$0xff] %vm1011_vm12, %v973_v39 }
  0xbd   : > { %794 = vrot.lane.b32.xlu1 %v2319_v31, %s1953_s22 }
  0xbe   : > { %v1033_v18 = vpop.permute.xlu0 %1032 }
  0xbf   : > { %1076 = vst.msk [vmem:[#allocation2 + $0x10] sm:$0xff] %vm1073_vm13, %v1033_v18  ;;  %v558_v55 = vpop.permute.xlu1 %557 }
  0xc0   : > { %858 = vrot.lane.b32.xlu0 %v2296_v4, %s1957_s28  ;;  %600 = vst.msk [vmem:[#allocation2 + $0x20] sm:$0xff] %vm596_vm1, %v558_v55 }
  0xc1   : > { %860 = vrot.lane.b32.xlu1 %v2334_v29, %s1957_s28 }
  0xc2   : > { %v1035_v24 = vpop.permute.xlu0 %1034 }
  0xc3   : > { %1077 = vst.msk [vmem:[#allocation2 + $0x18] sm:$0xff] %vm1073_vm13, %v1035_v24  ;;  %v560_v42 = vpop.permute.xlu1 %559 }
  0xc4   : > { %923 = vrot.lane.b32.xlu0 %v2312_v8, %s1958_s6  ;;  %601 = vst.msk [vmem:[#allocation2 + $0x28] sm:$0xff] %vm596_vm1, %v560_v42 }
  0xc5   : > { %925 = vrot.lane.b32.xlu1 %v2350_v43, %s1958_s6 }
  0xc6   : > { %v635_v20 = vpop.permute.xlu0 %634  ;;  %v1092_v22 = vld [vmem:[#allocation2 + $0x10] sm:$0xff] }
  0xc7   : > { %677 = vst.msk [vmem:[#allocation2 + $0x20] sm:$0xff] %vm673_vm2, %v635_v20  ;;  %1888 = vmatprep.mubr.msk.bf16.mxu0 %vm1126_vm14, %v1092_v22  ;;  %v637_v4 = vpop.permute.xlu1 %636 }
  0xc8   : > { %986 = vrot.lane.b32.xlu0 %v2319_v31, %s1959_s7  ;;  %678 = vst.msk [vmem:[#allocation2 + $0x28] sm:$0xff] %vm673_vm2, %v637_v4 }
  0xc9   : > { %988 = vrot.lane.b32.xlu1 %v2360_v56, %s1959_s7 }
  0xca   : > { %v715_v8 = vpop.permute.xlu0 %714  ;;  %v1093_v25 = vld [vmem:[#allocation2 + $0x18] sm:$0xff] }
  0xcb   : > { %759 = vst.msk [vmem:[#allocation2 + $0x20] sm:$0xff] %vm754_vm8, %v715_v8  ;;  %1889 = vmatmul.mubr.msk.bf16.gmra.mrb[4].mxu0 %vm1126_vm14, %v1093_v25  ;;  %v717_v26 = vpop.permute.xlu1 %716 }
  0xcc   : > { %1048 = vrot.lane.b32.xlu0 %v2334_v29, %s1960_s8  ;;  %760 = vst.msk [vmem:[#allocation2 + $0x28] sm:$0xff] %vm754_vm8, %v717_v26 }
  0xcd   : > { %573 = vrot.lane.b32.xlu1 %v2319_v31, %s1954_s23 }
  0xce   : > { %v781_v33 = vpop.permute.xlu0 %780 }
  0xcf   : > { %825 = vst.msk [vmem:[#allocation2 + $0x20] sm:$0xff] %vm820_vm9, %v781_v33  ;;  %v783_v30 = vpop.permute.xlu1 %782 }
  0xd0   : > { %1050 = vrot.lane.b32.xlu0 %v2370_v58, %s1960_s8  ;;  %826 = vst.msk [vmem:[#allocation2 + $0x28] sm:$0xff] %vm820_vm9, %v783_v30 }
  0xd1   : > { %575 = vrot.lane.b32.xlu1 %v2360_v56, %s1954_s23 }
  0xd2   : > { %v847_v10 = vpop.permute.xlu0 %846 }
  0xd3   : > { %891 = vst.msk [vmem:[#allocation2 + $0x20] sm:$0xff] %vm886_vm10, %v847_v10  ;;  %v849_v21 = vpop.permute.xlu1 %848 }
  0xd4   : > { %650 = vrot.lane.b32.xlu0 %v2334_v29, %s1956_s25  ;;  %892 = vst.msk [vmem:[#allocation2 + $0x28] sm:$0xff] %vm886_vm10, %v849_v21 }
  0xd5   : > { %652 = vrot.lane.b32.xlu1 %v2370_v58, %s1956_s25 }
  0xd6   : > { %v912_v31 = vpop.permute.xlu0 %911 }
  0xd7   : > { %953 = vst.msk [vmem:[#allocation2 + $0x20] sm:$0xff] %vm948_vm11, %v912_v31  ;;  %v914_v35 = vpop.permute.xlu1 %913 }
  0xd8   : > { %730 = vrot.lane.b32.xlu0 %v2350_v43, %s1955_s24  ;;  %954 = vst.msk [vmem:[#allocation2 + $0x28] sm:$0xff] %vm948_vm11, %v914_v35 }
  0xd9   : > { %732 = vrot.lane.b32.xlu1 %v2398_v11, %s1955_s24 }
  0xda   : > { %v975_v40 = vpop.permute.xlu0 %974 }
  0xdb   : > { %1016 = vst.msk [vmem:[#allocation2 + $0x20] sm:$0xff] %vm1011_vm12, %v975_v40  ;;  %v977_v29 = vpop.permute.xlu1 %976 }
  0xdc   : > { %796 = vrot.lane.b32.xlu0 %v2360_v56, %s1953_s22  ;;  %1017 = vst.msk [vmem:[#allocation2 + $0x28] sm:$0xff] %vm1011_vm12, %v977_v29 }
  0xdd   : > { %798 = vrot.lane.b32.xlu1 %v2404_v54, %s1953_s22 }
  0xde   : > { %v1037_v41 = vpop.permute.xlu0 %1036 }
  0xdf   : > { %1078 = vst.msk [vmem:[#allocation2 + $0x20] sm:$0xff] %vm1073_vm13, %v1037_v41  ;;  %v562_v43 = vpop.permute.xlu1 %561 }
  0xe0   : > { %862 = vrot.lane.b32.xlu0 %v2370_v58, %s1957_s28  ;;  %602 = vst.msk [vmem:[#allocation2 + $0x30] sm:$0xff] %vm596_vm1, %v562_v43 }
  0xe1   : > { %864 = vrot.lane.b32.xlu1 %v2416_v28, %s1957_s28 }
  0xe2   : > { %v1039_v56 = vpop.permute.xlu0 %1038 }
  0xe3   : > { %1079 = vst.msk [vmem:[#allocation2 + $0x28] sm:$0xff] %vm1073_vm13, %v1039_v56  ;;  %v564_v45 = vpop.permute.xlu1 %563 }
  0xe4   : > { %927 = vrot.lane.b32.xlu0 %v2398_v11, %s1958_s6  ;;  %603 = vst.msk [vmem:[#allocation2 + $0x38] sm:$0xff] %vm596_vm1, %v564_v45 }
  0xe5   : > { %929 = vrot.lane.b32.xlu1 %v2428_v36, %s1958_s6 }
  0xe6   : > { %v639_v58 = vpop.permute.xlu0 %638  ;;  %v1094_v44 = vld [vmem:[#allocation2 + $0x20] sm:$0xff] }
  0xe7   : > { %679 = vst.msk [vmem:[#allocation2 + $0x30] sm:$0xff] %vm673_vm2, %v639_v58  ;;  %1892 = vmatprep.mubr.msk.bf16.mxu0 %vm1126_vm14, %v1094_v44  ;;  %v641_v47 = vpop.permute.xlu1 %640 }
  0xe8   : > { %990 = vrot.lane.b32.xlu0 %v2404_v54, %s1959_s7  ;;  %680 = vst.msk [vmem:[#allocation2 + $0x38] sm:$0xff] %vm673_vm2, %v641_v47 }
  0xe9   : > { %992 = vrot.lane.b32.xlu1 %v2435_v15, %s1959_s7 }
  0xea   : > { %v719_v11 = vpop.permute.xlu0 %718  ;;  %v1095_v19 = vld [vmem:[#allocation2 + $0x28] sm:$0xff] }
  0xeb   : > { %761 = vst.msk [vmem:[#allocation2 + $0x30] sm:$0xff] %vm754_vm8, %v719_v11  ;;  %1893 = vmatmul.mubr.msk.bf16.gmra.mrb[8].mxu0 %vm1126_vm14, %v1095_v19  ;;  %v721_v37 = vpop.permute.xlu1 %720 }
  0xec   : > { %1052 = vrot.lane.b32.xlu0 %v2416_v28, %s1960_s8  ;;  %762 = vst.msk [vmem:[#allocation2 + $0x38] sm:$0xff] %vm754_vm8, %v721_v37 }
  0xed   : > { %577 = vrot.lane.b32.xlu1 %v2404_v54, %s1954_s23  ;;  %v369_v54 = vsel %vm337_vm4, 0.0, %v336_v59 }
  0xee   : > { %v785_v53 = vpop.permute.xlu0 %784  ;;  %v386_v0 = vpack.c.bf16 %v320_v62, %v369_v54 }
  0xef   : > { %827 = vst.msk [vmem:[#allocation2 + $0x30] sm:$0xff] %vm820_vm9, %v785_v53  ;;  %v787_v38 = vpop.permute.xlu1 %786 }
  0xf0   : > { %1054 = vrot.lane.b32.xlu0 %v2445_v48, %s1960_s8  ;;  %828 = vst.msk [vmem:[#allocation2 + $0x38] sm:$0xff] %vm820_vm9, %v787_v38 }
  0xf1   : > { %579 = vrot.lane.b32.xlu1 %v2435_v15, %s1954_s23 }
  0xf2   : > { %v851_v60 = vpop.permute.xlu0 %850 }
  0xf3   : > { %893 = vst.msk [vmem:[#allocation2 + $0x30] sm:$0xff] %vm886_vm10, %v851_v60  ;;  %v853_v61 = vpop.permute.xlu1 %852 }
  0xf4   : > { %654 = vrot.lane.b32.xlu0 %v2416_v28, %s1956_s25  ;;  %894 = vst.msk [vmem:[#allocation2 + $0x38] sm:$0xff] %vm886_vm10, %v853_v61  ;;  %v402_v28 = vpack.c.bf16 %v268_v34, %v267_v50 }
  0xf5   : > { %656 = vrot.lane.b32.xlu1 %v2445_v48, %s1956_s25 }
  0xf6   : > { %v916_v52 = vpop.permute.xlu0 %915 }
  0xf7   : > { %955 = vst.msk [vmem:[#allocation2 + $0x30] sm:$0xff] %vm948_vm11, %v916_v52  ;;  %v918_v7 = vpop.permute.xlu1 %917 }
  0xf8   : > { %734 = vrot.lane.b32.xlu0 %v2428_v36, %s1955_s24  ;;  %956 = vst.msk [vmem:[#allocation2 + $0x38] sm:$0xff] %vm948_vm11, %v918_v7  ;;  %v517_v36 = vpack.c.bf16 %v501_v12, %v451_v32 }
  0xf9   : > { %736 = vrot.lane.b32.xlu1 %v386_v0, %s1955_s24 }
  0xfa   : > { %v979_v9 = vpop.permute.xlu0 %978 }
  0xfb   : > { %1018 = vst.msk [vmem:[#allocation2 + $0x30] sm:$0xff] %vm1011_vm12, %v979_v9  ;;  %v981_v46 = vpop.permute.xlu1 %980 }
  0xfc   : > { %800 = vrot.lane.b32.xlu0 %v2435_v15, %s1953_s22  ;;  %1019 = vst.msk [vmem:[#allocation2 + $0x38] sm:$0xff] %vm1011_vm12, %v981_v46 }
  0xfd   : > { %802 = vrot.lane.b32.xlu1 %v402_v28, %s1953_s22 }
  0xfe   : > { %v1041_v13 = vpop.permute.xlu0 %1040 }
  0xff   : > { %1080 = vst.msk [vmem:[#allocation2 + $0x30] sm:$0xff] %vm1073_vm13, %v1041_v13  ;;  %v566_v14 = vpop.permute.xlu1 %565 }
 0x100   : > { %866 = vrot.lane.b32.xlu0 %v2445_v48, %s1957_s28  ;;  %604 = vst.msk [vmem:[#allocation2 + $0x40] sm:$0xff] %vm596_vm1, %v566_v14 }
 0x101   : > { %868 = vrot.lane.b32.xlu1 %v517_v36, %s1957_s28 }
 0x102   : > { %v1043_v2 = vpop.permute.xlu0 %1042 }
 0x103   : > { %1081 = vst.msk [vmem:[#allocation2 + $0x38] sm:$0xff] %vm1073_vm13, %v1043_v2  ;;  %v568_v3 = vpop.permute.xlu1 %567 }
 0x104   : > { %931 = vrot.lane.b32.xlu0 %v386_v0, %s1958_s6  ;;  %605 = vst.msk [vmem:[#allocation2 + $0x48] sm:$0xff] %vm596_vm1, %v568_v3 }
 0x105   : > { %994 = vrot.lane.b32.xlu1 %v402_v28, %s1959_s7 }
 0x106   : > { %v643_v15 = vpop.permute.xlu0 %642  ;;  %v1096_v27 = vld [vmem:[#allocation2 + $0x30] sm:$0xff] }
 0x107   : > { %681 = vst.msk [vmem:[#allocation2 + $0x40] sm:$0xff] %vm673_vm2, %v643_v15  ;;  %1896 = vmatprep.mubr.msk.bf16.mxu0 %vm1126_vm14, %v1096_v27  ;;  %v645_v48 = vpop.permute.xlu1 %644 }
 0x108   : > { %1056 = vrot.lane.b32.xlu0 %v517_v36, %s1960_s8  ;;  %682 = vst.msk [vmem:[#allocation2 + $0x48] sm:$0xff] %vm673_vm2, %v645_v48 }
 0x10a   : > { %v723_v6 = vpop.permute.xlu0 %722  ;;  %v1097_v17 = vld [vmem:[#allocation2 + $0x38] sm:$0xff] }
 0x10b   : > { %763 = vst.msk [vmem:[#allocation2 + $0x40] sm:$0xff] %vm754_vm8, %v723_v6  ;;  %1897 = vmatmul.mubr.msk.bf16.gmra.mrb[12].mxu0 %vm1126_vm14, %v1097_v17  ;;  %v725_v49 = vpop.permute.xlu1 %724 }
 0x10c   : > { %764 = vst.msk [vmem:[#allocation2 + $0x48] sm:$0xff] %vm754_vm8, %v725_v49 }
 0x10e   : > { %v789_v16 = vpop.permute.xlu0 %788 }
 0x10f   : > { %829 = vst.msk [vmem:[#allocation2 + $0x40] sm:$0xff] %vm820_vm9, %v789_v16  ;;  %v791_v39 = vpop.permute.xlu1 %790 }
 0x110   : > { %830 = vst.msk [vmem:[#allocation2 + $0x48] sm:$0xff] %vm820_vm9, %v791_v39 }
 0x112   : > { %v855_v18 = vpop.permute.xlu0 %854 }
 0x113   : > { %895 = vst.msk [vmem:[#allocation2 + $0x40] sm:$0xff] %vm886_vm10, %v855_v18  ;;  %v857_v55 = vpop.permute.xlu1 %856 }
 0x114   : > { %896 = vst.msk [vmem:[#allocation2 + $0x48] sm:$0xff] %vm886_vm10, %v857_v55 }
 0x116   : > { %v920_v24 = vpop.permute.xlu0 %919 }
 0x117   : > { %957 = vst.msk [vmem:[#allocation2 + $0x40] sm:$0xff] %vm948_vm11, %v920_v24  ;;  %v922_v42 = vpop.permute.xlu1 %921 }
 0x118   : > { %958 = vst.msk [vmem:[#allocation2 + $0x48] sm:$0xff] %vm948_vm11, %v922_v42 }
 0x11a   : > { %v983_v20 = vpop.permute.xlu0 %982 }
 0x11b   : > { %1020 = vst.msk [vmem:[#allocation2 + $0x40] sm:$0xff] %vm1011_vm12, %v983_v20  ;;  %v985_v22 = vpop.permute.xlu1 %984 }
 0x11c   : > { %1021 = vst.msk [vmem:[#allocation2 + $0x48] sm:$0xff] %vm1011_vm12, %v985_v22 }
 0x11e   : > { %v1045_v4 = vpop.permute.xlu0 %1044 }
 0x11f   : > { %1082 = vst.msk [vmem:[#allocation2 + $0x40] sm:$0xff] %vm1073_vm13, %v1045_v4  ;;  %v570_v8 = vpop.permute.xlu1 %569 }
 0x120   : > { %606 = vst.msk [vmem:[#allocation2 + $0x50] sm:$0xff] %vm596_vm1, %v570_v8 }
 0x122   : > { %v1047_v25 = vpop.permute.xlu0 %1046 }
 0x123   : > { %1083 = vst.msk [vmem:[#allocation2 + $0x48] sm:$0xff] %vm1073_vm13, %v1047_v25  ;;  %v572_v26 = vpop.permute.xlu1 %571 }
 0x124   : > { %607 = vst.msk [vmem:[#allocation2 + $0x58] sm:$0xff] %vm596_vm1, %v572_v26 }
 0x126   : > { %v647_v33 = vpop.permute.xlu0 %646  ;;  %v1098_v30 = vld [vmem:[#allocation2 + $0x40] sm:$0xff] }
 0x127   : > { %683 = vst.msk [vmem:[#allocation2 + $0x50] sm:$0xff] %vm673_vm2, %v647_v33  ;;  %1900 = vmatprep.mubr.msk.bf16.mxu1 %vm1126_vm14, %v1098_v30  ;;  %v649_v10 = vpop.permute.xlu1 %648 }
 0x128   : > { %684 = vst.msk [vmem:[#allocation2 + $0x58] sm:$0xff] %vm673_vm2, %v649_v10 }
 0x12a   : > { %v727_v21 = vpop.permute.xlu0 %726  ;;  %v1099_v31 = vld [vmem:[#allocation2 + $0x48] sm:$0xff] }
 0x12b   : > { %765 = vst.msk [vmem:[#allocation2 + $0x50] sm:$0xff] %vm754_vm8, %v727_v21  ;;  %1901 = vmatmul.mubr.msk.bf16.vlgmr.msra.gmra.mrb[0].mxu1 %vm1126_vm14, %v1099_v31  ;;  %v729_v35 = vpop.permute.xlu1 %728 }
 0x12c   : > { %766 = vst.msk [vmem:[#allocation2 + $0x58] sm:$0xff] %vm754_vm8, %v729_v35 }
 0x12e   : > { %v793_v40 = vpop.permute.xlu0 %792 }
 0x12f   : > { %831 = vst.msk [vmem:[#allocation2 + $0x50] sm:$0xff] %vm820_vm9, %v793_v40  ;;  %v795_v29 = vpop.permute.xlu1 %794 }
 0x130   : > { %832 = vst.msk [vmem:[#allocation2 + $0x58] sm:$0xff] %vm820_vm9, %v795_v29 }
 0x132   : > { %v859_v41 = vpop.permute.xlu0 %858 }
 0x133   : > { %897 = vst.msk [vmem:[#allocation2 + $0x50] sm:$0xff] %vm886_vm10, %v859_v41  ;;  %v861_v43 = vpop.permute.xlu1 %860 }
 0x134   : > { %898 = vst.msk [vmem:[#allocation2 + $0x58] sm:$0xff] %vm886_vm10, %v861_v43 }
 0x136   : > { %v924_v56 = vpop.permute.xlu0 %923 }
 0x137   : > { %959 = vst.msk [vmem:[#allocation2 + $0x50] sm:$0xff] %vm948_vm11, %v924_v56  ;;  %v926_v45 = vpop.permute.xlu1 %925 }
 0x138   : > { %960 = vst.msk [vmem:[#allocation2 + $0x58] sm:$0xff] %vm948_vm11, %v926_v45 }
 0x13a   : > { %v987_v58 = vpop.permute.xlu0 %986 }
 0x13b   : > { %1022 = vst.msk [vmem:[#allocation2 + $0x50] sm:$0xff] %vm1011_vm12, %v987_v58  ;;  %v989_v44 = vpop.permute.xlu1 %988 }
 0x13c   : > { %1023 = vst.msk [vmem:[#allocation2 + $0x58] sm:$0xff] %vm1011_vm12, %v989_v44 }
 0x13e   : > { %v1049_v47 = vpop.permute.xlu0 %1048 }
 0x13f   : > { %1084 = vst.msk [vmem:[#allocation2 + $0x50] sm:$0xff] %vm1073_vm13, %v1049_v47  ;;  %v574_v50 = vpop.permute.xlu1 %573 }
 0x140   : > { %608 = vst.msk [vmem:[#allocation2 + $0x60] sm:$0xff] %vm596_vm1, %v574_v50 }
 0x142   : > { %v1051_v34 = vpop.permute.xlu0 %1050 }
 0x143   : > { %1085 = vst.msk [vmem:[#allocation2 + $0x58] sm:$0xff] %vm1073_vm13, %v1051_v34  ;;  %v576_v11 = vpop.permute.xlu1 %575 }
 0x144   : > { %609 = vst.msk [vmem:[#allocation2 + $0x68] sm:$0xff] %vm596_vm1, %v576_v11 }
 0x146   : > { %v651_v19 = vpop.permute.xlu0 %650  ;;  %v1100_v37 = vld [vmem:[#allocation2 + $0x50] sm:$0xff] }
 0x147   : > { %685 = vst.msk [vmem:[#allocation2 + $0x60] sm:$0xff] %vm673_vm2, %v651_v19  ;;  %1904 = vmatprep.mubr.msk.bf16.mxu1 %vm1126_vm14, %v1100_v37  ;;  %v653_v57 = vpop.permute.xlu1 %652 }
 0x148   : > { %686 = vst.msk [vmem:[#allocation2 + $0x68] sm:$0xff] %vm673_vm2, %v653_v57 }
 0x14a   : > { %v731_v51 = vpop.permute.xlu0 %730  ;;  %v1101_v53 = vld [vmem:[#allocation2 + $0x58] sm:$0xff] }
 0x14b   : > { %767 = vst.msk [vmem:[#allocation2 + $0x60] sm:$0xff] %vm754_vm8, %v731_v51  ;;  %1905 = vmatmul.mubr.msk.bf16.gmra.mrb[4].mxu1 %vm1126_vm14, %v1101_v53  ;;  %v733_v38 = vpop.permute.xlu1 %732 }
 0x14c   : > { %768 = vst.msk [vmem:[#allocation2 + $0x68] sm:$0xff] %vm754_vm8, %v733_v38 }
 0x14e   : > { %v797_v59 = vpop.permute.xlu0 %796 }
 0x14f   : > { %833 = vst.msk [vmem:[#allocation2 + $0x60] sm:$0xff] %vm820_vm9, %v797_v59  ;;  %v799_v60 = vpop.permute.xlu1 %798 }
 0x150   : > { %834 = vst.msk [vmem:[#allocation2 + $0x68] sm:$0xff] %vm820_vm9, %v799_v60 }
 0x152   : > { %v863_v62 = vpop.permute.xlu0 %862 }
 0x153   : > { %899 = vst.msk [vmem:[#allocation2 + $0x60] sm:$0xff] %vm886_vm10, %v863_v62  ;;  %v865_v54 = vpop.permute.xlu1 %864 }
 0x154   : > { %900 = vst.msk [vmem:[#allocation2 + $0x68] sm:$0xff] %vm886_vm10, %v865_v54 }
 0x156   : > { %v928_v61 = vpop.permute.xlu0 %927 }
 0x157   : > { %961 = vst.msk [vmem:[#allocation2 + $0x60] sm:$0xff] %vm948_vm11, %v928_v61  ;;  %v930_v5 = vpop.permute.xlu1 %929 }
 0x158   : > { %962 = vst.msk [vmem:[#allocation2 + $0x68] sm:$0xff] %vm948_vm11, %v930_v5 }
 0x15a   : > { %v991_v63 = vpop.permute.xlu0 %990 }
 0x15b   : > { %1024 = vst.msk [vmem:[#allocation2 + $0x60] sm:$0xff] %vm1011_vm12, %v991_v63  ;;  %v993_v0 = vpop.permute.xlu1 %992 }
 0x15c   : > { %1025 = vst.msk [vmem:[#allocation2 + $0x68] sm:$0xff] %vm1011_vm12, %v993_v0 }
 0x15e   : > { %v1053_v52 = vpop.permute.xlu0 %1052 }
 0x15f   : > { %1086 = vst.msk [vmem:[#allocation2 + $0x60] sm:$0xff] %vm1073_vm13, %v1053_v52  ;;  %v578_v7 = vpop.permute.xlu1 %577 }
 0x160   : > { %610 = vst.msk [vmem:[#allocation2 + $0x70] sm:$0xff] %vm596_vm1, %v578_v7 }
 0x162   : > { %v1055_v23 = vpop.permute.xlu0 %1054 }
 0x163   : > { %1087 = vst.msk [vmem:[#allocation2 + $0x68] sm:$0xff] %vm1073_vm13, %v1055_v23  ;;  %v580_v28 = vpop.permute.xlu1 %579 }
 0x164   : > { %611 = vst.msk [vmem:[#allocation2 + $0x78] sm:$0xff] %vm596_vm1, %v580_v28  ;;  %vm1511_vm1 = vcmask 1040384  }
 0x166   : > { %v655_v9 = vpop.permute.xlu0 %654  ;;  %v1102_v32 = vld [vmem:[#allocation2 + $0x60] sm:$0xff] }
 0x167   : > { %687 = vst.msk [vmem:[#allocation2 + $0x70] sm:$0xff] %vm673_vm2, %v655_v9  ;;  %1908 = vmatprep.mubr.msk.bf16.mxu1 %vm1126_vm14, %v1102_v32  ;;  %v657_v12 = vpop.permute.xlu1 %656 }
 0x168   : > { %688 = vst.msk [vmem:[#allocation2 + $0x78] sm:$0xff] %vm673_vm2, %v657_v12  ;;  %vm1513_vm2 = vcmask 254976  }
 0x16a   : > { %v735_v46 = vpop.permute.xlu0 %734  ;;  %v1103_v36 = vld [vmem:[#allocation2 + $0x68] sm:$0xff] }
 0x16b   : > { %769 = vst.msk [vmem:[#allocation2 + $0x70] sm:$0xff] %vm754_vm8, %v735_v46  ;;  %1909 = vmatmul.mubr.msk.bf16.gmra.mrb[8].mxu1 %vm1126_vm14, %v1103_v36  ;;  %v737_v13 = vpop.permute.xlu1 %736 }
 0x16c   : > { %770 = vst.msk [vmem:[#allocation2 + $0x78] sm:$0xff] %vm754_vm8, %v737_v13 }
 0x16e   : > { %v801_v14 = vpop.permute.xlu0 %800 }
 0x16f   : > { %835 = vst.msk [vmem:[#allocation2 + $0x70] sm:$0xff] %vm820_vm9, %v801_v14  ;;  %v803_v2 = vpop.permute.xlu1 %802 }
 0x170   : > { %836 = vst.msk [vmem:[#allocation2 + $0x78] sm:$0xff] %vm820_vm9, %v803_v2 }
 0x172   : > { %v867_v3 = vpop.permute.xlu0 %866 }
 0x173   : > { %901 = vst.msk [vmem:[#allocation2 + $0x70] sm:$0xff] %vm886_vm10, %v867_v3  ;;  %v869_v15 = vpop.permute.xlu1 %868 }
 0x174   : > { %902 = vst.msk [vmem:[#allocation2 + $0x78] sm:$0xff] %vm886_vm10, %v869_v15 }
 0x175   : > { %965 = vst.msk [vmem:[#allocation2 + $0x78] sm:$0xff] %vm948_vm11, %v1952_v1 }
 0x176   : > { %1027 = vst.msk [vmem:[#allocation2 + $0x78] sm:$0xff] %vm1011_vm12, %v1952_v1  ;;  %v932_v27 = vpop.permute.xlu0 %931 }
 0x177   : > { %1089 = vst.msk [vmem:[#allocation2 + $0x78] sm:$0xff] %vm1073_vm13, %v1952_v1  ;;  %v995_v48 = vpop.permute.xlu1 %994 }
 0x178   : > { %963 = vst.msk [vmem:[#allocation2 + $0x70] sm:$0xff] %vm948_vm11, %v932_v27 }
 0x179   : > { %1026 = vst.msk [vmem:[#allocation2 + $0x70] sm:$0xff] %vm1011_vm12, %v995_v48 }
 0x17a   : > { %v1057_v6 = vpop.permute.xlu0 %1056 }
 0x17b   : > { %1088 = vst.msk [vmem:[#allocation2 + $0x70] sm:$0xff] %vm1073_vm13, %v1057_v6 }
 0x17e   : > { %v1886_v17 = vpop.f32.mrb[0].mxu0  ;;  %v1105_v20 = vld [vmem:[#allocation2 + $0x78] sm:$0xff] }
 0x17f   : > { %v1829_v1 = vpack.c.bf16 %v1886_v17, %v1886_v17  ;;  %v1213_v49 = vpop.f32.mrb[1].mxu0  ;;  %v1412_v55 = vmul.f32 %v1886_v17, %v1886_v17  ;;  %v1344_v30 = vsel %vm1340_vm0, %v1886_v17, 0.0 }
 0x180   : > { %v1410_v16 = vmul.f32 %v1213_v49, %v1213_v49  ;;  %v1827_v39 = vpack.c.bf16 %v1213_v49, %v1213_v49  ;;  %v1887_v18 = vpop.f32.mrb[2].mxu0  ;;  %v1341_v22 = vsel %vm1340_vm0, %v1213_v49, 0.0 }
 0x181   : > { %1646 = vst.msk [vmem:[%s2755_s14 + $0x8] sm:$0xf] %vm1643_vm15, %v1829_v1  ;;  %v1830_v24 = vpack.c.bf16 %v1887_v18, %v1887_v18  ;;  %v1216_v42 = vpop.f32.mrb[3].mxu0  ;;  %v1413_v21 = vmul.f32 %v1887_v18, %v1887_v18  ;;  %v1445_v29 = vsel %vm1340_vm0, %v1412_v55, 0.0  ;;  %v1346_v41 = vsel %vm1340_vm0, %v1887_v18, 0.0 }
 0x182   : > { %1644 = vst.msk [vmem:[%s2755_s14] sm:$0xf] %vm1643_vm15, %v1827_v39  ;;  %v1342_v4 = vsel %vm1340_vm0, %v1216_v42, 0.0  ;;  %v1411_v8 = vmul.f32 %v1216_v42, %v1216_v42  ;;  %v1828_v25 = vpack.c.bf16 %v1216_v42, %v1216_v42  ;;  %v1104_v26 = vld [vmem:[#allocation2 + $0x70] sm:$0xff]  ;;  %v1442_v10 = vsel %vm1340_vm0, %v1410_v16, 0.0 }
 0x183   : > { %1647 = vst.msk [vmem:[%s2755_s14 + $0xc] sm:$0xf] %vm1643_vm15, %v1830_v24  ;;  %v1343_v33 = vadd.f32 %v1342_v4, %v1341_v22  ;;  %1912 = vmatprep.mubr.msk.bf16.mxu1 %vm1126_vm14, %v1104_v26  ;;  %v1447_v45 = vsel %vm1340_vm0, %v1413_v21, 0.0 }
 0x184   : > { %v1443_v31 = vsel %vm1340_vm0, %v1411_v8, 0.0  ;;  %1645 = vst.msk [vmem:[%s2755_s14 + $0x4] sm:$0xf] %vm1643_vm15, %v1828_v25  ;;  %1913 = vmatmul.mubr.msk.bf16.gmra.mrb[12].mxu1 %vm1126_vm14, %v1105_v20 }
 0x185   : > { %v1345_v35 = vadd.f32 %v1344_v30, %v1343_v33  ;;  %v1444_v40 = vadd.f32 %v1443_v31, %v1442_v10 }
 0x187   : > { %v1446_v43 = vadd.f32 %v1445_v29, %v1444_v40  ;;  %v1347_v56 = vadd.f32 %v1346_v41, %v1345_v35 }
 0x189   : > { %v1448_v58 = vadd.f32 %v1447_v45, %v1446_v43 }
 0x19e   : > { %v1890_v44 = vpop.f32.mrb[4].mxu0 }
 0x19f   : > { %v1833_v47 = vpack.c.bf16 %v1890_v44, %v1890_v44  ;;  %v1229_v50 = vpop.f32.mrb[5].mxu0  ;;  %v1416_v57 = vmul.f32 %v1890_v44, %v1890_v44  ;;  %v1352_v63 = vsel %vm1340_vm0, %v1890_v44, 0.0 }
 0x1a0   : > { %v1348_v34 = vsel %vm1340_vm0, %v1229_v50, 0.0  ;;  %v1414_v11 = vmul.f32 %v1229_v50, %v1229_v50  ;;  %v1831_v19 = vpack.c.bf16 %v1229_v50, %v1229_v50  ;;  %v1891_v37 = vpop.f32.mrb[6].mxu0 }
 0x1a1   : > { %1650 = vst.msk [vmem:[%s2755_s14 + $0x18] sm:$0xf] %vm1643_vm15, %v1833_v47  ;;  %v1349_v51 = vadd.f32 %v1348_v34, %v1347_v56  ;;  %v1232_v53 = vpop.f32.mrb[7].mxu0  ;;  %v1834_v59 = vpack.c.bf16 %v1891_v37, %v1891_v37  ;;  %v1417_v0 = vmul.f32 %v1891_v37, %v1891_v37  ;;  %v1453_v28 = vsel %vm1340_vm0, %v1416_v57, 0.0 }
 0x1a2   : > { %v1449_v38 = vsel %vm1340_vm0, %v1414_v11, 0.0  ;;  %1648 = vst.msk [vmem:[%s2755_s14 + $0x10] sm:$0xf] %vm1643_vm15, %v1831_v19  ;;  %v1350_v60 = vsel %vm1340_vm0, %v1232_v53, 0.0  ;;  %v1415_v62 = vmul.f32 %v1232_v53, %v1232_v53  ;;  %v1832_v5 = vpack.c.bf16 %v1232_v53, %v1232_v53 }
 0x1a3   : > { %v1450_v54 = vadd.f32 %v1449_v38, %v1448_v58  ;;  %v1351_v61 = vadd.f32 %v1350_v60, %v1349_v51  ;;  %1651 = vst.msk [vmem:[%s2755_s14 + $0x1c] sm:$0xf] %vm1643_vm15, %v1834_v59  ;;  %v1354_v9 = vsel %vm1340_vm0, %v1891_v37, 0.0  ;;  %v1455_v46 = vsel %vm1340_vm0, %v1417_v0, 0.0 }
 0x1a4   : > { %v1451_v52 = vsel %vm1340_vm0, %v1415_v62, 0.0  ;;  %1649 = vst.msk [vmem:[%s2755_s14 + $0x14] sm:$0xf] %vm1643_vm15, %v1832_v5 }
 0x1a5   : > { %v1353_v7 = vadd.f32 %v1352_v63, %v1351_v61  ;;  %v1452_v23 = vadd.f32 %v1451_v52, %v1450_v54 }
 0x1a7   : > { %v1454_v32 = vadd.f32 %v1453_v28, %v1452_v23  ;;  %v1355_v12 = vadd.f32 %v1354_v9, %v1353_v7 }
 0x1a9   : > { %v1456_v36 = vadd.f32 %v1455_v46, %v1454_v32 }
 0x1be   : > { %v1894_v13 = vpop.f32.mrb[8].mxu0 }
 0x1bf   : > { %v1837_v14 = vpack.c.bf16 %v1894_v13, %v1894_v13  ;;  %v1245_v2 = vpop.f32.mrb[9].mxu0  ;;  %v1420_v6 = vmul.f32 %v1894_v13, %v1894_v13  ;;  %v1360_v20 = vsel %vm1340_vm0, %v1894_v13, 0.0 }
 0x1c0   : > { %v1356_v3 = vsel %vm1340_vm0, %v1245_v2, 0.0  ;;  %v1418_v15 = vmul.f32 %v1245_v2, %v1245_v2  ;;  %v1835_v27 = vpack.c.bf16 %v1245_v2, %v1245_v2  ;;  %v1895_v48 = vpop.f32.mrb[10].mxu0 }
 0x1c1   : > { %1654 = vst.msk [vmem:[%s2755_s14 + $0x28] sm:$0xf] %vm1643_vm15, %v1837_v14  ;;  %v1357_v17 = vadd.f32 %v1356_v3, %v1355_v12  ;;  %v1248_v1 = vpop.f32.mrb[11].mxu0  ;;  %v1838_v16 = vpack.c.bf16 %v1895_v48, %v1895_v48  ;;  %v1421_v22 = vmul.f32 %v1895_v48, %v1895_v48  ;;  %v1461_v26 = vsel %vm1340_vm0, %v1420_v6, 0.0 }
 0x1c2   : > { %v1457_v49 = vsel %vm1340_vm0, %v1418_v15, 0.0  ;;  %1652 = vst.msk [vmem:[%s2755_s14 + $0x20] sm:$0xf] %vm1643_vm15, %v1835_v27  ;;  %v1358_v39 = vsel %vm1340_vm0, %v1248_v1, 0.0  ;;  %v1419_v18 = vmul.f32 %v1248_v1, %v1248_v1  ;;  %v1836_v42 = vpack.c.bf16 %v1248_v1, %v1248_v1 }
 0x1c3   : > { %v1458_v55 = vadd.f32 %v1457_v49, %v1456_v36  ;;  %v1359_v24 = vadd.f32 %v1358_v39, %v1357_v17  ;;  %1655 = vst.msk [vmem:[%s2755_s14 + $0x2c] sm:$0xf] %vm1643_vm15, %v1838_v16  ;;  %v1362_v33 = vsel %vm1340_vm0, %v1895_v48, 0.0  ;;  %v1463_v21 = vsel %vm1340_vm0, %v1421_v22, 0.0 }
 0x1c4   : > { %v1459_v4 = vsel %vm1340_vm0, %v1419_v18, 0.0  ;;  %1653 = vst.msk [vmem:[%s2755_s14 + $0x24] sm:$0xf] %vm1643_vm15, %v1836_v42 }
 0x1c5   : > { %v1361_v8 = vadd.f32 %v1360_v20, %v1359_v24  ;;  %v1460_v25 = vadd.f32 %v1459_v4, %v1458_v55 }
 0x1c7   : > { %v1462_v30 = vadd.f32 %v1461_v26, %v1460_v25  ;;  %v1363_v10 = vadd.f32 %v1362_v33, %v1361_v8 }
 0x1c9   : > { %v1464_v31 = vadd.f32 %v1463_v21, %v1462_v30 }
 0x1de   : > { %v1898_v35 = vpop.f32.mrb[12].mxu0 }
 0x1df   : > { %v1841_v40 = vpack.c.bf16 %v1898_v35, %v1898_v35  ;;  %v1261_v29 = vpop.f32.mrb[13].mxu0  ;;  %v1424_v58 = vmul.f32 %v1898_v35, %v1898_v35  ;;  %v1368_v53 = vsel %vm1340_vm0, %v1898_v35, 0.0 }
 0x1e0   : > { %v1364_v41 = vsel %vm1340_vm0, %v1261_v29, 0.0  ;;  %v1422_v43 = vmul.f32 %v1261_v29, %v1261_v29  ;;  %v1839_v56 = vpack.c.bf16 %v1261_v29, %v1261_v29  ;;  %v1899_v45 = vpop.f32.mrb[14].mxu0 }
 0x1e1   : > { %1658 = vst.msk [vmem:[%s2755_s14 + $0x38] sm:$0xf] %vm1643_vm15, %v1841_v40  ;;  %v1365_v44 = vadd.f32 %v1364_v41, %v1363_v10  ;;  %v1264_v47 = vpop.f32.mrb[15].mxu0  ;;  %v1842_v34 = vpack.c.bf16 %v1899_v45, %v1899_v45  ;;  %v1425_v38 = vmul.f32 %v1899_v45, %v1899_v45  ;;  %v1469_v54 = vsel %vm1340_vm0, %v1424_v58, 0.0 }
 0x1e2   : > { %v1465_v50 = vsel %vm1340_vm0, %v1422_v43, 0.0  ;;  %1656 = vst.msk [vmem:[%s2755_s14 + $0x30] sm:$0xf] %vm1643_vm15, %v1839_v56  ;;  %v1366_v11 = vsel %vm1340_vm0, %v1264_v47, 0.0  ;;  %v1423_v19 = vmul.f32 %v1264_v47, %v1264_v47  ;;  %v1840_v51 = vpack.c.bf16 %v1264_v47, %v1264_v47 }
 0x1e3   : > { %v1466_v37 = vadd.f32 %v1465_v50, %v1464_v31  ;;  %v1367_v57 = vadd.f32 %v1366_v11, %v1365_v44  ;;  %1659 = vst.msk [vmem:[%s2755_s14 + $0x3c] sm:$0xf] %vm1643_vm15, %v1842_v34  ;;  %v1370_v61 = vsel %vm1340_vm0, %v1899_v45, 0.0  ;;  %v1471_v0 = vsel %vm1340_vm0, %v1425_v38, 0.0 }
 0x1e4   : > { %v1467_v59 = vsel %vm1340_vm0, %v1423_v19, 0.0  ;;  %1657 = vst.msk [vmem:[%s2755_s14 + $0x34] sm:$0xf] %vm1643_vm15, %v1840_v51 }
 0x1e5   : > { %v1369_v60 = vadd.f32 %v1368_v53, %v1367_v57  ;;  %v1468_v62 = vadd.f32 %v1467_v59, %v1466_v37 }
 0x1e7   : > { %v1470_v5 = vadd.f32 %v1469_v54, %v1468_v62  ;;  %v1371_v63 = vadd.f32 %v1370_v61, %v1369_v60 }
 0x1e9   : > { %v1472_v52 = vadd.f32 %v1471_v0, %v1470_v5 }
 0x1fe   : > { %v1902_v7 = vpop.f32.mrb[0].mxu1 }
 0x1ff   : > { %v1845_v23 = vpack.c.bf16 %v1902_v7, %v1902_v7  ;;  %v1277_v28 = vpop.f32.mrb[1].mxu1  ;;  %v1428_v36 = vmul.f32 %v1902_v7, %v1902_v7  ;;  %v1376_v1 = vsel %vm1340_vm0, %v1902_v7, 0.0 }
 0x200   : > { %v1372_v9 = vsel %vm1340_vm0, %v1277_v28, 0.0  ;;  %v1426_v32 = vmul.f32 %v1277_v28, %v1277_v28  ;;  %v1843_v12 = vpack.c.bf16 %v1277_v28, %v1277_v28  ;;  %v1903_v46 = vpop.f32.mrb[2].mxu1 }
 0x201   : > { %1662 = vst.msk [vmem:[%s2755_s14 + $0x48] sm:$0xf] %vm1643_vm15, %v1845_v23  ;;  %v1373_v13 = vadd.f32 %v1372_v9, %v1371_v63  ;;  %v1280_v14 = vpop.f32.mrb[3].mxu1  ;;  %v1846_v3 = vpack.c.bf16 %v1903_v46, %v1903_v46  ;;  %v1429_v49 = vmul.f32 %v1903_v46, %v1903_v46  ;;  %v1477_v55 = vsel %vm1340_vm0, %v1428_v36, 0.0 }
 0x202   : > { %v1473_v2 = vsel %vm1340_vm0, %v1426_v32, 0.0  ;;  %1660 = vst.msk [vmem:[%s2755_s14 + $0x40] sm:$0xf] %vm1643_vm15, %v1843_v12  ;;  %v1374_v15 = vsel %vm1340_vm0, %v1280_v14, 0.0  ;;  %v1427_v27 = vmul.f32 %v1280_v14, %v1280_v14  ;;  %v1844_v17 = vpack.c.bf16 %v1280_v14, %v1280_v14 }
 0x203   : > { %v1474_v48 = vadd.f32 %v1473_v2, %v1472_v52  ;;  %v1375_v6 = vadd.f32 %v1374_v15, %v1373_v13  ;;  %1663 = vst.msk [vmem:[%s2755_s14 + $0x4c] sm:$0xf] %vm1643_vm15, %v1846_v3  ;;  %v1378_v24 = vsel %vm1340_vm0, %v1903_v46, 0.0  ;;  %v1479_v22 = vsel %vm1340_vm0, %v1429_v49, 0.0 }
 0x204   : > { %v1475_v16 = vsel %vm1340_vm0, %v1427_v27, 0.0  ;;  %1661 = vst.msk [vmem:[%s2755_s14 + $0x44] sm:$0xf] %vm1643_vm15, %v1844_v17 }
 0x205   : > { %v1377_v39 = vadd.f32 %v1376_v1, %v1375_v6  ;;  %v1476_v18 = vadd.f32 %v1475_v16, %v1474_v48 }
 0x207   : > { %v1478_v42 = vadd.f32 %v1477_v55, %v1476_v18  ;;  %v1379_v20 = vadd.f32 %v1378_v24, %v1377_v39 }
 0x209   : > { %v1480_v4 = vadd.f32 %v1479_v22, %v1478_v42 }
 0x21e   : > { %v1906_v8 = vpop.f32.mrb[4].mxu1 }
 0x21f   : > { %v1849_v25 = vpack.c.bf16 %v1906_v8, %v1906_v8  ;;  %v1293_v26 = vpop.f32.mrb[5].mxu1  ;;  %v1432_v31 = vmul.f32 %v1906_v8, %v1906_v8  ;;  %v1384_v47 = vsel %vm1340_vm0, %v1906_v8, 0.0 }
 0x220   : > { %v1380_v33 = vsel %vm1340_vm0, %v1293_v26, 0.0  ;;  %v1430_v30 = vmul.f32 %v1293_v26, %v1293_v26  ;;  %v1847_v10 = vpack.c.bf16 %v1293_v26, %v1293_v26  ;;  %v1907_v21 = vpop.f32.mrb[6].mxu1 }
 0x221   : > { %1666 = vst.msk [vmem:[%s2755_s14 + $0x58] sm:$0xf] %vm1643_vm15, %v1849_v25  ;;  %v1381_v35 = vadd.f32 %v1380_v33, %v1379_v20  ;;  %v1296_v40 = vpop.f32.mrb[7].mxu1  ;;  %v1850_v41 = vpack.c.bf16 %v1907_v21, %v1907_v21  ;;  %v1433_v50 = vmul.f32 %v1907_v21, %v1907_v21  ;;  %v1485_v37 = vsel %vm1340_vm0, %v1432_v31, 0.0 }
 0x222   : > { %v1481_v29 = vsel %vm1340_vm0, %v1430_v30, 0.0  ;;  %1664 = vst.msk [vmem:[%s2755_s14 + $0x50] sm:$0xf] %vm1643_vm15, %v1847_v10  ;;  %v1382_v43 = vsel %vm1340_vm0, %v1296_v40, 0.0  ;;  %v1431_v56 = vmul.f32 %v1296_v40, %v1296_v40  ;;  %v1848_v44 = vpack.c.bf16 %v1296_v40, %v1296_v40 }
 0x223   : > { %v1482_v45 = vadd.f32 %v1481_v29, %v1480_v4  ;;  %v1383_v58 = vadd.f32 %v1382_v43, %v1381_v35  ;;  %1667 = vst.msk [vmem:[%s2755_s14 + $0x5c] sm:$0xf] %vm1643_vm15, %v1850_v41  ;;  %v1386_v57 = vsel %vm1340_vm0, %v1907_v21, 0.0  ;;  %v1487_v38 = vsel %vm1340_vm0, %v1433_v50, 0.0 }
 0x224   : > { %v1483_v34 = vsel %vm1340_vm0, %v1431_v56, 0.0  ;;  %1665 = vst.msk [vmem:[%s2755_s14 + $0x54] sm:$0xf] %vm1643_vm15, %v1848_v44 }
 0x225   : > { %v1385_v11 = vadd.f32 %v1384_v47, %v1383_v58  ;;  %v1484_v19 = vadd.f32 %v1483_v34, %v1482_v45 }
 0x227   : > { %v1486_v51 = vadd.f32 %v1485_v37, %v1484_v19  ;;  %v1387_v53 = vadd.f32 %v1386_v57, %v1385_v11 }
 0x229   : > { %v1488_v59 = vadd.f32 %v1487_v38, %v1486_v51 }
 0x23e   : > { %v1910_v60 = vpop.f32.mrb[8].mxu1 }
 0x23f   : > { %v1853_v62 = vpack.c.bf16 %v1910_v60, %v1910_v60  ;;  %v1309_v54 = vpop.f32.mrb[9].mxu1  ;;  %v1436_v52 = vmul.f32 %v1910_v60, %v1910_v60  ;;  %v1392_v14 = vsel %vm1340_vm0, %v1910_v60, 0.0 }
 0x240   : > { %v1388_v61 = vsel %vm1340_vm0, %v1309_v54, 0.0  ;;  %v1434_v5 = vmul.f32 %v1309_v54, %v1309_v54  ;;  %v1851_v63 = vpack.c.bf16 %v1309_v54, %v1309_v54  ;;  %v1911_v0 = vpop.f32.mrb[10].mxu1 }
 0x241   : > { %1670 = vst.msk [vmem:[%s2755_s14 + $0x68] sm:$0xf] %vm1643_vm15, %v1853_v62  ;;  %v1389_v7 = vadd.f32 %v1388_v61, %v1387_v53  ;;  %v1312_v23 = vpop.f32.mrb[11].mxu1  ;;  %v1854_v9 = vpack.c.bf16 %v1911_v0, %v1911_v0  ;;  %v1437_v2 = vmul.f32 %v1911_v0, %v1911_v0  ;;  %v1493_v48 = vsel %vm1340_vm0, %v1436_v52, 0.0 }
 0x242   : > { %v1489_v28 = vsel %vm1340_vm0, %v1434_v5, 0.0  ;;  %1668 = vst.msk [vmem:[%s2755_s14 + $0x60] sm:$0xf] %vm1643_vm15, %v1851_v63  ;;  %v1390_v32 = vsel %vm1340_vm0, %v1312_v23, 0.0  ;;  %v1435_v12 = vmul.f32 %v1312_v23, %v1312_v23  ;;  %v1852_v13 = vpack.c.bf16 %v1312_v23, %v1312_v23 }
 0x243   : > { %v1490_v46 = vadd.f32 %v1489_v28, %v1488_v59  ;;  %v1391_v36 = vadd.f32 %v1390_v32, %v1389_v7  ;;  %1671 = vst.msk [vmem:[%s2755_s14 + $0x6c] sm:$0xf] %vm1643_vm15, %v1854_v9  ;;  %v1394_v6 = vsel %vm1340_vm0, %v1911_v0, 0.0  ;;  %v1495_v49 = vsel %vm1340_vm0, %v1437_v2, 0.0 }
 0x244   : > { %v1491_v3 = vsel %vm1340_vm0, %v1435_v12, 0.0  ;;  %1669 = vst.msk [vmem:[%s2755_s14 + $0x64] sm:$0xf] %vm1643_vm15, %v1852_v13 }
 0x245   : > { %v1393_v15 = vadd.f32 %v1392_v14, %v1391_v36  ;;  %v1492_v27 = vadd.f32 %v1491_v3, %v1490_v46 }
 0x247   : > { %v1494_v17 = vadd.f32 %v1493_v48, %v1492_v27  ;;  %v1395_v1 = vadd.f32 %v1394_v6, %v1393_v15 }
 0x249   : > { %v1496_v16 = vadd.f32 %v1495_v49, %v1494_v17 }
 0x257   : > { %v1914_v39 = vpop.f32.mrb[12].mxu1 }
 0x258   : > { %v1857_v18 = vpack.c.bf16 %v1914_v39, %v1914_v39  ;;  %v1325_v55 = vpop.f32.mrb[13].mxu1  ;;  %v1440_v4 = vmul.f32 %v1914_v39, %v1914_v39  ;;  %v1400_v40 = vsel %vm1340_vm0, %v1914_v39, 0.0 }
 0x259   : > { %v1396_v24 = vsel %vm1340_vm0, %v1325_v55, 0.0  ;;  %v1438_v42 = vmul.f32 %v1325_v55, %v1325_v55  ;;  %v1855_v20 = vpack.c.bf16 %v1325_v55, %v1325_v55  ;;  %v1915_v22 = vpop.f32.mrb[14].mxu1 }
 0x25a   : > { %1674 = vst.msk [vmem:[%s2755_s14 + $0x78] sm:$0xf] %vm1643_vm15, %v1857_v18  ;;  %v1397_v8 = vadd.f32 %v1396_v24, %v1395_v1  ;;  %v1328_v25 = vpop.f32.mrb[15].mxu1  ;;  %v1858_v33 = vpack.c.bf16 %v1915_v22, %v1915_v22  ;;  %v1441_v29 = vmul.f32 %v1915_v22, %v1915_v22  ;;  %v1501_v45 = vsel %vm1340_vm0, %v1440_v4, 0.0 }
 0x25b   : > { %v1497_v26 = vsel %vm1340_vm0, %v1438_v42, 0.0  ;;  %1672 = vst.msk [vmem:[%s2755_s14 + $0x70] sm:$0xf] %vm1643_vm15, %v1855_v20  ;;  %v1398_v30 = vsel %vm1340_vm0, %v1328_v25, 0.0  ;;  %v1439_v10 = vmul.f32 %v1328_v25, %v1328_v25  ;;  %v1856_v35 = vpack.c.bf16 %v1328_v25, %v1328_v25 }
 0x25c   : > { %v1498_v21 = vadd.f32 %v1497_v26, %v1496_v16  ;;  %v1399_v31 = vadd.f32 %v1398_v30, %v1397_v8  ;;  %1675 = vst.msk [vmem:[%s2755_s14 + $0x7c] sm:$0xf] %vm1643_vm15, %v1858_v33  ;;  %v1402_v58 = vsel %vm1340_vm0, %v1915_v22, 0.0  ;;  %v1503_v50 = vsel %vm1340_vm0, %v1441_v29, 0.0 }
 0x25d   : > { %v1499_v41 = vsel %vm1340_vm0, %v1439_v10, 0.0  ;;  %1673 = vst.msk [vmem:[%s2755_s14 + $0x74] sm:$0xf] %vm1643_vm15, %v1856_v35 }
 0x25e   : > { %v1401_v43 = vadd.f32 %v1400_v40, %v1399_v31  ;;  %v1500_v56 = vadd.f32 %v1499_v41, %v1498_v21 }
 0x260   : > { %v1403_v44 = vadd.f32 %v1402_v58, %v1401_v43  ;;  %v1502_v47 = vadd.f32 %v1501_v45, %v1500_v56 }
 0x262   : > { %v1404_v34 = vrot.slane %v1403_v44, 4  ;;  %v1504_v11 = vadd.f32 %v1503_v50, %v1502_v47 }
 0x264   : > { %v1405_v19 = vadd.f32 %v1404_v34, %v1403_v44  ;;  %v1505_v37 = vrot.slane %v1504_v11, 4 }
 0x266   : > { %v1406_v57 = vrot.slane %v1405_v19, 2  ;;  %v1506_v51 = vadd.f32 %v1505_v37, %v1504_v11 }
 0x268   : > { %v1407_v53 = vadd.f32 %v1406_v57, %v1405_v19  ;;  %v1507_v38 = vrot.slane %v1506_v51, 2 }
 0x26a   : > { %v1408_v59 = vrot.slane %v1407_v53, 1  ;;  %v1508_v60 = vadd.f32 %v1507_v38, %v1506_v51 }
 0x26c   : > { %v1509_v62 = vrot.slane %v1508_v60, 1  ;;  %v1409_v54 = vadd.f32 %v1408_v59, %v1407_v53 }
 0x26e   : > { %v1510_v61 = vadd.f32 %v1509_v62, %v1508_v60 }
 0x270   : > { %v1512_v5 = vsel %vm1511_vm1, %v1409_v54, %v1510_v61 }
 0x271   : > { %1514 = vst.msk [vmem:[%s235_s2] sm:$0x3] %vm1513_vm2, %v1512_v5 }
 0x272 PF: > { %s16_s18 = sadd.s32 1, %s1950_s18  }
 0x273   : > { %p13_p4 = scmp.ge.s32.totalorder %s16_s18, 4  }
 0x275   :  { %15 = sbr.rel (!%p13_p4) target bundleno = 1 (0x1), region = 80 }

// kernel: double_conv_forward.5
= control target key start
LH: loop header
LB: loop body
LE: loop exit
PB: predicated region body
PF: predicated region fallthrough
CT: control target
= control target key end

     0   :  { %s2564_s18 = smov 0   ;;  %s3722_s0 = inlined_call_operand.vmem [shape: bf16[2,16,16,32], index: 0, kind: input, shape index: {}]   ;;  %s3723_s1 = inlined_call_operand.vmem [shape: f32[1,32], index: 1, kind: input, shape index: {}]   ;;  %s3724_s2 = inlined_call_operand.vmem [shape: f32[1,32], index: 2, kind: input, shape index: {}]   ;;  %s3725_s3 = inlined_call_operand.vmem [shape: bf16[288,32], index: 3, kind: input, shape index: {}]   ;;  %s3726_s4 = inlined_call_operand.vmem [shape: bf16[2,16,16,32], index: 4, kind: output, shape index: {0}]   ;;  %s3727_s5 = inlined_call_operand.vmem [shape: f32[2,2,32], index: 5, kind: output, shape index: {1}]  }
   0x1 LB: > { %s2117_s19 = sadd.s32 4294967295, %s2528_s18   ;;  %p2121_p0 = scmp.ge.s32.totalorder %s2528_s18, 1  ;;  %s2528_s18 = sphi %s2564_s18, %s16_s18  }
   0x2   : > { %p190_p1 = scmp.lt.s32.totalorder %s2528_s18, 3 }
   0x4   : > { %p191_p2 = pnand %p2121_p0, %p190_p1 }
   0x5   : > { %p222_p3 = scmp.lt.s32.totalorder (!%p191_p2), %s2117_s19, 1  ;;  %v411_v0 = vlaneseq (!%p191_p2)  ;;  %v2504_v1 = vld [vmem:[%s3725_s3 + $0x40] sm:$0xff] (!%p191_p2)   ;;  %v2506_v6 = vld [vmem:[%s3725_s3 + $0x48] sm:$0xff] (!%p191_p2)   ;;  %vm661_vm3 = vcmask (!%p191_p2), 261120   ;;  %v2508_v33 = vld [vmem:[%s3725_s3 + $0x50] sm:$0xff] (!%p191_p2)   ;;  %s2530_s23 = smov (!%p191_p2), 96  }
   0x6   : > { %194 = sbr.rel (%p191_p2) target bundleno = 586 (0x24a), region = 36  ;;  %2310 = vmatprep.subr.bf16.mxu0 (!%p191_p2), %v2504_v1  ;;  %v2505_v3 = vld [vmem:[%s3725_s3] sm:$0xff] (!%p191_p2)   ;;  %2476 = vmatprep.subr.bf16.mxu1 (!%p191_p2), %v2504_v1  ;;  %v2507_v28 = vld [vmem:[%s3725_s3 + $0x8] sm:$0xff] (!%p191_p2)   ;;  %v2509_v38 = vld [vmem:[%s3725_s3 + $0x10] sm:$0xff] (!%p191_p2)   ;;  %s2531_s29 = smov (!%p191_p2), 32   ;;  %vm738_vm5 = vcmask (!%p191_p2), 523520  }
   0x7   : > { %v2577_v2 = vshrl.u32 (!%p191_p2), %v411_v0, 7  ;;  %v2586_v4 = vld [vmem:[%s3723_s1] ss:$0 sm:$0xff] (!%p191_p2)  ;;  %2311 = vmatpush3.bf16.msra.mxu0 (!%p191_p2), %v2505_v3  ;;  %2484 = vmatpush3.bf16.msra.mxu1 (!%p191_p2), %v2505_v3  ;;  %v2510_v43 = vld [vmem:[%s3725_s3 + $0x58] sm:$0xff] (!%p191_p2)   ;;  %s2532_s10 = smov (!%p191_p2), 64   ;;  %vm815_vm6 = vcmask (!%p191_p2), 785920  }
   0x8   : > { %2312 = vmatprep.subr.bf16.mxu0 (!%p191_p2), %v2506_v6  ;;  %2477 = vmatprep.subr.bf16.mxu1 (!%p191_p2), %v2506_v6  ;;  %v2611_v15 = vld [vmem:[%s3724_s2] ss:$0 sm:$0xff] (!%p191_p2)  ;;  %v2511_v56 = vld [vmem:[%s3725_s3 + $0x18] sm:$0xff] (!%p191_p2)   ;;  %vm896_vm7 = vcmask (!%p191_p2), 1048320   ;;  %vm1998_vm8 = vcmask (!%p191_p2), 257024   ;;  %vm1866_vm9 = vcmask (!%p191_p2), 1040384  }
   0x9   : > { %v2589_v5 = vadd.s32 (!%p191_p2), 8, %v2577_v2  ;;  %vm446_vm0 = vcmp.lt.s32.totalorder (!%p191_p2), %v2577_v2, 1  ;;  %vm577_vm1 = vcmp.lt.s32.totalorder (!%p191_p2), %v2577_v2, 7  ;;  %vm479_vm2 = vcmp.eq.s32.totalorder (!%p191_p2), %v2577_v2, 0  ;;  %v2512_v57 = vld [vmem:[%s3725_s3 + $0x60] sm:$0xff] (!%p191_p2)  }
   0xa   : > { %v3254_v2 = vld [vmem:[%s3725_s3 + $0x80] sm:$0xff] (!%p191_p2)   ;;  %vm1868_vm10 = vcmask (!%p191_p2), 254976  }
   0xb   : > { %vm611_vm4 = vcmp.eq.s32.totalorder (!%p191_p2), %v2589_v5, 15  ;;  %2313 = vmatpush3.bf16.msra.mxu0 (!%p191_p2), %v2507_v28  ;;  %2485 = vmatpush3.bf16.msra.mxu1 (!%p191_p2), %v2507_v28 }
   0xc   : > { %2314 = vmatprep.subr.bf16.mxu0 (!%p191_p2), %v2508_v33  ;;  %2478 = vmatprep.subr.bf16.mxu1 (!%p191_p2), %v2508_v33  ;;  %v2515_v33 = vld [vmem:[%s3725_s3 + $0x28] sm:$0xff] (!%p191_p2)  }
   0xd   : > { %s3729_s19 = smov (!%p222_p3, %s2117_s19), 1 }
   0xe   : > { %s2197_s24 = sshll.u32 %s3729_s19, 7 }
   0xf   : > { %s2599_s6 = scalar_lea.vmem %s3722_s0, %s2197_s24  ;;  %2315 = vmatpush3.bf16.msra.mxu0 %v2509_v38  ;;  %2486 = vmatpush3.bf16.msra.mxu1 %v2509_v38  ;;  %v2516_v38 = vld [vmem:[%s3725_s3 + $0x70] sm:$0xff]   ;;  %s3494_s25 = scalar_lea.vmem %s3726_s4, %s2197_s24 }
  0x10   : > { %v2296_v7 = vld [vmem:[%s2599_s6 + $0x10] sm:$0xff]   ;;  %v2295_v8 = vld [vmem:[%s2599_s6 + $0x8] sm:$0xff]   ;;  %v2232_v9 = vld [vmem:[%s2599_s6] sm:$0xff]   ;;  %2316 = vmatprep.subr.bf16.mxu0 %v2510_v43  ;;  %2479 = vmatprep.subr.bf16.mxu1 %v2510_v43  ;;  %s2126_s24 = sshll.u32 %s3729_s19, 1 }
  0x11   : > { %v2241_v10 = vunpack.c.l.bf16 %v2296_v7  ;;  %v2242_v11 = vunpack.c.h.bf16 %v2296_v7  ;;  %v2237_v12 = vunpack.c.l.bf16 %v2295_v8  ;;  %v2238_v13 = vunpack.c.h.bf16 %v2295_v8  ;;  %v2305_v14 = vld [vmem:[%s2599_s6 + $0x58] sm:$0xff]   ;;  %v2306_v55 = vld [vmem:[%s2599_s6 + $0x60] sm:$0xff]   ;;  %v2307_v8 = vld [vmem:[%s2599_s6 + $0x68] sm:$0xff]   ;;  %s235_s28 = scalar_lea.vmem %s3727_s5, %s2126_s24 }
  0x12   : > { %v2233_v16 = vunpack.c.l.bf16 %v2232_v9  ;;  %v2234_v17 = vunpack.c.h.bf16 %v2232_v9  ;;  %v2277_v18 = vunpack.c.l.bf16 %v2305_v14  ;;  %v2278_v19 = vunpack.c.h.bf16 %v2305_v14  ;;  %v2513_v9 = vld [vmem:[%s3725_s3 + $0x20] sm:$0xff]   ;;  %v2514_v14 = vld [vmem:[%s3725_s3 + $0x68] sm:$0xff]   ;;  %v2728_v28 = vld [vmem:[%s2599_s6 + $0x18] sm:$0xff]  }
  0x13   : > { %v312_v20 = vmul.f32 %v2241_v10, %v2586_v4  ;;  %v313_v21 = vmul.f32 %v2242_v11, %v2586_v4  ;;  %v310_v22 = vmul.f32 %v2237_v12, %v2586_v4  ;;  %v311_v23 = vmul.f32 %v2238_v13, %v2586_v4  ;;  %2317 = vmatpush3.bf16.msra.mxu0 %v2511_v56 }
  0x14   : > { %v308_v24 = vmul.f32 %v2233_v16, %v2586_v4  ;;  %v309_v25 = vmul.f32 %v2234_v17, %v2586_v4  ;;  %v330_v26 = vmul.f32 %v2277_v18, %v2586_v4  ;;  %v331_v27 = vmul.f32 %v2278_v19, %v2586_v4  ;;  %2318 = vmatprep.subr.bf16.mxu0 %v2512_v57 }
  0x15   : > { %v351_v29 = vadd.f32 %v2611_v15, %v312_v20  ;;  %v352_v30 = vadd.f32 %v2611_v15, %v313_v21  ;;  %v349_v31 = vadd.f32 %v2611_v15, %v310_v22  ;;  %v350_v32 = vadd.f32 %v2611_v15, %v311_v23  ;;  %2487 = vmatpush3.bf16.msra.mxu1 %v2511_v56  ;;  %v2517_v56 = vld [vmem:[%s3725_s3 + $0x30] sm:$0xff]  }
  0x16   : > { %v347_v34 = vadd.f32 %v2611_v15, %v308_v24  ;;  %v348_v35 = vadd.f32 %v2611_v15, %v309_v25  ;;  %v369_v36 = vadd.f32 %v2611_v15, %v330_v26  ;;  %v370_v37 = vadd.f32 %v2611_v15, %v331_v27  ;;  %2480 = vmatprep.subr.bf16.mxu1 %v2512_v57 }
  0x17   : > { %v2639_v39 = vmax.f32 %v351_v29, 0.0  ;;  %v2641_v40 = vmax.f32 %v352_v30, 0.0  ;;  %v381_v41 = vmax.f32 %v349_v31, 0.0  ;;  %v382_v42 = vmax.f32 %v350_v32, 0.0  ;;  %2319 = vmatpush3.bf16.msra.mxu0 %v2513_v9 }
  0x18   : > { %v379_v44 = vmax.f32 %v347_v34, 0.0  ;;  %v380_v45 = vmax.f32 %v348_v35, 0.0  ;;  %v2646_v46 = vmax.f32 %v369_v36, 0.0  ;;  %v2648_v47 = vmax.f32 %v370_v37, 0.0  ;;  %2320 = vmatprep.subr.bf16.mxu0 %v2514_v14 }
  0x19   : > { %v2652_v48 = vpack.c.bf16 %v2641_v40, %v2639_v39  ;;  %v2654_v49 = vpack.c.bf16 %v382_v42, %v381_v41  ;;  %v415_v50 = vrot.slane %v381_v41, 7  ;;  %v431_v51 = vrot.slane %v382_v42, 7  ;;  %2488 = vmatpush3.bf16.msra.mxu1 %v2513_v9 }
  0x1a   : > { %v545_v52 = vrot.slane %v379_v44, 1  ;;  %v561_v53 = vrot.slane %v380_v45, 1  ;;  %v529_v54 = vpack.c.bf16 %v380_v45, %v379_v44  ;;  %v2673_v60 = vpack.c.bf16 %v2648_v47, %v2646_v46  ;;  %2481 = vmatprep.subr.bf16.mxu1 %v2514_v14 }
  0x1b   : > { %1059 = vrot.lane.b32.xlu0 %v2652_v48, %s2530_s23  ;;  %1057 = vrot.lane.b32.xlu1 %v2654_v49, %s2530_s23  ;;  %v448_v58 = vsel %vm446_vm0, %v415_v50, %v431_v51  ;;  %v464_v59 = vsel %vm446_vm0, %v431_v51, %v415_v50  ;;  %914 = vst.msk [vmem:[#allocation2 + $0x20] sm:$0xff] %vm661_vm3, %v2654_v49  ;;  %915 = vst.msk [vmem:[#allocation2 + $0x38] sm:$0xff] %vm661_vm3, %v2652_v48  ;;  %v546_v0 = vrot.slane %v381_v41, 1 }
  0x1c   : > { %v578_v61 = vsel %vm577_vm1, %v545_v52, %v561_v53  ;;  %v594_v62 = vsel %vm577_vm1, %v561_v53, %v545_v52  ;;  %v483_v63 = vsel %vm479_vm2, 0.0, %v464_v59  ;;  %913 = vst.msk [vmem:[#allocation2 + $0x8] sm:$0xff] %vm661_vm3, %v529_v54  ;;  %v562_v6 = vrot.slane %v382_v42, 1  ;;  %924 = vst.msk [vmem:[#allocation2 + $0x110] sm:$0xff] %vm661_vm3, %v2673_v60  ;;  %2321 = vmatpush3.bf16.msra.mxu0 %v2515_v33 }
  0x1d   : > { %v613_v1 = vsel %vm611_vm4, 0.0, %v594_v62  ;;  %v2688_v3 = vpack.c.bf16 %v448_v58, %v483_v63  ;;  %v414_v7 = vrot.slane %v379_v44, 7  ;;  %v430_v11 = vrot.slane %v380_v45, 7  ;;  %2322 = vmatprep.subr.bf16.mxu0 %v2516_v38  ;;  %2489 = vmatpush3.bf16.msra.mxu1 %v2515_v33 }
  0x1e   : > { %v2696_v10 = vpack.c.bf16 %v613_v1, %v578_v61  ;;  %v416_v12 = vrot.slane %v2639_v39, 7  ;;  %v432_v13 = vrot.slane %v2641_v40, 7  ;;  %v579_v16 = vsel %vm577_vm1, %v546_v0, %v562_v6  ;;  %v2518_v61 = vld [vmem:[%s3725_s3 + $0x78] sm:$0xff]   ;;  %2482 = vmatprep.subr.bf16.mxu1 %v2516_v38 }
  0x1f   : > { %693 = vrot.lane.b32.xlu1 %v529_v54, %s2531_s29  ;;  %v595_v17 = vsel %vm577_vm1, %v562_v6, %v546_v0  ;;  %663 = vst.msk [vmem:[#allocation2 + $0x30] sm:$0xff] %vm661_vm3, %v2688_v3  ;;  %v2281_v18 = vunpack.c.l.bf16 %v2306_v55  ;;  %v2282_v19 = vunpack.c.h.bf16 %v2306_v55  ;;  %v447_v21 = vsel %vm446_vm0, %v414_v7, %v430_v11 }
  0x20   : > { %930 = vrot.lane.b32.xlu0 %v2696_v10, %s2531_s29  ;;  %v615_v20 = vsel %vm611_vm4, 0.0, %v595_v17  ;;  %v463_v22 = vsel %vm446_vm0, %v430_v11, %v414_v7  ;;  %v449_v23 = vsel %vm446_vm0, %v416_v12, %v432_v13  ;;  %v465_v26 = vsel %vm446_vm0, %v432_v13, %v416_v12  ;;  %2323 = vmatpush3.bf16.msra.mxu0 %v2517_v56 }
  0x21   : > { %v2720_v24 = vpack.c.bf16 %v615_v20, %v579_v16  ;;  %v481_v25 = vsel %vm479_vm2, 0.0, %v463_v22  ;;  %v332_v27 = vmul.f32 %v2281_v18, %v2586_v4  ;;  %v485_v30 = vsel %vm479_vm2, 0.0, %v465_v26  ;;  %v2519_v16 = vld [vmem:[%s3725_s3 + $0x38] sm:$0xff]   ;;  %2324 = vmatprep.subr.bf16.mxu0 %v2518_v61  ;;  %2490 = vmatpush3.bf16.msra.mxu1 %v2517_v56 }
  0x22   : > { %v513_v29 = vpack.c.bf16 %v447_v21, %v481_v25  ;;  %v333_v31 = vmul.f32 %v2282_v19, %v2586_v4  ;;  %v2285_v32 = vunpack.c.l.bf16 %v2307_v8  ;;  %v2740_v34 = vpack.c.bf16 %v449_v23, %v485_v30  ;;  %v2308_v25 = vld [vmem:[%s2599_s6 + $0x70] sm:$0xff]   ;;  %2483 = vmatprep.subr.bf16.mxu1 %v2518_v61  ;;  %v2309_v56 = vld [vmem:[%s2599_s6 + $0x78] sm:$0xff]  }
  0x23   : > { %715 = vrot.lane.b32.xlu1 %v2673_v60, %s2531_s29  ;;  %1118 = vst.msk [vmem:[#allocation2 + $0x10] sm:$0xff] %vm661_vm3, %v2720_v24  ;;  %v371_v35 = vadd.f32 %v2611_v15, %v332_v27  ;;  %v2286_v36 = vunpack.c.h.bf16 %v2307_v8  ;;  %v556_v37 = vrot.slane %v2646_v46, 1  ;;  %v572_v43 = vrot.slane %v2648_v47, 1 }
  0x24   : > { %994 = vrot.lane.b32.xlu0 %v2688_v3, %s2532_s10  ;;  %662 = vst.msk [vmem:[#allocation2 + $0x18] sm:$0xff] %vm661_vm3, %v513_v29  ;;  %v372_v41 = vadd.f32 %v2611_v15, %v333_v31  ;;  %v334_v42 = vmul.f32 %v2285_v32, %v2586_v4  ;;  %v547_v44 = vrot.slane %v2639_v39, 1  ;;  %664 = vst.msk [vmem:[#allocation2 + $0x48] sm:$0xff] %vm661_vm3, %v2740_v34  ;;  %v563_v51 = vrot.slane %v2641_v40, 1  ;;  %v2298_v31 = vld [vmem:[%s2599_s6 + $0x20] sm:$0xff]  }
  0x25   : > { %v2756_v45 = vmax.f32 %v371_v35, 0.0  ;;  %v335_v50 = vmul.f32 %v2286_v36, %v2586_v4  ;;  %v2245_v52 = vunpack.c.l.bf16 %v2728_v28  ;;  %v589_v55 = vsel %vm577_vm1, %v556_v37, %v572_v43  ;;  %2325 = vmatpush3.bf16.msra.mxu0 %v2519_v16  ;;  %2491 = vmatpush3.bf16.msra.mxu1 %v2519_v16 }
  0x26   : > { %v404_v53 = vmax.f32 %v372_v41, 0.0  ;;  %v373_v54 = vadd.f32 %v2611_v15, %v334_v42  ;;  %v605_v39 = vsel %vm577_vm1, %v572_v43, %v556_v37  ;;  %v580_v59 = vsel %vm577_vm1, %v547_v44, %v563_v51  ;;  %2440 = vmatprep.subr.bf16.mxu1 %v3254_v2 }
  0x27   : > { %848 = vrot.lane.b32.xlu1 %v513_v29, %s2530_s23  ;;  %v557_v40 = vrot.slane %v2756_v45, 1  ;;  %v374_v57 = vadd.f32 %v2611_v15, %v335_v50  ;;  %v635_v58 = vsel %vm611_vm4, 0.0, %v605_v39  ;;  %v596_v1 = vsel %vm577_vm1, %v563_v51, %v547_v44 }
  0x28   : > { %932 = vrot.lane.b32.xlu0 %v2720_v24, %s2531_s29  ;;  %v573_v62 = vrot.slane %v404_v53, 1  ;;  %v405_v63 = vmax.f32 %v373_v54, 0.0  ;;  %v2781_v0 = vpack.c.bf16 %v635_v58, %v589_v55  ;;  %v617_v7 = vsel %vm611_vm4, 0.0, %v596_v1 }
  0x29   : > { %v406_v6 = vmax.f32 %v374_v57, 0.0  ;;  %v426_v8 = vrot.slane %v2756_v45, 7  ;;  %v442_v9 = vrot.slane %v404_v53, 7  ;;  %v2794_v14 = vpack.c.bf16 %v617_v7, %v580_v59 }
  0x2a   : > { %v590_v11 = vsel %vm577_vm1, %v557_v40, %v573_v62  ;;  %v606_v12 = vsel %vm577_vm1, %v573_v62, %v557_v40  ;;  %v427_v13 = vrot.slane %v405_v63, 7  ;;  %1128 = vst.msk [vmem:[#allocation2 + $0x100] sm:$0xff] %vm661_vm3, %v2781_v0  ;;  %v2246_v22 = vunpack.c.h.bf16 %v2728_v28 }
  0x2b   : > { %770 = vrot.lane.b32.xlu1 %v2696_v10, %s2532_s10  ;;  %v637_v17 = vsel %vm611_vm4, 0.0, %v606_v12  ;;  %v443_v18 = vrot.slane %v406_v6, 7  ;;  %v2803_v19 = vpack.c.bf16 %v406_v6, %v405_v63  ;;  %v459_v20 = vsel %vm446_vm0, %v426_v8, %v442_v9  ;;  %1119 = vst.msk [vmem:[#allocation2 + $0x28] sm:$0xff] %vm661_vm3, %v2794_v14 }
  0x2c   : > { %996 = vrot.lane.b32.xlu0 %v2740_v34, %s2532_s10  ;;  %v2809_v21 = vpack.c.bf16 %v637_v17, %v590_v11  ;;  %v475_v10 = vsel %vm446_vm0, %v442_v9, %v426_v8  ;;  %v314_v23 = vmul.f32 %v2245_v52, %v2586_v4  ;;  %v558_v30 = vrot.slane %v405_v63, 1 }
  0x2d   : > { %v460_v26 = vsel %vm446_vm0, %v427_v13, %v443_v18  ;;  %v476_v27 = vsel %vm446_vm0, %v443_v18, %v427_v13  ;;  %926 = vst.msk [vmem:[#allocation2 + $0x140] sm:$0xff] %vm661_vm3, %v2803_v19  ;;  %v505_v29 = vsel %vm479_vm2, 0.0, %v475_v10  ;;  %v315_v33 = vmul.f32 %v2246_v22, %v2586_v4 }
  0x2e   : > { %1129 = vst.msk [vmem:[#allocation2 + $0x118] sm:$0xff] %vm661_vm3, %v2809_v21  ;;  %v507_v28 = vsel %vm479_vm2, 0.0, %v476_v27  ;;  %v2831_v32 = vpack.c.bf16 %v459_v20, %v505_v29  ;;  %v353_v35 = vadd.f32 %v2611_v15, %v314_v23  ;;  %v574_v37 = vrot.slane %v406_v6, 1 }
  0x2f   : > { %850 = vrot.lane.b32.xlu1 %v2688_v3, %s2530_s23  ;;  %v2837_v36 = vpack.c.bf16 %v460_v26, %v507_v28  ;;  %v2840_v38 = vpack.c.bf16 %v404_v53, %v2756_v45  ;;  %v2289_v41 = vunpack.c.l.bf16 %v2308_v25  ;;  %v354_v42 = vadd.f32 %v2611_v15, %v315_v33 }
  0x30   : > { %954 = vrot.lane.b32.xlu0 %v2809_v21, %s2531_s29  ;;  %674 = vst.msk [vmem:[#allocation2 + $0x138] sm:$0xff] %vm661_vm3, %v2831_v32  ;;  %v385_v43 = vmax.f32 %v353_v35, 0.0  ;;  %v2290_v44 = vunpack.c.h.bf16 %v2308_v25  ;;  %v2249_v50 = vunpack.c.l.bf16 %v2298_v31  ;;  %v591_v3 = vsel %vm577_vm1, %v558_v30, %v574_v37 }
  0x31   : > { %675 = vst.msk [vmem:[#allocation2 + $0x150] sm:$0xff] %vm661_vm3, %v2837_v36  ;;  %v607_v45 = vsel %vm577_vm1, %v574_v37, %v558_v30  ;;  %925 = vst.msk [vmem:[#allocation2 + $0x128] sm:$0xff] %vm661_vm3, %v2840_v38  ;;  %v336_v51 = vmul.f32 %v2289_v41, %v2586_v4  ;;  %v2250_v52 = vunpack.c.h.bf16 %v2298_v31  ;;  %v386_v53 = vmax.f32 %v354_v42, 0.0 }
  0x32   : > { %v417_v54 = vrot.slane %v385_v43, 7  ;;  %v639_v55 = vsel %vm611_vm4, 0.0, %v607_v45  ;;  %v337_v39 = vmul.f32 %v2290_v44, %v2586_v4  ;;  %v548_v58 = vrot.slane %v385_v43, 1 }
  0x33   : > { %792 = vrot.lane.b32.xlu1 %v2781_v0, %s2532_s10  ;;  %v2862_v40 = vpack.c.bf16 %v639_v55, %v591_v3  ;;  %v375_v57 = vadd.f32 %v2611_v15, %v336_v51  ;;  %v316_v59 = vmul.f32 %v2249_v50, %v2586_v4  ;;  %v433_v61 = vrot.slane %v386_v53, 7 }
  0x34   : > { %1018 = vrot.lane.b32.xlu0 %v2837_v36, %s2532_s10  ;;  %v2868_v62 = vpack.c.bf16 %v386_v53, %v385_v43  ;;  %v376_v63 = vadd.f32 %v2611_v15, %v337_v39  ;;  %v564_v1 = vrot.slane %v386_v53, 1  ;;  %v317_v7 = vmul.f32 %v2250_v52, %v2586_v4  ;;  %v2299_v52 = vld [vmem:[%s2599_s6 + $0x28] sm:$0xff]   ;;  %v2300_v39 = vld [vmem:[%s2599_s6 + $0x30] sm:$0xff]  }
  0x35   : > { %1130 = vst.msk [vmem:[#allocation2 + $0x130] sm:$0xff] %vm661_vm3, %v2862_v40  ;;  %v407_v6 = vmax.f32 %v375_v57, 0.0  ;;  %v355_v8 = vadd.f32 %v2611_v15, %v316_v59  ;;  %v2293_v9 = vunpack.c.l.bf16 %v2309_v56  ;;  %v450_v11 = vsel %vm446_vm0, %v417_v54, %v433_v61 }
  0x36   : > { %v466_v12 = vsel %vm446_vm0, %v433_v61, %v417_v54  ;;  %916 = vst.msk [vmem:[#allocation2 + $0x50] sm:$0xff] %vm661_vm3, %v2868_v62  ;;  %v408_v13 = vmax.f32 %v376_v63, 0.0  ;;  %v581_v16 = vsel %vm577_vm1, %v548_v58, %v564_v1  ;;  %v597_v20 = vsel %vm577_vm1, %v564_v1, %v548_v58 }
  0x37   : > { %1081 = vrot.lane.b32.xlu1 %v2803_v19, %s2530_s23  ;;  %v487_v17 = vsel %vm479_vm2, 0.0, %v466_v12  ;;  %v428_v18 = vrot.slane %v407_v6, 7  ;;  %v356_v10 = vadd.f32 %v2611_v15, %v317_v7  ;;  %v619_v25 = vsel %vm611_vm4, 0.0, %v597_v20 }
  0x38   : > { %934 = vrot.lane.b32.xlu0 %v2794_v14, %s2531_s29  ;;  %v2892_v22 = vpack.c.bf16 %v450_v11, %v487_v17  ;;  %v444_v23 = vrot.slane %v408_v13, 7  ;;  %v2896_v26 = vpack.c.bf16 %v408_v13, %v407_v6  ;;  %v2898_v27 = vpack.c.bf16 %v619_v25, %v581_v16 }
  0x39   : > { %v387_v29 = vmax.f32 %v355_v8, 0.0  ;;  %v388_v30 = vmax.f32 %v356_v10, 0.0  ;;  %v559_v31 = vrot.slane %v407_v6, 1  ;;  %v575_v35 = vrot.slane %v408_v13, 1 }
  0x3a   : > { %665 = vst.msk [vmem:[#allocation2 + $0x60] sm:$0xff] %vm661_vm3, %v2892_v22  ;;  %v461_v28 = vsel %vm446_vm0, %v428_v18, %v444_v23  ;;  %v477_v33 = vsel %vm446_vm0, %v444_v23, %v428_v18  ;;  %927 = vst.msk [vmem:[#allocation2 + $0x158] sm:$0xff] %vm661_vm3, %v2896_v26  ;;  %v2294_v37 = vunpack.c.h.bf16 %v2309_v56  ;;  %v338_v51 = vmul.f32 %v2293_v9, %v2586_v4  ;;  %v2301_v23 = vld [vmem:[%s2599_s6 + $0x38] sm:$0xff]  }
  0x3b   : > { %872 = vrot.lane.b32.xlu1 %v2831_v32, %s2530_s23  ;;  %v509_v41 = vsel %vm479_vm2, 0.0, %v477_v33  ;;  %1120 = vst.msk [vmem:[#allocation2 + $0x40] sm:$0xff] %vm661_vm3, %v2898_v27  ;;  %v418_v42 = vrot.slane %v387_v29, 7  ;;  %v434_v43 = vrot.slane %v388_v30, 7  ;;  %v2914_v44 = vpack.c.bf16 %v388_v30, %v387_v29 }
  0x3c   : > { %695 = vrot.lane.b32.xlu0 %v2654_v49, %s2531_s29  ;;  %v2918_v50 = vpack.c.bf16 %v461_v28, %v509_v41  ;;  %v592_v3 = vsel %vm577_vm1, %v559_v31, %v575_v35  ;;  %v608_v45 = vsel %vm577_vm1, %v575_v35, %v559_v31  ;;  %v339_v55 = vmul.f32 %v2294_v37, %v2586_v4 }
  0x3d   : > { %v451_v53 = vsel %vm446_vm0, %v418_v42, %v434_v43  ;;  %v467_v54 = vsel %vm446_vm0, %v434_v43, %v418_v42  ;;  %917 = vst.msk [vmem:[#allocation2 + $0x68] sm:$0xff] %vm661_vm3, %v2914_v44  ;;  %v641_v49 = vsel %vm611_vm4, 0.0, %v608_v45  ;;  %v377_v58 = vadd.f32 %v2611_v15, %v338_v51 }
  0x3e   : > { %676 = vst.msk [vmem:[#allocation2 + $0x168] sm:$0xff] %vm661_vm3, %v2918_v50  ;;  %v489_v56 = vsel %vm479_vm2, 0.0, %v467_v54  ;;  %v2940_v57 = vpack.c.bf16 %v641_v49, %v592_v3  ;;  %v549_v59 = vrot.slane %v387_v29, 1  ;;  %v378_v63 = vadd.f32 %v2611_v15, %v339_v55 }
  0x3f   : > { %772 = vrot.lane.b32.xlu1 %v2720_v24, %s2532_s10  ;;  %v2945_v61 = vpack.c.bf16 %v451_v53, %v489_v56  ;;  %v565_v1 = vrot.slane %v388_v30, 1  ;;  %v2253_v6 = vunpack.c.l.bf16 %v2299_v52  ;;  %v2952_v7 = vmax.f32 %v377_v58, 0.0 }
  0x40   : > { %998 = vrot.lane.b32.xlu0 %v2892_v22, %s2532_s10  ;;  %1131 = vst.msk [vmem:[#allocation2 + $0x148] sm:$0xff] %vm661_vm3, %v2940_v57  ;;  %v2254_v8 = vunpack.c.h.bf16 %v2299_v52  ;;  %v2257_v9 = vunpack.c.l.bf16 %v2300_v39  ;;  %v2258_v11 = vunpack.c.h.bf16 %v2300_v39  ;;  %v2956_v24 = vmax.f32 %v378_v63, 0.0 }
  0x41   : > { %666 = vst.msk [vmem:[#allocation2 + $0x78] sm:$0xff] %vm661_vm3, %v2945_v61  ;;  %v582_v12 = vsel %vm577_vm1, %v549_v59, %v565_v1  ;;  %v598_v13 = vsel %vm577_vm1, %v565_v1, %v549_v59  ;;  %v318_v16 = vmul.f32 %v2253_v6, %v2586_v4  ;;  %v429_v17 = vrot.slane %v2952_v7, 7 }
  0x42   : > { %v621_v18 = vsel %vm611_vm4, 0.0, %v598_v13  ;;  %v319_v20 = vmul.f32 %v2254_v8, %v2586_v4  ;;  %v560_v10 = vrot.slane %v2952_v7, 1  ;;  %v445_v25 = vrot.slane %v2956_v24, 7 }
  0x43   : > { %852 = vrot.lane.b32.xlu1 %v2740_v34, %s2530_s23  ;;  %v2972_v29 = vpack.c.bf16 %v621_v18, %v582_v12  ;;  %v2976_v30 = vpack.c.bf16 %v2956_v24, %v2952_v7  ;;  %v357_v31 = vadd.f32 %v2611_v15, %v318_v16  ;;  %v425_v28 = vrot.slane %v2646_v46, 7 }
  0x44   : > { %1061 = vrot.lane.b32.xlu0 %v2868_v62, %s2530_s23  ;;  %v358_v33 = vadd.f32 %v2611_v15, %v319_v20  ;;  %v576_v35 = vrot.slane %v2956_v24, 1  ;;  %v320_v37 = vmul.f32 %v2257_v9, %v2586_v4  ;;  %v321_v41 = vmul.f32 %v2258_v11, %v2586_v4 }
  0x45   : > { %1121 = vst.msk [vmem:[#allocation2 + $0x58] sm:$0xff] %vm661_vm3, %v2972_v29  ;;  %928 = vst.msk [vmem:[#allocation2 + $0x170] sm:$0xff] %vm661_vm3, %v2976_v30  ;;  %v389_v34 = vmax.f32 %v357_v31, 0.0  ;;  %v2261_v42 = vunpack.c.l.bf16 %v2301_v23  ;;  %v441_v43 = vrot.slane %v2648_v47, 7  ;;  %v2999_v52 = vsel %vm446_vm0, %v429_v17, %v445_v25 }
  0x46   : > { %v390_v3 = vmax.f32 %v358_v33, 0.0  ;;  %v593_v45 = vsel %vm577_vm1, %v560_v10, %v576_v35  ;;  %v609_v51 = vsel %vm577_vm1, %v576_v35, %v560_v10  ;;  %v359_v58 = vadd.f32 %v2611_v15, %v320_v37 }
  0x47   : > { %717 = vrot.lane.b32.xlu1 %v2840_v38, %s2531_s29  ;;  %v419_v53 = vrot.slane %v389_v34, 7  ;;  %v643_v54 = vsel %vm611_vm4, 0.0, %v609_v51  ;;  %v550_v49 = vrot.slane %v389_v34, 1  ;;  %v360_v59 = vadd.f32 %v2611_v15, %v321_v41 }
  0x48   : > { %956 = vrot.lane.b32.xlu0 %v2862_v40, %s2531_s29  ;;  %v435_v47 = vrot.slane %v390_v3, 7  ;;  %v3005_v55 = vpack.c.bf16 %v390_v3, %v389_v34  ;;  %v3007_v39 = vpack.c.bf16 %v643_v54, %v593_v45  ;;  %v566_v56 = vrot.slane %v390_v3, 1 }
  0x49   : > { %v2262_v63 = vunpack.c.h.bf16 %v2301_v23  ;;  %v322_v1 = vmul.f32 %v2261_v42, %v2586_v4  ;;  %v391_v12 = vmax.f32 %v359_v58, 0.0  ;;  %v392_v13 = vmax.f32 %v360_v59, 0.0  ;;  %v2302_v58 = vld [vmem:[%s2599_s6 + $0x40] sm:$0xff]  }
  0x4a   : > { %v452_v6 = vsel %vm446_vm0, %v419_v53, %v435_v47  ;;  %v468_v7 = vsel %vm446_vm0, %v435_v47, %v419_v53  ;;  %918 = vst.msk [vmem:[#allocation2 + $0x80] sm:$0xff] %vm661_vm3, %v3005_v55  ;;  %1132 = vst.msk [vmem:[#allocation2 + $0x160] sm:$0xff] %vm661_vm3, %v3007_v39  ;;  %v583_v8 = vsel %vm577_vm1, %v550_v49, %v566_v56 }
  0x4b   : > { %v599_v9 = vsel %vm577_vm1, %v566_v56, %v550_v49  ;;  %794 = vrot.lane.b32.xlu1 %v2809_v21, %s2532_s10  ;;  %v491_v11 = vsel %vm479_vm2, 0.0, %v468_v7  ;;  %v323_v20 = vmul.f32 %v2262_v63, %v2586_v4  ;;  %v361_v10 = vadd.f32 %v2611_v15, %v322_v1  ;;  %v2303_v7 = vld [vmem:[%s2599_s6 + $0x48] sm:$0xff]  }
  0x4c   : > { %v623_v24 = vsel %vm611_vm4, 0.0, %v599_v9  ;;  %1020 = vrot.lane.b32.xlu0 %v2918_v50, %s2532_s10  ;;  %v3032_v16 = vpack.c.bf16 %v452_v6, %v491_v11  ;;  %v420_v21 = vrot.slane %v391_v12, 7  ;;  %v436_v23 = vrot.slane %v392_v13, 7 }
  0x4d   : > { %v3034_v18 = vpack.c.bf16 %v623_v24, %v583_v8  ;;  %v3038_v31 = vpack.c.bf16 %v392_v13, %v391_v12  ;;  %v551_v33 = vrot.slane %v391_v12, 1  ;;  %v478_v35 = vsel %vm446_vm0, %v445_v25, %v429_v17  ;;  %v2304_v24 = vld [vmem:[%s2599_s6 + $0x50] sm:$0xff]  }
  0x4e   : > { %667 = vst.msk [vmem:[#allocation2 + $0x90] sm:$0xff] %vm661_vm3, %v3032_v16  ;;  %v567_v34 = vrot.slane %v392_v13, 1  ;;  %v362_v37 = vadd.f32 %v2611_v15, %v323_v20  ;;  %v393_v41 = vmax.f32 %v361_v10, 0.0  ;;  %v453_v42 = vsel %vm446_vm0, %v420_v21, %v436_v23 }
  0x4f   : > { %1122 = vst.msk [vmem:[#allocation2 + $0x70] sm:$0xff] %vm661_vm3, %v3034_v18  ;;  %1083 = vrot.lane.b32.xlu1 %v2896_v26, %s2530_s23  ;;  %v469_v17 = vsel %vm446_vm0, %v436_v23, %v420_v21  ;;  %919 = vst.msk [vmem:[#allocation2 + $0x98] sm:$0xff] %vm661_vm3, %v3038_v31  ;;  %v458_v25 = vsel %vm446_vm0, %v425_v28, %v441_v43  ;;  %v474_v56 = vsel %vm446_vm0, %v441_v43, %v425_v28 }
  0x50   : > { %936 = vrot.lane.b32.xlu0 %v2898_v27, %s2531_s29  ;;  %v493_v3 = vsel %vm479_vm2, 0.0, %v469_v17  ;;  %v584_v45 = vsel %vm577_vm1, %v551_v33, %v567_v34  ;;  %v600_v51 = vsel %vm577_vm1, %v567_v34, %v551_v33  ;;  %v394_v53 = vmax.f32 %v362_v37, 0.0 }
  0x51   : > { %v3067_v54 = vpack.c.bf16 %v453_v42, %v493_v3  ;;  %v625_v49 = vsel %vm611_vm4, 0.0, %v600_v51  ;;  %v421_v47 = vrot.slane %v393_v41, 7  ;;  %v503_v6 = vsel %vm479_vm2, 0.0, %v474_v56 }
  0x52   : > { %v3076_v59 = vpack.c.bf16 %v625_v49, %v584_v45  ;;  %v437_v63 = vrot.slane %v394_v53, 7  ;;  %v3078_v1 = vpack.c.bf16 %v394_v53, %v393_v41  ;;  %v3087_v46 = vpack.c.bf16 %v458_v25, %v503_v6 }
  0x53   : > { %874 = vrot.lane.b32.xlu1 %v2837_v36, %s2530_s23  ;;  %668 = vst.msk [vmem:[#allocation2 + $0xa8] sm:$0xff] %vm661_vm3, %v3067_v54  ;;  %v552_v28 = vrot.slane %v393_v41, 1  ;;  %v568_v43 = vrot.slane %v394_v53, 1  ;;  %v2533_v36 = vmov 0   ;;  %v2266_v11 = vunpack.c.h.bf16 %v2302_v58 }
  0x54   : > { %697 = vrot.lane.b32.xlu0 %v2652_v48, %s2531_s29  ;;  %1123 = vst.msk [vmem:[#allocation2 + $0x88] sm:$0xff] %vm661_vm3, %v3076_v59  ;;  %v454_v8 = vsel %vm446_vm0, %v421_v47, %v437_v63  ;;  %v470_v9 = vsel %vm446_vm0, %v437_v63, %v421_v47  ;;  %920 = vst.msk [vmem:[#allocation2 + $0xb0] sm:$0xff] %vm661_vm3, %v3078_v1  ;;  %v2265_v48 = vunpack.c.l.bf16 %v2302_v58  ;;  %v2269_v10 = vunpack.c.l.bf16 %v2303_v7 }
  0x55   : > { %677 = vst.msk [vmem:[#allocation2] sm:$0xff] %vm661_vm3, %v2533_v36  ;;  %1133 = vst.msk [vmem:[#allocation2 + $0x178] sm:$0xff] %vm661_vm3, %v2533_v36  ;;  %v495_v12 = vsel %vm479_vm2, 0.0, %v470_v9  ;;  %v585_v13 = vsel %vm577_vm1, %v552_v28, %v568_v43  ;;  %v601_v20 = vsel %vm577_vm1, %v568_v43, %v552_v28  ;;  %v325_v34 = vmul.f32 %v2266_v11, %v2586_v4 }
  0x56   : > { %673 = vst.msk [vmem:[#allocation2 + $0x120] sm:$0xff] %vm661_vm3, %v3087_v46  ;;  %v3114_v21 = vpack.c.bf16 %v454_v8, %v495_v12  ;;  %v627_v23 = vsel %vm611_vm4, 0.0, %v601_v20  ;;  %v324_v33 = vmul.f32 %v2265_v48, %v2586_v4  ;;  %v2270_v41 = vunpack.c.h.bf16 %v2303_v7 }
  0x57   : > { %754 = vst.msk [vmem:[#allocation2] sm:$0xff] %vm738_vm5, %v2533_v36  ;;  %774 = vrot.lane.b32.xlu1 %v2794_v14, %s2532_s10  ;;  %v3124_v37 = vpack.c.bf16 %v627_v23, %v585_v13  ;;  %v326_v42 = vmul.f32 %v2269_v10, %v2586_v4  ;;  %v2273_v17 = vunpack.c.l.bf16 %v2304_v24  ;;  %v511_v25 = vsel %vm479_vm2, 0.0, %v478_v35 }
  0x58   : > { %831 = vst.msk [vmem:[#allocation2] sm:$0xff] %vm815_vm6, %v2533_v36  ;;  %1000 = vrot.lane.b32.xlu0 %v2945_v61, %s2532_s10  ;;  %v363_v3 = vadd.f32 %v2611_v15, %v324_v33  ;;  %v364_v45 = vadd.f32 %v2611_v15, %v325_v34  ;;  %v2274_v14 = vunpack.c.h.bf16 %v2304_v24  ;;  %v327_v51 = vmul.f32 %v2270_v41, %v2586_v4 }
  0x59   : > { %669 = vst.msk [vmem:[#allocation2 + $0xc0] sm:$0xff] %vm661_vm3, %v3114_v21  ;;  %1124 = vst.msk [vmem:[#allocation2 + $0xa0] sm:$0xff] %vm661_vm3, %v3124_v37  ;;  %v365_v53 = vadd.f32 %v2611_v15, %v326_v42  ;;  %v328_v49 = vmul.f32 %v2273_v17, %v2586_v4  ;;  %v3144_v58 = vpack.c.bf16 %v2999_v52, %v511_v25 }
  0x5a   : > { %v395_v47 = vmax.f32 %v363_v3, 0.0  ;;  %v396_v56 = vmax.f32 %v364_v45, 0.0  ;;  %v329_v35 = vmul.f32 %v2274_v14, %v2586_v4  ;;  %v366_v63 = vadd.f32 %v2611_v15, %v327_v51 }
  0x5b   : > { %854 = vrot.lane.b32.xlu1 %v2892_v22, %s2530_s23  ;;  %v397_v6 = vmax.f32 %v365_v53, 0.0  ;;  %v367_v7 = vadd.f32 %v2611_v15, %v328_v49 }
  0x5c   : > { %1063 = vrot.lane.b32.xlu0 %v2914_v44, %s2530_s23  ;;  %v422_v28 = vrot.slane %v395_v47, 7  ;;  %v438_v43 = vrot.slane %v396_v56, 7  ;;  %v3150_v8 = vpack.c.bf16 %v396_v56, %v395_v47  ;;  %v553_v9 = vrot.slane %v395_v47, 1 }
  0x5d   : > { %v569_v4 = vrot.slane %v396_v56, 1  ;;  %v398_v48 = vmax.f32 %v366_v63, 0.0  ;;  %v423_v11 = vrot.slane %v397_v6, 7  ;;  %v554_v22 = vrot.slane %v397_v6, 1 }
  0x5e   : > { %v455_v52 = vsel %vm446_vm0, %v422_v28, %v438_v43  ;;  %v471_v24 = vsel %vm446_vm0, %v438_v43, %v422_v28  ;;  %921 = vst.msk [vmem:[#allocation2 + $0xc8] sm:$0xff] %vm661_vm3, %v3150_v8  ;;  %v368_v12 = vadd.f32 %v2611_v15, %v329_v35  ;;  %v399_v13 = vmax.f32 %v367_v7, 0.0 }
  0x5f   : > { %719 = vrot.lane.b32.xlu1 %v2803_v19, %s2531_s29  ;;  %v497_v20 = vsel %vm479_vm2, 0.0, %v471_v24  ;;  %v586_v10 = vsel %vm577_vm1, %v553_v9, %v569_v4  ;;  %v602_v23 = vsel %vm577_vm1, %v569_v4, %v553_v9  ;;  %v439_v33 = vrot.slane %v398_v48, 7 }
  0x60   : > { %958 = vrot.lane.b32.xlu0 %v2940_v57, %s2531_s29  ;;  %v3169_v34 = vpack.c.bf16 %v455_v52, %v497_v20  ;;  %v629_v15 = vsel %vm611_vm4, 0.0, %v602_v23  ;;  %v3173_v41 = vpack.c.bf16 %v398_v48, %v397_v6  ;;  %v570_v19 = vrot.slane %v398_v48, 1 }
  0x61   : > { %v3175_v42 = vpack.c.bf16 %v629_v15, %v586_v10  ;;  %v456_v17 = vsel %vm446_vm0, %v423_v11, %v439_v33  ;;  %v472_v25 = vsel %vm446_vm0, %v439_v33, %v423_v11  ;;  %v400_v3 = vmax.f32 %v368_v12, 0.0 }
  0x62   : > { %670 = vst.msk [vmem:[#allocation2 + $0xd8] sm:$0xff] %vm661_vm3, %v3169_v34  ;;  %v499_v45 = vsel %vm479_vm2, 0.0, %v472_v25  ;;  %922 = vst.msk [vmem:[#allocation2 + $0xe0] sm:$0xff] %vm661_vm3, %v3173_v41  ;;  %v587_v14 = vsel %vm577_vm1, %v554_v22, %v570_v19  ;;  %v603_v51 = vsel %vm577_vm1, %v570_v19, %v554_v22  ;;  %v424_v53 = vrot.slane %v399_v13, 7 }
  0x63   : > { %796 = vrot.lane.b32.xlu1 %v2862_v40, %s2532_s10  ;;  %1125 = vst.msk [vmem:[#allocation2 + $0xb8] sm:$0xff] %vm661_vm3, %v3175_v42  ;;  %v3195_v49 = vpack.c.bf16 %v456_v17, %v499_v45  ;;  %v631_v47 = vsel %vm611_vm4, 0.0, %v603_v51  ;;  %v440_v56 = vrot.slane %v400_v3, 7  ;;  %v3199_v35 = vpack.c.bf16 %v400_v3, %v399_v13 }
  0x64   : > { %1022 = vrot.lane.b32.xlu0 %v3144_v58, %s2532_s10  ;;  %v3203_v63 = vpack.c.bf16 %v631_v47, %v587_v14  ;;  %v555_v6 = vrot.slane %v399_v13, 1  ;;  %v571_v7 = vrot.slane %v400_v3, 1 }
  0x65   : > { %671 = vst.msk [vmem:[#allocation2 + $0xf0] sm:$0xff] %vm661_vm3, %v3195_v49  ;;  %v457_v40 = vsel %vm446_vm0, %v424_v53, %v440_v56  ;;  %v473_v28 = vsel %vm446_vm0, %v440_v56, %v424_v53  ;;  %923 = vst.msk [vmem:[#allocation2 + $0xf8] sm:$0xff] %vm661_vm3, %v3199_v35 }
  0x66   : > { %1126 = vst.msk [vmem:[#allocation2 + $0xd0] sm:$0xff] %vm661_vm3, %v3203_v63  ;;  %v501_v43 = vsel %vm479_vm2, 0.0, %v473_v28  ;;  %v588_v9 = vsel %vm577_vm1, %v555_v6, %v571_v7  ;;  %v604_v4 = vsel %vm577_vm1, %v571_v7, %v555_v6 }
  0x67   : > { %1085 = vrot.lane.b32.xlu1 %v2976_v30, %s2530_s23  ;;  %v3223_v48 = vpack.c.bf16 %v457_v40, %v501_v43  ;;  %v633_v11 = vsel %vm611_vm4, 0.0, %v604_v4 }
  0x68   : > { %938 = vrot.lane.b32.xlu0 %v2972_v29, %s2531_s29  ;;  %v3229_v22 = vpack.c.bf16 %v633_v11, %v588_v9 }
  0x69   : > { %672 = vst.msk [vmem:[#allocation2 + $0x108] sm:$0xff] %vm661_vm3, %v3223_v48 }
  0x6a   : > { %1127 = vst.msk [vmem:[#allocation2 + $0xe8] sm:$0xff] %vm661_vm3, %v3229_v22 }
  0x6b   : > { %876 = vrot.lane.b32.xlu1 %v2918_v50, %s2530_s23 }
  0x6c   : > { %699 = vrot.lane.b32.xlu0 %v2868_v62, %s2531_s29 }
  0x6f   : > { %776 = vrot.lane.b32.xlu1 %v2898_v27, %s2532_s10 }
  0x70   : > { %1002 = vrot.lane.b32.xlu0 %v3032_v16, %s2532_s10 }
  0x73   : > { %856 = vrot.lane.b32.xlu1 %v2945_v61, %s2530_s23 }
  0x74   : > { %1065 = vrot.lane.b32.xlu0 %v3005_v55, %s2530_s23 }
  0x77   : > { %721 = vrot.lane.b32.xlu1 %v2896_v26, %s2531_s29 }
  0x78   : > { %960 = vrot.lane.b32.xlu0 %v3007_v39, %s2531_s29 }
  0x7b   : > { %940 = vrot.lane.b32.xlu1 %v3034_v18, %s2531_s29 }
  0x7c   : > { %798 = vrot.lane.b32.xlu0 %v2940_v57, %s2532_s10 }
  0x7f   : > { %878 = vrot.lane.b32.xlu1 %v3144_v58, %s2530_s23 }
  0x80   : > { %701 = vrot.lane.b32.xlu0 %v2914_v44, %s2531_s29 }
  0x83   : > { %778 = vrot.lane.b32.xlu1 %v2972_v29, %s2532_s10 }
  0x84   : > { %1004 = vrot.lane.b32.xlu0 %v3067_v54, %s2532_s10 }
  0x87   : > { %858 = vrot.lane.b32.xlu1 %v3032_v16, %s2530_s23 }
  0x88   : > { %1067 = vrot.lane.b32.xlu0 %v3038_v31, %s2530_s23 }
  0x8b   : > { %703 = vrot.lane.b32.xlu1 %v3005_v55, %s2531_s29 }
  0x8c   : > { %942 = vrot.lane.b32.xlu0 %v3076_v59, %s2531_s29 }
  0x8d   : > { %v1060_v5 = vpop.permute.xlu0 %1059  ;;  %v1058_v62 = vpop.permute.xlu1 %1057 }
  0x8f   : > { %780 = vrot.lane.b32.xlu1 %v3034_v18, %s2532_s10 }
  0x90   : > { %1006 = vrot.lane.b32.xlu0 %v3114_v21, %s2532_s10 }
  0x91   : > { %v694_v26 = vpop.permute.xlu1 %693 }
  0x92   : > { %v931_v27 = vpop.permute.xlu0 %930  ;;  %739 = vst.msk [vmem:[#allocation2 + $0x18] sm:$0xff] %vm738_vm5, %v694_v26 }
  0x93   : > { %978 = vst.msk [vmem:[#allocation2 + $0x8] sm:$0xff] %vm738_vm5, %v931_v27  ;;  %860 = vrot.lane.b32.xlu1 %v3067_v54, %s2530_s23 }
  0x94   : > { %1069 = vrot.lane.b32.xlu0 %v3078_v1, %s2530_s23 }
  0x95   : > { %v716_v44 = vpop.permute.xlu1 %715 }
  0x96   : > { %v995_v50 = vpop.permute.xlu0 %994  ;;  %750 = vst.msk [vmem:[#allocation2 + $0x120] sm:$0xff] %vm738_vm5, %v716_v44 }
  0x97   : > { %1039 = vst.msk [vmem:[#allocation2 + $0x8] sm:$0xff] %vm815_vm6, %v995_v50  ;;  %705 = vrot.lane.b32.xlu1 %v3038_v31, %s2531_s29 }
  0x98   : > { %1102 = vst.msk [vmem:[#allocation2 + $0x8] sm:$0xff] %vm896_vm7, %v1058_v62  ;;  %944 = vrot.lane.b32.xlu0 %v3124_v37, %s2531_s29 }
  0x99   : > { %v849_v57 = vpop.permute.xlu1 %848 }
  0x9a   : > { %v933_v61 = vpop.permute.xlu0 %932  ;;  %897 = vst.msk [vmem:[#allocation2] sm:$0xff] %vm896_vm7, %v849_v57 }
  0x9b   : > { %979 = vst.msk [vmem:[#allocation2 + $0x20] sm:$0xff] %vm738_vm5, %v933_v61  ;;  %782 = vrot.lane.b32.xlu1 %v3076_v59, %s2532_s10 }
  0x9c   : > { %1008 = vrot.lane.b32.xlu0 %v3169_v34, %s2532_s10 }
  0x9d   : > { %v771_v29 = vpop.permute.xlu1 %770 }
  0x9e   : > { %v997_v30 = vpop.permute.xlu0 %996  ;;  %816 = vst.msk [vmem:[#allocation2 + $0x18] sm:$0xff] %vm815_vm6, %v771_v29  ;;  %v1136_v29 = vld [vmem:[#allocation2 + $0x10] sm:$0xff] }
  0x9f   : > { %1040 = vst.msk [vmem:[#allocation2 + $0x20] sm:$0xff] %vm815_vm6, %v997_v30  ;;  %v1135_v55 = vld [vmem:[#allocation2 + $0x8] sm:$0xff]  ;;  %862 = vrot.lane.b32.xlu1 %v3114_v21, %s2530_s23 }
  0xa0   : > { %1103 = vst.msk [vmem:[#allocation2 + $0x20] sm:$0xff] %vm896_vm7, %v1060_v5  ;;  %1071 = vrot.lane.b32.xlu0 %v3150_v8, %s2530_s23  ;;  %1406 = vmatprep.mubr.bf16.mxu0 %v1135_v55 }
  0xa1   : > { %v851_v39 = vpop.permute.xlu1 %850  ;;  %v1134_v16 = vld [vmem:[#allocation2] sm:$0xff] }
  0xa2   : > { %v955_v18 = vpop.permute.xlu0 %954  ;;  %898 = vst.msk [vmem:[#allocation2 + $0x18] sm:$0xff] %vm896_vm7, %v851_v39  ;;  %1407 = vmatmul.mubr.bf16.vlgmr.msra.gmra.mrb[0].mxu0 %v1134_v16 }
  0xa3   : > { %990 = vst.msk [vmem:[#allocation2 + $0x128] sm:$0xff] %vm738_vm5, %v955_v18  ;;  %707 = vrot.lane.b32.xlu1 %v3078_v1, %s2531_s29 }
  0xa4   : > { %946 = vrot.lane.b32.xlu0 %v3175_v42, %s2531_s29 }
  0xa5   : > { %v793_v31 = vpop.permute.xlu1 %792 }
  0xa6   : > { %v1019_v54 = vpop.permute.xlu0 %1018  ;;  %827 = vst.msk [vmem:[#allocation2 + $0x120] sm:$0xff] %vm815_vm6, %v793_v31  ;;  %v1139_v31 = vld [vmem:[#allocation2 + $0x28] sm:$0xff] }
  0xa7   : > { %1051 = vst.msk [vmem:[#allocation2 + $0x128] sm:$0xff] %vm815_vm6, %v1019_v54  ;;  %v1138_v59 = vld [vmem:[#allocation2 + $0x20] sm:$0xff]  ;;  %784 = vrot.lane.b32.xlu1 %v3124_v37, %s2532_s10 }
  0xa8   : > { %1010 = vrot.lane.b32.xlu0 %v3195_v49, %s2532_s10  ;;  %1414 = vmatprep.mubr.bf16.mxu0 %v1138_v59  ;;  %v1142_v54 = vld [vmem:[#allocation2 + $0x40] sm:$0xff] }
  0xa9   : > { %v1082_v21 = vpop.permute.xlu1 %1081  ;;  %v1137_v58 = vld [vmem:[#allocation2 + $0x18] sm:$0xff] }
  0xaa   : > { %v935_v1 = vpop.permute.xlu0 %934  ;;  %1114 = vst.msk [vmem:[#allocation2 + $0x128] sm:$0xff] %vm896_vm7, %v1082_v21  ;;  %1415 = vmatmul.mubr.bf16.gmra.mrb[4].mxu0 %v1137_v58 }
  0xab   : > { %980 = vst.msk [vmem:[#allocation2 + $0x38] sm:$0xff] %vm738_vm5, %v935_v1  ;;  %864 = vrot.lane.b32.xlu1 %v3169_v34, %s2530_s23 }
  0xac   : > { %1073 = vrot.lane.b32.xlu0 %v3173_v41, %s2530_s23 }
  0xad   : > { %v873_v52 = vpop.permute.xlu1 %872 }
  0xae   : > { %v696_v37 = vpop.permute.xlu0 %695  ;;  %909 = vst.msk [vmem:[#allocation2 + $0x120] sm:$0xff] %vm896_vm7, %v873_v52 }
  0xaf   : > { %740 = vst.msk [vmem:[#allocation2 + $0x30] sm:$0xff] %vm738_vm5, %v696_v37  ;;  %709 = vrot.lane.b32.xlu1 %v3150_v8, %s2531_s29  ;;  %v2521_v8 = vld [vmem:[%s3725_s3 + $0x88] sm:$0xff]  }
  0xb0   : > { %948 = vrot.lane.b32.xlu0 %v3203_v63, %s2531_s29 }
  0xb1   : > { %v773_v24 = vpop.permute.xlu1 %772  ;;  %v1171_v12 = vld [vmem:[#allocation2 + $0x128] sm:$0xff] }
  0xb2   : > { %v999_v13 = vpop.permute.xlu0 %998  ;;  %817 = vst.msk [vmem:[#allocation2 + $0x30] sm:$0xff] %vm815_vm6, %v773_v24  ;;  %1502 = vmatprep.mubr.bf16.mxu1 %v1171_v12  ;;  %v1145_v24 = vld [vmem:[#allocation2 + $0x58] sm:$0xff]  ;;  %v1148_v12 = vld [vmem:[#allocation2 + $0x70] sm:$0xff] }
  0xb3   : > { %1041 = vst.msk [vmem:[#allocation2 + $0x38] sm:$0xff] %vm815_vm6, %v999_v13  ;;  %786 = vrot.lane.b32.xlu1 %v3175_v42, %s2532_s10 }
  0xb4   : > { %1012 = vrot.lane.b32.xlu0 %v3223_v48, %s2532_s10 }
  0xb5   : > { %v853_v20 = vpop.permute.xlu1 %852  ;;  %v1170_v10 = vld [vmem:[#allocation2 + $0x120] sm:$0xff] }
  0xb6   : > { %v1062_v23 = vpop.permute.xlu0 %1061  ;;  %899 = vst.msk [vmem:[#allocation2 + $0x30] sm:$0xff] %vm896_vm7, %v853_v20  ;;  %1503 = vmatmul.mubr.bf16.vlgmr.msra.gmra.mrb[0].mxu1 %v1170_v10 }
  0xb7   : > { %1104 = vst.msk [vmem:[#allocation2 + $0x38] sm:$0xff] %vm896_vm7, %v1062_v23  ;;  %866 = vrot.lane.b32.xlu1 %v3195_v49, %s2530_s23  ;;  %2441 = vmatpush3.bf16.msra.mxu1 %v3254_v2 }
  0xb8   : > { %1075 = vrot.lane.b32.xlu0 %v3199_v35, %s2530_s23  ;;  %2442 = vmatprep.subr.bf16.mxu1 %v2521_v8 }
  0xb9   : > { %v718_v33 = vpop.permute.xlu1 %717 }
  0xba   : > { %v957_v34 = vpop.permute.xlu0 %956  ;;  %751 = vst.msk [vmem:[#allocation2 + $0x138] sm:$0xff] %vm738_vm5, %v718_v33 }
  0xbb   : > { %991 = vst.msk [vmem:[#allocation2 + $0x140] sm:$0xff] %vm738_vm5, %v957_v34  ;;  %711 = vrot.lane.b32.xlu1 %v3173_v41, %s2531_s29  ;;  %2443 = vmatpush3.bf16.msra.mxu1 %v2521_v8  ;;  %v1151_v34 = vld [vmem:[#allocation2 + $0x88] sm:$0xff] }
  0xbc   : > { %950 = vrot.lane.b32.xlu0 %v3229_v22, %s2531_s29 }
  0xbd   : > { %v795_v15 = vpop.permute.xlu1 %794  ;;  %v1140_v19 = vld [vmem:[#allocation2 + $0x30] sm:$0xff] }
  0xbe   : > { %v1021_v42 = vpop.permute.xlu0 %1020  ;;  %828 = vst.msk [vmem:[#allocation2 + $0x138] sm:$0xff] %vm815_vm6, %v795_v15  ;;  %v1141_v17 = vld [vmem:[#allocation2 + $0x38] sm:$0xff]  ;;  %v1154_v15 = vld [vmem:[#allocation2 + $0xa0] sm:$0xff] }
  0xbf   : > { %1052 = vst.msk [vmem:[#allocation2 + $0x140] sm:$0xff] %vm815_vm6, %v1021_v42  ;;  %1422 = vmatprep.mubr.bf16.mxu0 %v1141_v17  ;;  %788 = vrot.lane.b32.xlu1 %v3203_v63, %s2532_s10 }
  0xc0   : > { %1014 = vrot.lane.b32.xlu0 %v3087_v46, %s2532_s10  ;;  %1423 = vmatmul.mubr.bf16.gmra.mrb[8].mxu0 %v1140_v19 }
  0xc1   : > { %v1084_v41 = vpop.permute.xlu1 %1083 }
  0xc2   : > { %v937_v25 = vpop.permute.xlu0 %936  ;;  %1115 = vst.msk [vmem:[#allocation2 + $0x140] sm:$0xff] %vm896_vm7, %v1084_v41 }
  0xc3   : > { %981 = vst.msk [vmem:[#allocation2 + $0x50] sm:$0xff] %vm738_vm5, %v937_v25  ;;  %868 = vrot.lane.b32.xlu1 %v3223_v48, %s2530_s23  ;;  %v1157_v25 = vld [vmem:[#allocation2 + $0xb8] sm:$0xff] }
  0xc4   : > { %1077 = vrot.lane.b32.xlu0 %v2673_v60, %s2530_s23 }
  0xc5   : > { %v875_v3 = vpop.permute.xlu1 %874 }
  0xc6   : > { %v698_v45 = vpop.permute.xlu0 %697  ;;  %910 = vst.msk [vmem:[#allocation2 + $0x138] sm:$0xff] %vm896_vm7, %v875_v3  ;;  %v1160_v3 = vld [vmem:[#allocation2 + $0xd0] sm:$0xff] }
  0xc7   : > { %741 = vst.msk [vmem:[#allocation2 + $0x48] sm:$0xff] %vm738_vm5, %v698_v45  ;;  %713 = vrot.lane.b32.xlu1 %v3199_v35, %s2531_s29 }
  0xc8   : > { %952 = vrot.lane.b32.xlu0 %v2781_v0, %s2531_s29 }
  0xc9   : > { %v775_v14 = vpop.permute.xlu1 %774  ;;  %v1174_v51 = vld [vmem:[#allocation2 + $0x140] sm:$0xff] }
  0xca   : > { %v1001_v53 = vpop.permute.xlu0 %1000  ;;  %818 = vst.msk [vmem:[#allocation2 + $0x48] sm:$0xff] %vm815_vm6, %v775_v14  ;;  %1510 = vmatprep.mubr.bf16.mxu1 %v1174_v51 }
  0xcb   : > { %1042 = vst.msk [vmem:[#allocation2 + $0x50] sm:$0xff] %vm815_vm6, %v1001_v53  ;;  %790 = vrot.lane.b32.xlu1 %v3229_v22, %s2532_s10 }
  0xcc   : > { %1016 = vrot.lane.b32.xlu0 %v2831_v32, %s2532_s10 }
  0xcd   : > { %v855_v60 = vpop.permute.xlu1 %854  ;;  %v1173_v49 = vld [vmem:[#allocation2 + $0x138] sm:$0xff] }
  0xce   : > { %v1064_v47 = vpop.permute.xlu0 %1063  ;;  %900 = vst.msk [vmem:[#allocation2 + $0x48] sm:$0xff] %vm896_vm7, %v855_v60  ;;  %1511 = vmatmul.mubr.bf16.gmra.mrb[4].mxu1 %v1173_v49 }
  0xcf   : > { %1105 = vst.msk [vmem:[#allocation2 + $0x50] sm:$0xff] %vm896_vm7, %v1064_v47  ;;  %870 = vrot.lane.b32.xlu1 %v3087_v46, %s2530_s23  ;;  %v1163_v47 = vld [vmem:[#allocation2 + $0xe8] sm:$0xff] }
  0xd0   : > { %1079 = vrot.lane.b32.xlu0 %v2840_v38, %s2530_s23 }
  0xd1   : > { %v720_v0 = vpop.permute.xlu1 %719 }
  0xd2   : > { %v959_v56 = vpop.permute.xlu0 %958  ;;  %752 = vst.msk [vmem:[#allocation2 + $0x150] sm:$0xff] %vm738_vm5, %v720_v0  ;;  %v1166_v0 = vld [vmem:[#allocation2 + $0x100] sm:$0xff] }
  0xd3   : > { %992 = vst.msk [vmem:[#allocation2 + $0x158] sm:$0xff] %vm738_vm5, %v959_v56 }
  0xd5   : > { %v797_v32 = vpop.permute.xlu1 %796  ;;  %v1143_v35 = vld [vmem:[#allocation2 + $0x48] sm:$0xff] }
  0xd6   : > { %v1023_v63 = vpop.permute.xlu0 %1022  ;;  %829 = vst.msk [vmem:[#allocation2 + $0x150] sm:$0xff] %vm815_vm6, %v797_v32  ;;  %v1144_v6 = vld [vmem:[#allocation2 + $0x50] sm:$0xff] }
  0xd7   : > { %1053 = vst.msk [vmem:[#allocation2 + $0x158] sm:$0xff] %vm815_vm6, %v1023_v63  ;;  %1430 = vmatprep.mubr.bf16.mxu0 %v1144_v6 }
  0xd8   : > { %1431 = vmatmul.mubr.bf16.gmra.mrb[12].mxu0 %v1143_v35 }
  0xd9   : > { %v1086_v46 = vpop.permute.xlu1 %1085 }
  0xda   : > { %v939_v7 = vpop.permute.xlu0 %938  ;;  %1116 = vst.msk [vmem:[#allocation2 + $0x158] sm:$0xff] %vm896_vm7, %v1086_v46 }
  0xdb   : > { %982 = vst.msk [vmem:[#allocation2 + $0x68] sm:$0xff] %vm738_vm5, %v939_v7  ;;  %v1169_v7 = vld [vmem:[#allocation2 + $0x118] sm:$0xff] }
  0xdd   : > { %v877_v38 = vpop.permute.xlu1 %876 }
  0xde   : > { %v700_v40 = vpop.permute.xlu0 %699  ;;  %911 = vst.msk [vmem:[#allocation2 + $0x150] sm:$0xff] %vm896_vm7, %v877_v38  ;;  %v1172_v38 = vld [vmem:[#allocation2 + $0x130] sm:$0xff] }
  0xdf   : > { %742 = vst.msk [vmem:[#allocation2 + $0x60] sm:$0xff] %vm738_vm5, %v700_v40 }
  0xe1   : > { %v777_v28 = vpop.permute.xlu1 %776  ;;  %v1177_v43 = vld [vmem:[#allocation2 + $0x158] sm:$0xff] }
  0xe2   : > { %v1003_v9 = vpop.permute.xlu0 %1002  ;;  %819 = vst.msk [vmem:[#allocation2 + $0x60] sm:$0xff] %vm815_vm6, %v777_v28  ;;  %1518 = vmatprep.mubr.bf16.mxu1 %v1177_v43 }
  0xe3   : > { %1043 = vst.msk [vmem:[#allocation2 + $0x68] sm:$0xff] %vm815_vm6, %v1003_v9 }
  0xe5   : > { %v857_v4 = vpop.permute.xlu1 %856  ;;  %v1176_v48 = vld [vmem:[#allocation2 + $0x150] sm:$0xff] }
  0xe6   : > { %v1066_v11 = vpop.permute.xlu0 %1065  ;;  %901 = vst.msk [vmem:[#allocation2 + $0x60] sm:$0xff] %vm896_vm7, %v857_v4  ;;  %1519 = vmatmul.mubr.bf16.gmra.mrb[8].mxu1 %v1176_v48  ;;  %v1175_v4 = vld [vmem:[#allocation2 + $0x148] sm:$0xff]  ;;  %v1178_v48 = vld [vmem:[#allocation2 + $0x160] sm:$0xff] }
  0xe7   : > { %1106 = vst.msk [vmem:[#allocation2 + $0x68] sm:$0xff] %vm896_vm7, %v1066_v11 }
  0xe9   : > { %v722_v22 = vpop.permute.xlu1 %721 }
  0xea   : > { %v961_v2 = vpop.permute.xlu0 %960  ;;  %753 = vst.msk [vmem:[#allocation2 + $0x168] sm:$0xff] %vm738_vm5, %v722_v22 }
  0xeb   : > { %993 = vst.msk [vmem:[#allocation2 + $0x170] sm:$0xff] %vm738_vm5, %v961_v2 }
  0xec   : > { %1055 = vst.msk [vmem:[#allocation2 + $0x170] sm:$0xff] %vm815_vm6, %v2533_v36 }
  0xed   : > { %1117 = vst.msk [vmem:[#allocation2 + $0x170] sm:$0xff] %vm896_vm7, %v2533_v36  ;;  %v941_v5 = vpop.permute.xlu1 %940  ;;  %v1146_v62 = vld [vmem:[#allocation2 + $0x60] sm:$0xff] }
  0xee   : > { %v799_v26 = vpop.permute.xlu0 %798  ;;  %983 = vst.msk [vmem:[#allocation2 + $0x80] sm:$0xff] %vm738_vm5, %v941_v5  ;;  %v1147_v27 = vld [vmem:[#allocation2 + $0x68] sm:$0xff] }
  0xef   : > { %830 = vst.msk [vmem:[#allocation2 + $0x168] sm:$0xff] %vm815_vm6, %v799_v26  ;;  %1438 = vmatprep.mubr.bf16.mxu0 %v1147_v27  ;;  %v1181_v27 = vld [vmem:[#allocation2 + $0x178] sm:$0xff] }
  0xf0   : > { %1439 = vmatmul.mubr.bf16.gmra.mrb[16].mxu0 %v1146_v62 }
  0xf1   : > { %v879_v44 = vpop.permute.xlu1 %878 }
  0xf2   : > { %v702_v50 = vpop.permute.xlu0 %701  ;;  %912 = vst.msk [vmem:[#allocation2 + $0x168] sm:$0xff] %vm896_vm7, %v879_v44 }
  0xf3   : > { %743 = vst.msk [vmem:[#allocation2 + $0x78] sm:$0xff] %vm738_vm5, %v702_v50 }
  0xf4   : > { %v1180_v57 = vld [vmem:[#allocation2 + $0x170] sm:$0xff] }
  0xf5   : > { %v779_v61 = vpop.permute.xlu1 %778  ;;  %1526 = vmatprep.mubr.bf16.mxu1 %v1180_v57 }
  0xf6   : > { %v1005_v36 = vpop.permute.xlu0 %1004  ;;  %820 = vst.msk [vmem:[#allocation2 + $0x78] sm:$0xff] %vm815_vm6, %v779_v61 }
  0xf7   : > { %1044 = vst.msk [vmem:[#allocation2 + $0x80] sm:$0xff] %vm815_vm6, %v1005_v36 }
  0xf9   : > { %v1179_v30 = vld [vmem:[#allocation2 + $0x168] sm:$0xff]  ;;  %v859_v55 = vpop.permute.xlu1 %858 }
  0xfa   : > { %v1068_v39 = vpop.permute.xlu0 %1067  ;;  %1527 = vmatmul.mubr.bf16.gmra.mrb[12].mxu1 %v1179_v30  ;;  %902 = vst.msk [vmem:[#allocation2 + $0x78] sm:$0xff] %vm896_vm7, %v859_v55 }
  0xfb   : > { %1107 = vst.msk [vmem:[#allocation2 + $0x80] sm:$0xff] %vm896_vm7, %v1068_v39  ;;  %2444 = vmatprep.mubr.msk.bf16.mxu1 %vm661_vm3, %v1136_v29 }
  0xfd   : > { %v704_v16 = vpop.permute.xlu1 %703 }
  0xfe   : > { %v943_v18 = vpop.permute.xlu0 %942  ;;  %744 = vst.msk [vmem:[#allocation2 + $0x90] sm:$0xff] %vm738_vm5, %v704_v16 }
  0xff   : > { %984 = vst.msk [vmem:[#allocation2 + $0x98] sm:$0xff] %vm738_vm5, %v943_v18 }
 0x101   : > { %v781_v59 = vpop.permute.xlu1 %780  ;;  %v1149_v21 = vld [vmem:[#allocation2 + $0x78] sm:$0xff] }
 0x102   : > { %v1007_v58 = vpop.permute.xlu0 %1006  ;;  %2445 = vmatmul.mubr.msk.bf16.vlgmr.msra.gmra.mrb[16].mxu1 %vm661_vm3, %v1139_v31  ;;  %821 = vst.msk [vmem:[#allocation2 + $0x90] sm:$0xff] %vm815_vm6, %v781_v59  ;;  %v1150_v1 = vld [vmem:[#allocation2 + $0x80] sm:$0xff] }
 0x103   : > { %1045 = vst.msk [vmem:[#allocation2 + $0x98] sm:$0xff] %vm815_vm6, %v1007_v58  ;;  %1446 = vmatprep.mubr.bf16.mxu0 %v1150_v1  ;;  %2448 = vmatprep.mubr.msk.bf16.mxu1 %vm661_vm3, %v1142_v54 }
 0x104   : > { %1447 = vmatmul.mubr.bf16.gmra.mrb[20].mxu0 %v1149_v21 }
 0x105   : > { %v861_v52 = vpop.permute.xlu1 %860 }
 0x106   : > { %v1070_v37 = vpop.permute.xlu0 %1069  ;;  %903 = vst.msk [vmem:[#allocation2 + $0x90] sm:$0xff] %vm896_vm7, %v861_v52 }
 0x107   : > { %1108 = vst.msk [vmem:[#allocation2 + $0x98] sm:$0xff] %vm896_vm7, %v1070_v37 }
 0x109   : > { %v706_v13 = vpop.permute.xlu1 %705 }
 0x10a   : > { %v945_v8 = vpop.permute.xlu0 %944  ;;  %2449 = vmatmul.mubr.msk.bf16.gmra.mrb[20].mxu1 %vm661_vm3, %v1145_v24  ;;  %745 = vst.msk [vmem:[#allocation2 + $0xa8] sm:$0xff] %vm738_vm5, %v706_v13 }
 0x10b   : > { %985 = vst.msk [vmem:[#allocation2 + $0xb0] sm:$0xff] %vm738_vm5, %v945_v8  ;;  %2452 = vmatprep.mubr.msk.bf16.mxu1 %vm661_vm3, %v1148_v12 }
 0x10d   : > { %v783_v20 = vpop.permute.xlu1 %782  ;;  %v1152_v10 = vld [vmem:[#allocation2 + $0x90] sm:$0xff] }
 0x10e   : > { %v1009_v23 = vpop.permute.xlu0 %1008  ;;  %822 = vst.msk [vmem:[#allocation2 + $0xa8] sm:$0xff] %vm815_vm6, %v783_v20  ;;  %v1153_v33 = vld [vmem:[#allocation2 + $0x98] sm:$0xff] }
 0x10f   : > { %1046 = vst.msk [vmem:[#allocation2 + $0xb0] sm:$0xff] %vm815_vm6, %v1009_v23  ;;  %1454 = vmatprep.mubr.bf16.mxu0 %v1153_v33 }
 0x110   : > { %1455 = vmatmul.mubr.bf16.gmra.mrb[24].mxu0 %v1152_v10 }
 0x111   : > { %v863_v19 = vpop.permute.xlu1 %862 }
 0x112   : > { %v1072_v42 = vpop.permute.xlu0 %1071  ;;  %2453 = vmatmul.mubr.msk.bf16.gmra.mrb[24].mxu1 %vm661_vm3, %v1151_v34  ;;  %904 = vst.msk [vmem:[#allocation2 + $0xa8] sm:$0xff] %vm896_vm7, %v863_v19 }
 0x113   : > { %1109 = vst.msk [vmem:[#allocation2 + $0xb0] sm:$0xff] %vm896_vm7, %v1072_v42  ;;  %2456 = vmatprep.mubr.msk.bf16.mxu1 %vm661_vm3, %v1154_v15 }
 0x115   : > { %v708_v17 = vpop.permute.xlu1 %707 }
 0x116   : > { %v947_v41 = vpop.permute.xlu0 %946  ;;  %746 = vst.msk [vmem:[#allocation2 + $0xc0] sm:$0xff] %vm738_vm5, %v708_v17 }
 0x117   : > { %986 = vst.msk [vmem:[#allocation2 + $0xc8] sm:$0xff] %vm738_vm5, %v947_v41 }
 0x119   : > { %v785_v45 = vpop.permute.xlu1 %784  ;;  %v1155_v14 = vld [vmem:[#allocation2 + $0xa8] sm:$0xff] }
 0x11a   : > { %v1011_v51 = vpop.permute.xlu0 %1010  ;;  %2457 = vmatmul.mubr.msk.bf16.gmra.mrb[28].mxu1 %vm661_vm3, %v1157_v25  ;;  %823 = vst.msk [vmem:[#allocation2 + $0xc0] sm:$0xff] %vm815_vm6, %v785_v45  ;;  %v1156_v53 = vld [vmem:[#allocation2 + $0xb0] sm:$0xff] }
 0x11b   : > { %1047 = vst.msk [vmem:[#allocation2 + $0xc8] sm:$0xff] %vm815_vm6, %v1011_v51  ;;  %1462 = vmatprep.mubr.bf16.mxu0 %v1156_v53  ;;  %2460 = vmatprep.mubr.msk.bf16.mxu1 %vm661_vm3, %v1160_v3 }
 0x11c   : > { %1463 = vmatmul.mubr.bf16.gmra.mrb[28].mxu0 %v1155_v14 }
 0x11d   : > { %v865_v60 = vpop.permute.xlu1 %864 }
 0x11e   : > { %v1074_v49 = vpop.permute.xlu0 %1073  ;;  %905 = vst.msk [vmem:[#allocation2 + $0xc0] sm:$0xff] %vm896_vm7, %v865_v60 }
 0x11f   : > { %1110 = vst.msk [vmem:[#allocation2 + $0xc8] sm:$0xff] %vm896_vm7, %v1074_v49 }
 0x121   : > { %v710_v56 = vpop.permute.xlu1 %709 }
 0x122   : > { %v949_v32 = vpop.permute.xlu0 %948  ;;  %2461 = vmatmul.mubr.msk.bf16.gmra.mrb[32].mxu1 %vm661_vm3, %v1163_v47  ;;  %747 = vst.msk [vmem:[#allocation2 + $0xd8] sm:$0xff] %vm738_vm5, %v710_v56 }
 0x123   : > { %987 = vst.msk [vmem:[#allocation2 + $0xe0] sm:$0xff] %vm738_vm5, %v949_v32  ;;  %2464 = vmatprep.mubr.msk.bf16.mxu1 %vm661_vm3, %v1166_v0 }
 0x125   : > { %v787_v35 = vpop.permute.xlu1 %786  ;;  %v1158_v63 = vld [vmem:[#allocation2 + $0xc0] sm:$0xff] }
 0x126   : > { %v1013_v6 = vpop.permute.xlu0 %1012  ;;  %824 = vst.msk [vmem:[#allocation2 + $0xd8] sm:$0xff] %vm815_vm6, %v787_v35  ;;  %v1159_v46 = vld [vmem:[#allocation2 + $0xc8] sm:$0xff] }
 0x127   : > { %1048 = vst.msk [vmem:[#allocation2 + $0xe0] sm:$0xff] %vm815_vm6, %v1013_v6  ;;  %1470 = vmatprep.mubr.bf16.mxu0 %v1159_v46 }
 0x128   : > { %1471 = vmatmul.mubr.bf16.gmra.mrb[32].mxu0 %v1158_v63 }
 0x129   : > { %v867_v40 = vpop.permute.xlu1 %866 }
 0x12a   : > { %v1076_v28 = vpop.permute.xlu0 %1075  ;;  %2465 = vmatmul.mubr.msk.bf16.gmra.mrb[36].mxu1 %vm661_vm3, %v1169_v7  ;;  %906 = vst.msk [vmem:[#allocation2 + $0xd8] sm:$0xff] %vm896_vm7, %v867_v40 }
 0x12b   : > { %1111 = vst.msk [vmem:[#allocation2 + $0xe0] sm:$0xff] %vm896_vm7, %v1076_v28  ;;  %2468 = vmatprep.mubr.msk.bf16.mxu1 %vm661_vm3, %v1172_v38 }
 0x12d   : > { %v712_v43 = vpop.permute.xlu1 %711 }
 0x12e   : > { %v951_v9 = vpop.permute.xlu0 %950  ;;  %748 = vst.msk [vmem:[#allocation2 + $0xf0] sm:$0xff] %vm738_vm5, %v712_v43 }
 0x12f   : > { %988 = vst.msk [vmem:[#allocation2 + $0xf8] sm:$0xff] %vm738_vm5, %v951_v9 }
 0x131   : > { %v789_v11 = vpop.permute.xlu1 %788  ;;  %v1161_v22 = vld [vmem:[#allocation2 + $0xd8] sm:$0xff] }
 0x132   : > { %v1015_v2 = vpop.permute.xlu0 %1014  ;;  %2469 = vmatmul.mubr.msk.bf16.gmra.mrb[40].mxu1 %vm661_vm3, %v1175_v4  ;;  %825 = vst.msk [vmem:[#allocation2 + $0xf0] sm:$0xff] %vm815_vm6, %v789_v11  ;;  %v1162_v5 = vld [vmem:[#allocation2 + $0xe0] sm:$0xff] }
 0x133   : > { %1049 = vst.msk [vmem:[#allocation2 + $0xf8] sm:$0xff] %vm815_vm6, %v1015_v2  ;;  %1478 = vmatprep.mubr.bf16.mxu0 %v1162_v5  ;;  %2472 = vmatprep.mubr.msk.bf16.mxu1 %vm661_vm3, %v1178_v48 }
 0x134   : > { %1479 = vmatmul.mubr.bf16.gmra.mrb[36].mxu0 %v1161_v22 }
 0x135   : > { %v869_v62 = vpop.permute.xlu1 %868 }
 0x136   : > { %v1078_v26 = vpop.permute.xlu0 %1077  ;;  %907 = vst.msk [vmem:[#allocation2 + $0xf0] sm:$0xff] %vm896_vm7, %v869_v62 }
 0x137   : > { %1112 = vst.msk [vmem:[#allocation2 + $0xf8] sm:$0xff] %vm896_vm7, %v1078_v26 }
 0x139   : > { %v714_v44 = vpop.permute.xlu1 %713 }
 0x13a   : > { %v953_v50 = vpop.permute.xlu0 %952  ;;  %2473 = vmatmul.mubr.msk.bf16.gmra.mrb[44].mxu1 %vm661_vm3, %v1181_v27  ;;  %749 = vst.msk [vmem:[#allocation2 + $0x108] sm:$0xff] %vm738_vm5, %v714_v44 }
 0x13b   : > { %989 = vst.msk [vmem:[#allocation2 + $0x110] sm:$0xff] %vm738_vm5, %v953_v50 }
 0x13d   : > { %v791_v57 = vpop.permute.xlu1 %790  ;;  %v1164_v61 = vld [vmem:[#allocation2 + $0xf0] sm:$0xff] }
 0x13e   : > { %v1017_v36 = vpop.permute.xlu0 %1016  ;;  %826 = vst.msk [vmem:[#allocation2 + $0x108] sm:$0xff] %vm815_vm6, %v791_v57  ;;  %v1165_v29 = vld [vmem:[#allocation2 + $0xf8] sm:$0xff] }
 0x13f   : > { %1050 = vst.msk [vmem:[#allocation2 + $0x110] sm:$0xff] %vm815_vm6, %v1017_v36  ;;  %1486 = vmatprep.mubr.bf16.mxu0 %v1165_v29 }
 0x140   : > { %1487 = vmatmul.mubr.bf16.gmra.mrb[40].mxu0 %v1164_v61 }
 0x141   : > { %v871_v30 = vpop.permute.xlu1 %870 }
 0x142   : > { %v1080_v55 = vpop.permute.xlu0 %1079  ;;  %908 = vst.msk [vmem:[#allocation2 + $0x108] sm:$0xff] %vm896_vm7, %v871_v30 }
 0x143   : > { %1113 = vst.msk [vmem:[#allocation2 + $0x110] sm:$0xff] %vm896_vm7, %v1080_v55 }
 0x149   : > { %v1167_v39 = vld [vmem:[#allocation2 + $0x108] sm:$0xff] }
 0x14a   : > { %v1168_v16 = vld [vmem:[#allocation2 + $0x110] sm:$0xff] }
 0x14b   : > { %1494 = vmatprep.mubr.bf16.mxu0 %v1168_v16 }
 0x14c   : > { %1495 = vmatmul.mubr.bf16.gmra.mrb[44].mxu0 %v1167_v39 }
 0x175   : > { %v2326_v18 = vpop.f32.mrb[0].mxu0 }
 0x176   : > { %v2327_v31 = vpop.f32.mrb[1].mxu0 }
 0x177   : > { %v2328_v54 = vadd.f32 %v2327_v31, %v2326_v18  ;;  %v2329_v59 = vpop.f32.mrb[2].mxu0 }
 0x178   : > { %v2330_v21 = vpop.f32.mrb[3].mxu0 }
 0x179   : > { %v3461_v58 = vadd.f32 %v2330_v21, %v2329_v59 }
 0x17d   : > { %v2332_v1 = vpop.f32.mrb[4].mxu0 }
 0x17e   : > { %v2333_v52 = vpop.f32.mrb[5].mxu0 }
 0x17f   : > { %v2334_v37 = vadd.f32 %v2333_v52, %v2332_v1  ;;  %v2335_v24 = vpop.f32.mrb[6].mxu0 }
 0x180   : > { %v2336_v12 = vpop.f32.mrb[7].mxu0 }
 0x181   : > { %v2337_v13 = vadd.f32 %v2336_v12, %v2335_v24 }
 0x189   : > { %v2398_v8 = vpop.f32.mrb[0].mxu1 }
 0x18a   : > { %v2399_v20 = vpop.f32.mrb[1].mxu1 }
 0x18b   : > { %v3463_v10 = vadd.f32 %v2399_v20, %v2398_v8  ;;  %v2401_v23 = vpop.f32.mrb[2].mxu1 }
 0x18c   : > { %v2402_v33 = vpop.f32.mrb[3].mxu1 }
 0x18d   : > { %v3465_v34 = vadd.f32 %v2402_v33, %v2401_v23 }
 0x193   : > { %v2338_v15 = vpop.f32.mrb[8].mxu0 }
 0x194   : > { %v2339_v19 = vpop.f32.mrb[9].mxu0 }
 0x195   : > { %v3467_v42 = vadd.f32 %v2339_v19, %v2338_v15  ;;  %v2341_v17 = vpop.f32.mrb[10].mxu0 }
 0x196   : > { %v2342_v41 = vpop.f32.mrb[11].mxu0 }
 0x197   : > { %v3469_v25 = vadd.f32 %v2342_v41, %v2341_v17 }
 0x1a1   : > { %v2404_v3 = vpop.f32.mrb[4].mxu1 }
 0x1a2   : > { %v2405_v45 = vpop.f32.mrb[5].mxu1 }
 0x1a3   : > { %v3471_v14 = vadd.f32 %v2405_v45, %v2404_v3  ;;  %v2407_v51 = vpop.f32.mrb[6].mxu1 }
 0x1a4   : > { %v2408_v53 = vpop.f32.mrb[7].mxu1 }
 0x1a5   : > { %v3473_v60 = vadd.f32 %v2408_v53, %v2407_v51 }
 0x1ab   : > { %v2344_v49 = vpop.f32.mrb[12].mxu0 }
 0x1ac   : > { %v2345_v47 = vpop.f32.mrb[13].mxu0 }
 0x1ad   : > { %v2346_v0 = vadd.f32 %v2345_v47, %v2344_v49  ;;  %v2347_v56 = vpop.f32.mrb[14].mxu0 }
 0x1ae   : > { %v2348_v32 = vpop.f32.mrb[15].mxu0 }
 0x1af   : > { %v3475_v35 = vadd.f32 %v2348_v32, %v2347_v56 }
 0x1b9   : > { %v2410_v63 = vpop.f32.mrb[8].mxu1 }
 0x1ba   : > { %v2411_v6 = vpop.f32.mrb[9].mxu1 }
 0x1bb   : > { %v3477_v46 = vadd.f32 %v2411_v6, %v2410_v63  ;;  %v2413_v7 = vpop.f32.mrb[10].mxu1 }
 0x1bc   : > { %v2414_v38 = vpop.f32.mrb[11].mxu1 }
 0x1bd   : > { %v3479_v40 = vadd.f32 %v2414_v38, %v2413_v7 }
 0x1c3   : > { %v2350_v28 = vpop.f32.mrb[16].mxu0 }
 0x1c4   : > { %v2351_v43 = vpop.f32.mrb[17].mxu0 }
 0x1c5   : > { %v3481_v9 = vadd.f32 %v2351_v43, %v2350_v28  ;;  %v2353_v4 = vpop.f32.mrb[18].mxu0 }
 0x1c6   : > { %v2354_v48 = vpop.f32.mrb[19].mxu0 }
 0x1c7   : > { %v3483_v11 = vadd.f32 %v2354_v48, %v2353_v4 }
 0x1cd   : > { %v2416_v22 = vpop.f32.mrb[12].mxu1 }
 0x1ce   : > { %v2417_v2 = vpop.f32.mrb[13].mxu1 }
 0x1cf   : > { %v3485_v5 = vadd.f32 %v2417_v2, %v2416_v22  ;;  %v2419_v62 = vpop.f32.mrb[14].mxu1 }
 0x1d0   : > { %v2420_v26 = vpop.f32.mrb[15].mxu1 }
 0x1d1   : > { %v3487_v27 = vadd.f32 %v2420_v26, %v2419_v62 }
 0x1d5   : > { %v2446_v44 = vpop.f32.mrb[16].mxu1 }
 0x1d6   : > { %v1578_v50 = vadd.f32 %v2446_v44, %v2334_v37  ;;  %v1569_v57 = vpop.f32.mrb[17].mxu1 }
 0x1d7   : > { %v2356_v61 = vpop.f32.mrb[20].mxu0  ;;  %v1570_v36 = vadd.f32 %v2328_v54, %v1569_v57  ;;  %v2447_v29 = vpop.f32.mrb[18].mxu1 }
 0x1d8   : > { %v2201_v30 = vpack.c.bf16 %v1578_v50, %v1578_v50  ;;  %v2357_v55 = vpop.f32.mrb[21].mxu0  ;;  %v1581_v39 = vadd.f32 %v2447_v29, %v2337_v13  ;;  %v1572_v16 = vpop.f32.mrb[19].mxu1  ;;  %v1767_v24 = vmul.f32 %v1578_v50, %v1578_v50  ;;  %v1699_v33 = vsel %vm661_vm3, %v1578_v50, 0.0 }
 0x1d9   : > { %v2199_v18 = vpack.c.bf16 %v1570_v36, %v1570_v36  ;;  %v3496_v31 = vadd.f32 %v2357_v55, %v2356_v61  ;;  %v2359_v59 = vpop.f32.mrb[22].mxu0  ;;  %v1765_v52 = vmul.f32 %v1570_v36, %v1570_v36  ;;  %v1573_v37 = vadd.f32 %v3461_v58, %v1572_v16 }
 0x1da   : > { %2001 = vst.msk [vmem:[%s3494_s25 + $0x8] sm:$0xf] %vm1998_vm8, %v2201_v30  ;;  %v2202_v21 = vpack.c.bf16 %v1581_v39, %v1581_v39  ;;  %v2360_v1 = vpop.f32.mrb[23].mxu0  ;;  %v1696_v12 = vsel %vm661_vm3, %v1570_v36, 0.0  ;;  %v1768_v58 = vmul.f32 %v1581_v39, %v1581_v39  ;;  %v1800_v53 = vsel %vm661_vm3, %v1767_v24, 0.0 }
 0x1db   : > { %1999 = vst.msk [vmem:[%s3494_s25] sm:$0xf] %vm1998_vm8, %v2199_v18  ;;  %v2361_v54 = vadd.f32 %v2360_v1, %v2359_v59  ;;  %v1697_v13 = vsel %vm661_vm3, %v1573_v37, 0.0  ;;  %v1766_v8 = vmul.f32 %v1573_v37, %v1573_v37  ;;  %v2200_v20 = vpack.c.bf16 %v1573_v37, %v1573_v37 }
 0x1dc   : > { %2002 = vst.msk [vmem:[%s3494_s25 + $0xc] sm:$0xf] %vm1998_vm8, %v2202_v21  ;;  %v1698_v15 = vadd.f32 %v1697_v13, %v1696_v12  ;;  %v1797_v41 = vsel %vm661_vm3, %v1765_v52, 0.0  ;;  %v1701_v49 = vsel %vm661_vm3, %v1581_v39, 0.0 }
 0x1dd   : > { %v2450_v23 = vpop.f32.mrb[20].mxu1  ;;  %v1798_v3 = vsel %vm661_vm3, %v1766_v8, 0.0  ;;  %2000 = vst.msk [vmem:[%s3494_s25 + $0x4] sm:$0xf] %vm1998_vm8, %v2200_v20 }
 0x1de   : > { %v1594_v19 = vadd.f32 %v2450_v23, %v2346_v0  ;;  %v1585_v17 = vpop.f32.mrb[21].mxu1  ;;  %v1700_v47 = vadd.f32 %v1699_v33, %v1698_v15  ;;  %v1799_v56 = vadd.f32 %v1798_v3, %v1797_v41 }
 0x1df   : > { %v1586_v45 = vadd.f32 %v3467_v42, %v1585_v17  ;;  %v2451_v51 = vpop.f32.mrb[22].mxu1  ;;  %v1802_v42 = vsel %vm661_vm3, %v1768_v58, 0.0 }
 0x1e0   : > { %v1588_v0 = vpop.f32.mrb[23].mxu1  ;;  %v2205_v32 = vpack.c.bf16 %v1594_v19, %v1594_v19  ;;  %v1801_v38 = vadd.f32 %v1800_v53, %v1799_v56  ;;  %v1702_v28 = vadd.f32 %v1701_v49, %v1700_v47  ;;  %v1597_v43 = vadd.f32 %v2451_v51, %v3475_v35 }
 0x1e1   : > { %v1703_v63 = vsel %vm661_vm3, %v1586_v45, 0.0  ;;  %v1769_v6 = vmul.f32 %v1586_v45, %v1586_v45  ;;  %v2203_v7 = vpack.c.bf16 %v1586_v45, %v1586_v45  ;;  %v1589_v48 = vadd.f32 %v3469_v25, %v1588_v0 }
 0x1e2   : > { %2005 = vst.msk [vmem:[%s3494_s25 + $0x18] sm:$0xf] %vm1998_vm8, %v2205_v32  ;;  %v1707_v2 = vsel %vm661_vm3, %v1594_v19, 0.0  ;;  %v1771_v62 = vmul.f32 %v1594_v19, %v1594_v19  ;;  %v1704_v26 = vadd.f32 %v1703_v63, %v1702_v28  ;;  %v1803_v44 = vadd.f32 %v1802_v42, %v1801_v38 }
 0x1e3   : > { %v1804_v4 = vsel %vm661_vm3, %v1769_v6, 0.0  ;;  %2003 = vst.msk [vmem:[%s3494_s25 + $0x10] sm:$0xf] %vm1998_vm8, %v2203_v7  ;;  %v2362_v22 = vpop.f32.mrb[24].mxu0  ;;  %v2206_v35 = vpack.c.bf16 %v1597_v43, %v1597_v43  ;;  %v1705_v57 = vsel %vm661_vm3, %v1589_v48, 0.0  ;;  %v1770_v61 = vmul.f32 %v1589_v48, %v1589_v48 }
 0x1e4   : > { %v2363_v50 = vpop.f32.mrb[25].mxu0  ;;  %v2204_v36 = vpack.c.bf16 %v1589_v48, %v1589_v48  ;;  %v1805_v55 = vadd.f32 %v1804_v4, %v1803_v44  ;;  %v1772_v39 = vmul.f32 %v1597_v43, %v1597_v43  ;;  %v1706_v16 = vadd.f32 %v1705_v57, %v1704_v26 }
 0x1e5   : > { %v2365_v29 = vpop.f32.mrb[26].mxu0  ;;  %v2454_v30 = vpop.f32.mrb[24].mxu1  ;;  %v2364_v25 = vadd.f32 %v2363_v50, %v2362_v22  ;;  %2006 = vst.msk [vmem:[%s3494_s25 + $0x1c] sm:$0xf] %vm1998_vm8, %v2206_v35  ;;  %v1806_v21 = vsel %vm661_vm3, %v1770_v61, 0.0  ;;  %v1808_v23 = vsel %vm661_vm3, %v1771_v62, 0.0 }
 0x1e6   : > { %v2366_v18 = vpop.f32.mrb[27].mxu0  ;;  %v1601_v59 = vpop.f32.mrb[25].mxu1  ;;  %2004 = vst.msk [vmem:[%s3494_s25 + $0x14] sm:$0xf] %vm1998_vm8, %v2204_v36  ;;  %v1610_v52 = vadd.f32 %v2454_v30, %v3496_v31  ;;  %v1708_v12 = vadd.f32 %v1707_v2, %v1706_v16  ;;  %v1807_v13 = vadd.f32 %v1806_v21, %v1805_v55  ;;  %v1709_v33 = vsel %vm661_vm3, %v1597_v43, 0.0 }
 0x1e7   : > { %v2367_v1 = vadd.f32 %v2366_v18, %v2365_v29  ;;  %v1602_v37 = vadd.f32 %v3481_v9, %v1601_v59  ;;  %v2455_v24 = vpop.f32.mrb[26].mxu1  ;;  %v1810_v9 = vsel %vm661_vm3, %v1772_v39, 0.0 }
 0x1e8   : > { %v1613_v8 = vadd.f32 %v2455_v24, %v2361_v54  ;;  %v1604_v20 = vpop.f32.mrb[27].mxu1  ;;  %v2209_v15 = vpack.c.bf16 %v1610_v52, %v1610_v52  ;;  %v1809_v17 = vadd.f32 %v1808_v23, %v1807_v13  ;;  %v1710_v41 = vadd.f32 %v1709_v33, %v1708_v12 }
 0x1e9   : > { %v1711_v19 = vsel %vm661_vm3, %v1602_v37, 0.0  ;;  %v1773_v31 = vmul.f32 %v1602_v37, %v1602_v37  ;;  %v2207_v58 = vpack.c.bf16 %v1602_v37, %v1602_v37  ;;  %v1775_v3 = vmul.f32 %v1610_v52, %v1610_v52 }
 0x1ea   : > { %2009 = vst.msk [vmem:[%s3494_s25 + $0x28] sm:$0xf] %vm1998_vm8, %v2209_v15  ;;  %v2210_v54 = vpack.c.bf16 %v1613_v8, %v1613_v8  ;;  %v1712_v45 = vadd.f32 %v1711_v19, %v1710_v41  ;;  %v1811_v51 = vadd.f32 %v1810_v9, %v1809_v17  ;;  %v1605_v49 = vadd.f32 %v3483_v11, %v1604_v20 }
 0x1eb   : > { %v1812_v53 = vsel %vm661_vm3, %v1773_v31, 0.0  ;;  %2007 = vst.msk [vmem:[%s3494_s25 + $0x20] sm:$0xf] %vm1998_vm8, %v2207_v58  ;;  %v1776_v47 = vmul.f32 %v1613_v8, %v1613_v8  ;;  %v1715_v4 = vsel %vm661_vm3, %v1610_v52, 0.0  ;;  %v1816_v48 = vsel %vm661_vm3, %v1775_v3, 0.0 }
 0x1ec   : > { %2010 = vst.msk [vmem:[%s3494_s25 + $0x2c] sm:$0xf] %vm1998_vm8, %v2210_v54  ;;  %v1813_v0 = vadd.f32 %v1812_v53, %v1811_v51  ;;  %v1713_v32 = vsel %vm661_vm3, %v1605_v49, 0.0  ;;  %v1774_v63 = vmul.f32 %v1605_v49, %v1605_v49  ;;  %v2208_v6 = vpack.c.bf16 %v1605_v49, %v1605_v49 }
 0x1ed   : > { %v2458_v56 = vpop.f32.mrb[28].mxu1  ;;  %v1714_v38 = vadd.f32 %v1713_v32, %v1712_v45  ;;  %v1717_v11 = vsel %vm661_vm3, %v1613_v8, 0.0  ;;  %v1818_v26 = vsel %vm661_vm3, %v1776_v47, 0.0 }
 0x1ee   : > { %v1617_v7 = vpop.f32.mrb[29].mxu1  ;;  %v1814_v22 = vsel %vm661_vm3, %v1774_v63, 0.0  ;;  %2008 = vst.msk [vmem:[%s3494_s25 + $0x24] sm:$0xf] %vm1998_vm8, %v2208_v6 }
 0x1ef   : > { %v2368_v28 = vpop.f32.mrb[28].mxu0  ;;  %v1618_v43 = vadd.f32 %v2364_v25, %v1617_v7  ;;  %v2459_v42 = vpop.f32.mrb[30].mxu1  ;;  %v1716_v44 = vadd.f32 %v1715_v4, %v1714_v38  ;;  %v1815_v50 = vadd.f32 %v1814_v22, %v1813_v0 }
 0x1f0   : > { %v2369_v2 = vpop.f32.mrb[29].mxu0  ;;  %v1620_v62 = vpop.f32.mrb[31].mxu1 }
 0x1f1   : > { %v1777_v35 = vmul.f32 %v1618_v43, %v1618_v43  ;;  %v2371_v57 = vpop.f32.mrb[30].mxu0  ;;  %v1719_v61 = vsel %vm661_vm3, %v1618_v43, 0.0  ;;  %v2211_v36 = vpack.c.bf16 %v1618_v43, %v1618_v43  ;;  %v2370_v29 = vadd.f32 %v2369_v2, %v2368_v28 }
 0x1f2   : > { %v1621_v30 = vadd.f32 %v2367_v1, %v1620_v62  ;;  %v2372_v55 = vpop.f32.mrb[31].mxu0  ;;  %v1817_v39 = vadd.f32 %v1816_v48, %v1815_v50  ;;  %v1718_v16 = vadd.f32 %v1717_v11, %v1716_v44 }
 0x1f3   : > { %v1820_v25 = vsel %vm661_vm3, %v1777_v35, 0.0  ;;  %v2373_v18 = vadd.f32 %v2372_v55, %v2371_v57  ;;  %2011 = vst.msk [vmem:[%s3494_s25 + $0x30] sm:$0xf] %vm1998_vm8, %v2211_v36  ;;  %v1626_v59 = vadd.f32 %v2458_v56, %v2370_v29 }
 0x1f4   : > { %v1721_v21 = vsel %vm661_vm3, %v1621_v30, 0.0  ;;  %v1778_v52 = vmul.f32 %v1621_v30, %v1621_v30  ;;  %v2212_v37 = vpack.c.bf16 %v1621_v30, %v1621_v30  ;;  %v1720_v24 = vadd.f32 %v1719_v61, %v1718_v16 }
 0x1f5   : > { %v1819_v12 = vadd.f32 %v1818_v26, %v1817_v39  ;;  %v1629_v13 = vadd.f32 %v2459_v42, %v2373_v18  ;;  %v3558_v8 = vpop.f32.mrb[32].mxu1  ;;  %v1723_v1 = vsel %vm661_vm3, %v1626_v59, 0.0  ;;  %v1779_v20 = vmul.f32 %v1626_v59, %v1626_v59 }
 0x1f6   : > { %v2213_v23 = vpack.c.bf16 %v1626_v59, %v1626_v59  ;;  %v1822_v33 = vsel %vm661_vm3, %v1778_v52, 0.0  ;;  %2012 = vst.msk [vmem:[%s3494_s25 + $0x34] sm:$0xf] %vm1998_vm8, %v2212_v37  ;;  %v1633_v15 = vpop.f32.mrb[33].mxu1  ;;  %v1722_v17 = vadd.f32 %v1721_v21, %v1720_v24 }
 0x1f7   : > { %v1821_v19 = vadd.f32 %v1820_v25, %v1819_v12  ;;  %v1780_v41 = vmul.f32 %v1629_v13, %v1629_v13  ;;  %v3564_v31 = vpop.f32.mrb[34].mxu1  ;;  %v1824_v58 = vsel %vm661_vm3, %v1779_v20, 0.0  ;;  %v1725_v9 = vsel %vm661_vm3, %v1629_v13, 0.0 }
 0x1f8   : > { %2013 = vst.msk [vmem:[%s3494_s25 + $0x38] sm:$0xf] %vm1998_vm8, %v2213_v23  ;;  %v2214_v3 = vpack.c.bf16 %v1629_v13, %v1629_v13  ;;  %v1636_v54 = vpop.f32.mrb[35].mxu1  ;;  %v1724_v45 = vadd.f32 %v1723_v1, %v1722_v17 }
 0x1f9   : > { %v1823_v51 = vadd.f32 %v1822_v33, %v1821_v19  ;;  %v1826_v53 = vsel %vm661_vm3, %v1780_v41, 0.0 }
 0x1fa   : > { %2014 = vst.msk [vmem:[%s3494_s25 + $0x3c] sm:$0xf] %vm1998_vm8, %v2214_v3  ;;  %v1726_v56 = vadd.f32 %v1725_v9, %v1724_v45 }
 0x1fb   : > { %v1825_v49 = vadd.f32 %v1824_v58, %v1823_v51  ;;  %v2374_v47 = vpop.f32.mrb[32].mxu0 }
 0x1fc   : > { %v2375_v0 = vpop.f32.mrb[33].mxu0 }
 0x1fd   : > { %v2376_v32 = vadd.f32 %v2375_v0, %v2374_v47  ;;  %v2377_v63 = vpop.f32.mrb[34].mxu0  ;;  %v1827_v6 = vadd.f32 %v1826_v53, %v1825_v49  ;;  %v3573_v7 = vpop.f32.mrb[36].mxu1 }
 0x1fe   : > { %v2378_v38 = vpop.f32.mrb[35].mxu0  ;;  %v3575_v28 = vpop.f32.mrb[37].mxu1 }
 0x1ff   : > { %v2379_v43 = vadd.f32 %v2378_v38, %v2377_v63  ;;  %v1634_v42 = vadd.f32 %v2376_v32, %v1633_v15  ;;  %v3577_v4 = vpop.f32.mrb[38].mxu1 }
 0x200   : > { %v3579_v48 = vpop.f32.mrb[39].mxu1 }
 0x201   : > { %v1727_v11 = vsel %vm661_vm3, %v1634_v42, 0.0  ;;  %v1781_v22 = vmul.f32 %v1634_v42, %v1634_v42  ;;  %v2215_v2 = vpack.c.bf16 %v1634_v42, %v1634_v42  ;;  %v1637_v62 = vadd.f32 %v2379_v43, %v1636_v54 }
 0x202   : > { %v1728_v26 = vadd.f32 %v1727_v11, %v1726_v56 }
 0x203   : > { %v1828_v44 = vsel %vm661_vm3, %v1781_v22, 0.0  ;;  %2015 = vst.msk [vmem:[%s3494_s25 + $0x40] sm:$0xf] %vm1998_vm8, %v2215_v2  ;;  %v1729_v50 = vsel %vm661_vm3, %v1637_v62, 0.0  ;;  %v1782_v35 = vmul.f32 %v1637_v62, %v1637_v62  ;;  %v2216_v57 = vpack.c.bf16 %v1637_v62, %v1637_v62 }
 0x204   : > { %v1829_v61 = vadd.f32 %v1828_v44, %v1827_v6  ;;  %v1730_v36 = vadd.f32 %v1729_v50, %v1728_v26 }
 0x205   : > { %v1830_v29 = vsel %vm661_vm3, %v1782_v35, 0.0  ;;  %2016 = vst.msk [vmem:[%s3494_s25 + $0x44] sm:$0xf] %vm1998_vm8, %v2216_v57  ;;  %v2470_v30 = vpop.f32.mrb[40].mxu1 }
 0x206   : > { %v1831_v55 = vadd.f32 %v1830_v29, %v1829_v61  ;;  %v3590_v39 = vadd.f32 %v2470_v30, %v3471_v14  ;;  %v1665_v16 = vpop.f32.mrb[41].mxu1 }
 0x207   : > { %v2380_v25 = vpop.f32.mrb[36].mxu0  ;;  %v3593_v18 = vadd.f32 %v3463_v10, %v1665_v16  ;;  %v2471_v59 = vpop.f32.mrb[42].mxu1 }
 0x208   : > { %v2225_v21 = vpack.c.bf16 %v3590_v39, %v3590_v39  ;;  %v2381_v52 = vpop.f32.mrb[37].mxu0  ;;  %v3598_v37 = vadd.f32 %v2471_v59, %v3473_v60  ;;  %v1668_v24 = vpop.f32.mrb[43].mxu1 }
 0x209   : > { %v2223_v12 = vpack.c.bf16 %v3593_v18, %v3593_v18  ;;  %v2382_v14 = vadd.f32 %v2381_v52, %v2380_v25  ;;  %v2383_v13 = vpop.f32.mrb[38].mxu0  ;;  %v3610_v60 = vadd.f32 %v3465_v34, %v1668_v24 }
 0x20a   : > { %2025 = vst.msk [vmem:[%s3494_s25 + $0x68] sm:$0xf] %vm1998_vm8, %v2225_v21  ;;  %v2226_v10 = vpack.c.bf16 %v3598_v37, %v3598_v37  ;;  %v2384_v1 = vpop.f32.mrb[39].mxu0 }
 0x20b   : > { %2023 = vst.msk [vmem:[%s3494_s25 + $0x60] sm:$0xf] %vm1998_vm8, %v2223_v12  ;;  %v1642_v20 = vadd.f32 %v3558_v8, %v2382_v14  ;;  %v2385_v23 = vadd.f32 %v2384_v1, %v2383_v13  ;;  %v2224_v58 = vpack.c.bf16 %v3610_v60, %v3610_v60 }
 0x20c   : > { %2026 = vst.msk [vmem:[%s3494_s25 + $0x6c] sm:$0xf] %vm1998_vm8, %v2226_v10 }
 0x20d   : > { %v1731_v33 = vsel %vm661_vm3, %v1642_v20, 0.0  ;;  %v1783_v15 = vmul.f32 %v1642_v20, %v1642_v20  ;;  %v2217_v19 = vpack.c.bf16 %v1642_v20, %v1642_v20  ;;  %v2474_v17 = vpop.f32.mrb[44].mxu1  ;;  %v1645_v9 = vadd.f32 %v3564_v31, %v2385_v23  ;;  %2024 = vst.msk [vmem:[%s3494_s25 + $0x64] sm:$0xf] %vm1998_vm8, %v2224_v58 }
 0x20e   : > { %v1732_v41 = vadd.f32 %v1731_v33, %v1730_v36  ;;  %v1681_v3 = vpop.f32.mrb[45].mxu1  ;;  %v3622_v8 = vadd.f32 %v2474_v17, %v3485_v5  ;;  %v1789_v23 = vmul.f32 %v3593_v18, %v3593_v18 }
 0x20f   : > { %v1832_v34 = vsel %vm661_vm3, %v1783_v15, 0.0  ;;  %2017 = vst.msk [vmem:[%s3494_s25 + $0x48] sm:$0xf] %vm1998_vm8, %v2217_v19  ;;  %v3625_v54 = vadd.f32 %v3477_v46, %v1681_v3  ;;  %v2475_v45 = vpop.f32.mrb[46].mxu1  ;;  %v1733_v31 = vsel %vm661_vm3, %v1645_v9, 0.0  ;;  %v1784_v53 = vmul.f32 %v1645_v9, %v1645_v9 }
 0x210   : > { %v1833_v51 = vadd.f32 %v1832_v34, %v1831_v55  ;;  %v1684_v49 = vpop.f32.mrb[47].mxu1  ;;  %v1734_v47 = vadd.f32 %v1733_v31, %v1732_v41  ;;  %v2218_v56 = vpack.c.bf16 %v1645_v9, %v1645_v9  ;;  %v2229_v5 = vpack.c.bf16 %v3622_v8, %v3622_v8 }
 0x211   : > { %v1834_v0 = vsel %vm661_vm3, %v1784_v53, 0.0  ;;  %v2227_v32 = vpack.c.bf16 %v3625_v54, %v3625_v54  ;;  %v3638_v63 = vadd.f32 %v2475_v45, %v3487_v27  ;;  %v3643_v38 = vadd.f32 %v3479_v40, %v1684_v49 }
 0x212   : > { %v1835_v46 = vadd.f32 %v1834_v0, %v1833_v51  ;;  %2018 = vst.msk [vmem:[%s3494_s25 + $0x4c] sm:$0xf] %vm1998_vm8, %v2218_v56  ;;  %2029 = vst.msk [vmem:[%s3494_s25 + $0x78] sm:$0xf] %vm1998_vm8, %v2229_v5  ;;  %v1743_v9 = vsel %vm661_vm3, %v3593_v18, 0.0  ;;  %v1791_v51 = vmul.f32 %v3590_v39, %v3590_v39  ;;  %v1844_v31 = vsel %vm661_vm3, %v1789_v23, 0.0 }
 0x213   : > { %v2386_v6 = vpop.f32.mrb[40].mxu0  ;;  %2027 = vst.msk [vmem:[%s3494_s25 + $0x70] sm:$0xf] %vm1998_vm8, %v2227_v32  ;;  %v2230_v42 = vpack.c.bf16 %v3638_v63, %v3638_v63  ;;  %v2228_v2 = vpack.c.bf16 %v3643_v38, %v3643_v38  ;;  %v1745_v53 = vsel %vm661_vm3, %v3610_v60, 0.0  ;;  %v1747_v18 = vsel %vm661_vm3, %v3590_v39, 0.0 }
 0x214   : > { %v2387_v43 = vpop.f32.mrb[41].mxu0  ;;  %v1792_v56 = vmul.f32 %v3598_v37, %v3598_v37  ;;  %v1848_v32 = vsel %vm661_vm3, %v1791_v51, 0.0  ;;  %v1751_v39 = vsel %vm661_vm3, %v3625_v54, 0.0 }
 0x215   : > { %v2388_v11 = vadd.f32 %v2387_v43, %v2386_v6  ;;  %v2389_v22 = vpop.f32.mrb[42].mxu0  ;;  %2030 = vst.msk [vmem:[%s3494_s25 + $0x7c] sm:$0xf] %vm1998_vm8, %v2230_v42  ;;  %2028 = vst.msk [vmem:[%s3494_s25 + $0x74] sm:$0xf] %vm1998_vm8, %v2228_v2  ;;  %v1749_v6 = vsel %vm661_vm3, %v3598_v37, 0.0 }
 0x216   : > { %v2390_v27 = vpop.f32.mrb[43].mxu0 }
 0x217   : > { %v1650_v62 = vadd.f32 %v2388_v11, %v3575_v28  ;;  %v2391_v40 = vadd.f32 %v2390_v27, %v2389_v22  ;;  %v1850_v11 = vsel %vm661_vm3, %v1792_v56, 0.0  ;;  %v1794_v22 = vmul.f32 %v3643_v38, %v3643_v38 }
 0x219   : > { %v1735_v26 = vsel %vm661_vm3, %v1650_v62, 0.0  ;;  %v1785_v44 = vmul.f32 %v1650_v62, %v1650_v62  ;;  %v2219_v50 = vpack.c.bf16 %v1650_v62, %v1650_v62  ;;  %v1653_v35 = vadd.f32 %v2391_v40, %v3579_v48 }
 0x21a   : > { %v1736_v57 = vadd.f32 %v1735_v26, %v1734_v47  ;;  %v1795_v62 = vmul.f32 %v3622_v8, %v3622_v8  ;;  %v1753_v40 = vsel %vm661_vm3, %v3643_v38, 0.0 }
 0x21b   : > { %v1836_v61 = vsel %vm661_vm3, %v1785_v44, 0.0  ;;  %2019 = vst.msk [vmem:[%s3494_s25 + $0x50] sm:$0xf] %vm1998_vm8, %v2219_v50  ;;  %v1737_v36 = vsel %vm661_vm3, %v1653_v35, 0.0  ;;  %v1786_v29 = vmul.f32 %v1653_v35, %v1653_v35  ;;  %v2220_v30 = vpack.c.bf16 %v1653_v35, %v1653_v35 }
 0x21c   : > { %v1837_v28 = vadd.f32 %v1836_v61, %v1835_v46  ;;  %v1738_v55 = vadd.f32 %v1737_v36, %v1736_v57  ;;  %v1755_v50 = vsel %vm661_vm3, %v3622_v8, 0.0  ;;  %v1854_v35 = vsel %vm661_vm3, %v1794_v22, 0.0 }
 0x21d   : > { %v1838_v16 = vsel %vm661_vm3, %v1786_v29, 0.0  ;;  %2020 = vst.msk [vmem:[%s3494_s25 + $0x54] sm:$0xf] %vm1998_vm8, %v2220_v30  ;;  %v1856_v36 = vsel %vm661_vm3, %v1795_v62, 0.0  ;;  %v1757_v29 = vsel %vm661_vm3, %v3638_v63, 0.0 }
 0x21e   : > { %v1839_v25 = vadd.f32 %v1838_v16, %v1837_v28 }
 0x21f   : > { %v2392_v59 = vpop.f32.mrb[44].mxu0 }
 0x220   : > { %v2393_v21 = vpop.f32.mrb[45].mxu0 }
 0x221   : > { %v2394_v48 = vadd.f32 %v2393_v21, %v2392_v59  ;;  %v2395_v52 = vpop.f32.mrb[46].mxu0 }
 0x222   : > { %v2396_v24 = vpop.f32.mrb[47].mxu0 }
 0x223   : > { %v1658_v12 = vadd.f32 %v3573_v7, %v2394_v48  ;;  %v2397_v14 = vadd.f32 %v2396_v24, %v2395_v52 }
 0x225   : > { %v1739_v13 = vsel %vm661_vm3, %v1658_v12, 0.0  ;;  %v1787_v10 = vmul.f32 %v1658_v12, %v1658_v12  ;;  %v2221_v1 = vpack.c.bf16 %v1658_v12, %v1658_v12  ;;  %v1661_v20 = vadd.f32 %v3577_v4, %v2397_v14 }
 0x226   : > { %v1740_v33 = vadd.f32 %v1739_v13, %v1738_v55  ;;  %v1790_v4 = vmul.f32 %v3610_v60, %v3610_v60  ;;  %v1793_v60 = vmul.f32 %v3625_v54, %v3625_v54  ;;  %v1796_v54 = vmul.f32 %v3638_v63, %v3638_v63 }
 0x227   : > { %v1840_v15 = vsel %vm661_vm3, %v1787_v10, 0.0  ;;  %2021 = vst.msk [vmem:[%s3494_s25 + $0x58] sm:$0xf] %vm1998_vm8, %v2221_v1  ;;  %v1741_v19 = vsel %vm661_vm3, %v1661_v20, 0.0  ;;  %v1788_v17 = vmul.f32 %v1661_v20, %v1661_v20  ;;  %v2222_v7 = vpack.c.bf16 %v1661_v20, %v1661_v20 }
 0x228   : > { %v1841_v41 = vadd.f32 %v1840_v15, %v1839_v25  ;;  %v1742_v58 = vadd.f32 %v1741_v19, %v1740_v33  ;;  %v1846_v0 = vsel %vm661_vm3, %v1790_v4, 0.0  ;;  %v1852_v37 = vsel %vm661_vm3, %v1793_v60, 0.0 }
 0x229   : > { %v1842_v3 = vsel %vm661_vm3, %v1788_v17, 0.0  ;;  %2022 = vst.msk [vmem:[%s3494_s25 + $0x5c] sm:$0xf] %vm1998_vm8, %v2222_v7  ;;  %v1858_v28 = vsel %vm661_vm3, %v1796_v54, 0.0 }
 0x22a   : > { %v1744_v34 = vadd.f32 %v1743_v9, %v1742_v58  ;;  %v1843_v45 = vadd.f32 %v1842_v3, %v1841_v41 }
 0x22c   : > { %v1746_v49 = vadd.f32 %v1745_v53, %v1744_v34  ;;  %v1845_v47 = vadd.f32 %v1844_v31, %v1843_v45 }
 0x22e   : > { %v1748_v5 = vadd.f32 %v1747_v18, %v1746_v49  ;;  %v1847_v46 = vadd.f32 %v1846_v0, %v1845_v47 }
 0x230   : > { %v1750_v43 = vadd.f32 %v1749_v6, %v1748_v5  ;;  %v1849_v42 = vadd.f32 %v1848_v32, %v1847_v46 }
 0x232   : > { %v1752_v2 = vadd.f32 %v1751_v39, %v1750_v43  ;;  %v1851_v27 = vadd.f32 %v1850_v11, %v1849_v42 }
 0x234   : > { %v1754_v26 = vadd.f32 %v1753_v40, %v1752_v2  ;;  %v1853_v44 = vadd.f32 %v1852_v37, %v1851_v27 }
 0x236   : > { %v1756_v57 = vadd.f32 %v1755_v50, %v1754_v26  ;;  %v1855_v61 = vadd.f32 %v1854_v35, %v1853_v44 }
 0x238   : > { %v1758_v30 = vadd.f32 %v1757_v29, %v1756_v57  ;;  %v1857_v38 = vadd.f32 %v1856_v36, %v1855_v61 }
 0x23a   : > { %v1759_v55 = vrot.slane %v1758_v30, 4  ;;  %v1859_v16 = vadd.f32 %v1858_v28, %v1857_v38 }
 0x23c   : > { %v1760_v8 = vadd.f32 %v1759_v55, %v1758_v30  ;;  %v1860_v25 = vrot.slane %v1859_v16, 4 }
 0x23e   : > { %v1761_v59 = vrot.slane %v1760_v8, 2  ;;  %v1861_v21 = vadd.f32 %v1860_v25, %v1859_v16 }
 0x240   : > { %v1762_v48 = vadd.f32 %v1761_v59, %v1760_v8  ;;  %v1862_v52 = vrot.slane %v1861_v21, 2 }
 0x242   : > { %v1763_v24 = vrot.slane %v1762_v48, 1  ;;  %v1863_v12 = vadd.f32 %v1862_v52, %v1861_v21 }
 0x244   : > { %v1864_v14 = vrot.slane %v1863_v12, 1  ;;  %v1764_v63 = vadd.f32 %v1763_v24, %v1762_v48 }
 0x246   : > { %v1865_v13 = vadd.f32 %v1864_v14, %v1863_v12 }
 0x248   : > { %v1867_v10 = vsel %vm1866_vm9, %v1764_v63, %v1865_v13 }
 0x249   : > { %1869 = vst.msk [vmem:[%s235_s28] sm:$0x3] %vm1868_vm10, %v1867_v10 }
 0x24a PF: > { %s16_s18 = sadd.s32 1, %s2528_s18  }
 0x24b   : > { %p13_p4 = scmp.ge.s32.totalorder %s16_s18, 4  }
 0x24d   :  { %15 = sbr.rel (!%p13_p4) target bundleno = 1 (0x1), region = 80 }

</bundles_post_ra>
